<compile_context>
chip_gen: v6e
topology: v6e:2x2x1
jax: 0.10.0
libtpu: 0.0.40
codegen_flags: <defaults>
</compile_context>

<pallas_src>
import functools

import jax
import jax.numpy as jnp
from jax.experimental import pallas as pl
from jax.experimental.pallas import tpu as pltpu

LN_EPS = 1e-5  # PyTorch nn.LayerNorm default

_CPARAMS_ROWS = pltpu.CompilerParams(dimension_semantics=("parallel",))


# ----------------------------------------------------------------------------
# Small helpers
# ----------------------------------------------------------------------------
def _round_up(x, m):
    return ((x + m - 1) // m) * m


def _pick_tm(n, bytes_per_row, max_rows=1024, vmem_budget=8 << 20):
    """Pick the row tile: as large as possible (pipeline overhead ~0.35us/step),
    multiple of 8, dividing n, double-buffered row operands within a VMEM budget
    (re-derived for v7x's smaller 64 MiB VMEM via `vmem_budget`), and leaving at
    least 2 grid steps so the 'parallel' row axis can shard across TensorCores."""
    if n % 8 != 0:
        return n  # full-block fallback (block == full array is always legal)
    cap = min(max_rows,
              n // 2 if n >= 16 else n,
              max(8, vmem_budget // max(1, 2 * bytes_per_row)))
    cap -= cap % 8
    cap = max(cap, 8)
    tm = cap
    while n % tm:
        tm -= 8
    return tm


def _const_spec(shape):
    # Grid-invariant operand (weights / biases / LN params).
    # TODO(synk): on v7x at production sizes add pipeline_mode=pl.Buffered(1) here
    # (plus an explicit vmem_limit_bytes) to drop the pointless second weight buffer.
    return pl.BlockSpec(shape, lambda i: (0, 0))


def _row_spec(tm, w):
    return pl.BlockSpec((tm, w), lambda i: (i, 0))


def _ln(y, g, b, inv_d):
    # Single-pass LayerNorm: mean via sum*(1/d), var = E[y^2] - mu^2 (2 reductions).
    s1 = jnp.sum(y, axis=-1, keepdims=True)
    s2 = jnp.sum(y * y, axis=-1, keepdims=True)
    mu = s1 * inv_d
    var = s2 * inv_d - mu * mu
    return (y - mu) * jax.lax.rsqrt(var + LN_EPS) * g + b


# ----------------------------------------------------------------------------
# Pallas kernels
# ----------------------------------------------------------------------------
def _proj_softmax_kernel(q_ref, v_ref, wv_ref, bv_ref, woa_ref, boa_ref, o_ref,
                         *, D, H, LP):
    """Fused: value proj (from query), sampling-offset proj + attention-weight proj
    (from query+pos, packed into one weight matrix, zero-padded to a 128-lane
    multiple), plus per-head softmax of the attention-weight logits."""
    HLP2 = 2 * H * LP
    val = jnp.dot(v_ref[...].astype(jnp.bfloat16), wv_ref[...],
                  preferred_element_type=jnp.float32) + bv_ref[...]
    oa = jnp.dot(q_ref[...].astype(jnp.bfloat16), woa_ref[...],
                 preferred_element_type=jnp.float32) + boa_ref[...]
    drest = o_ref.shape[1] - D
    o_ref[:, pl.ds(0, D)] = val
    o_ref[:, pl.ds(D, drest)] = oa
    # Grouped softmax over each head's L*P attention-weight logits (exp -> EUP).
    for h in range(H):
        c0 = HLP2 + h * LP
        a = oa[:, c0:c0 + LP]
        m = jnp.max(a, axis=-1, keepdims=True)
        e = jnp.exp(a - m)
        s = jnp.sum(e, axis=-1, keepdims=True)
        o_ref[:, pl.ds(D + c0, LP)] = e / s


def _outproj_res_ln_kernel(attn_ref, res_ref, w_ref, b_ref, g_ref, be_ref, o_ref,
                           *, inv_d):
    """Fused: attention output projection + residual + LayerNorm (norm1)."""
    y = (res_ref[...]
         + jnp.dot(attn_ref[...].astype(jnp.bfloat16), w_ref[...],
                   preferred_element_type=jnp.float32)
         + b_ref[...])
    o_ref[...] = _ln(y, g_ref[...], be_ref[...], inv_d)


def _ffn_ln_kernel(x_ref, w1_ref, b1_ref, w2_ref, b2_ref, g_ref, be_ref, o_ref,
                   *, inv_d):
    """Fused: Linear -> ReLU -> Linear -> residual -> LayerNorm (norm2)."""
    x = x_ref[...]
    h = jnp.dot(x.astype(jnp.bfloat16), w1_ref[...],
                preferred_element_type=jnp.float32) + b1_ref[...]
    h = jnp.maximum(h, 0.0)
    y = x + jnp.dot(h.astype(jnp.bfloat16), w2_ref[...],
                    preferred_element_type=jnp.float32) + b2_ref[...]
    o_ref[...] = _ln(y, g_ref[...], be_ref[...], inv_d)


def _fusion_kernel(*refs, n_parts, inv_d):
    """memory_fusion without materialising the concat: per-layer query slabs come
    in separately, w1 is split row-wise, partial dots accumulate in registers.
    Then ReLU -> Linear -> LayerNorm (no residual)."""
    x_refs = refs[:n_parts]
    w1_refs = refs[n_parts:2 * n_parts]
    b1_ref, w2_ref, b2_ref, g_ref, be_ref, o_ref = refs[2 * n_parts:]
    acc = jnp.dot(x_refs[0][...].astype(jnp.bfloat16), w1_refs[0][...],
                  preferred_element_type=jnp.float32)
    for xr, wr in zip(x_refs[1:], w1_refs[1:]):
        acc = acc + jnp.dot(xr[...].astype(jnp.bfloat16), wr[...],
                            preferred_element_type=jnp.float32)
    h = jnp.maximum(acc + b1_ref[...], 0.0)
    y = jnp.dot(h.astype(jnp.bfloat16), w2_ref[...],
                preferred_element_type=jnp.float32) + b2_ref[...]
    o_ref[...] = _ln(y, g_ref[...], be_ref[...], inv_d)


# ----------------------------------------------------------------------------
# Pallas wrappers (row-tiled over batch*seq)
# ----------------------------------------------------------------------------
def pallas_proj_softmax(q2d, v2d, p, *, D, H, LP):
    n = q2d.shape[0]
    drest = p["woa"].shape[1]
    dtot = D + drest                                   # lane-dense (multiple of 128)
    tm = _pick_tm(n, (2 * D + dtot) * 4)
    return pl.pallas_call(
        functools.partial(_proj_softmax_kernel, D=D, H=H, LP=LP),
        grid=(n // tm,),
        in_specs=[
            _row_spec(tm, D),                          # query + pos
            _row_spec(tm, D),                          # query (value input)
            _const_spec((D, D)),                       # value_proj weight (bf16)
            _const_spec((1, D)),
            _const_spec((D, drest)),                   # packed offset|aw weight (bf16)
            _const_spec((1, drest)),
        ],
        out_specs=_row_spec(tm, dtot),
        out_shape=jax.ShapeDtypeStruct((n, dtot), jnp.float32),
        compiler_params=_CPARAMS_ROWS,
    )(q2d, v2d, p["wv"], p["bv"].reshape(1, D), p["woa"], p["boa"].reshape(1, drest))


def pallas_outproj_res_ln(attn2d, res2d, p):
    n, d = attn2d.shape
    tm = _pick_tm(n, (3 * d) * 4)
    return pl.pallas_call(
        functools.partial(_outproj_res_ln_kernel, inv_d=1.0 / d),
        grid=(n // tm,),
        in_specs=[
            _row_spec(tm, d),
            _row_spec(tm, d),
            _const_spec((d, d)),
            _const_spec((1, d)),
            _const_spec((1, d)),
            _const_spec((1, d)),
        ],
        out_specs=_row_spec(tm, d),
        out_shape=jax.ShapeDtypeStruct((n, d), jnp.float32),
        compiler_params=_CPARAMS_ROWS,
    )(attn2d, res2d, p["out_w"], p["out_b"].reshape(1, d),
      p["norm1_g"].reshape(1, d), p["norm1_b"].reshape(1, d))


def pallas_ffn_ln(x2d, p):
    n, d = x2d.shape
    dffn = p["lin1_w"].shape[1]
    tm = _pick_tm(n, (2 * d + dffn) * 4)
    return pl.pallas_call(
        functools.partial(_ffn_ln_kernel, inv_d=1.0 / d),
        grid=(n // tm,),
        in_specs=[
            _row_spec(tm, d),
            _const_spec((d, dffn)),
            _const_spec((1, dffn)),
            _const_spec((dffn, d)),
            _const_spec((1, d)),
            _const_spec((1, d)),
            _const_spec((1, d)),
        ],
        out_specs=_row_spec(tm, d),
        out_shape=jax.ShapeDtypeStruct((n, d), jnp.float32),
        compiler_params=_CPARAMS_ROWS,
    )(x2d, p["lin1_w"], p["lin1_b"].reshape(1, dffn), p["lin2_w"],
      p["lin2_b"].reshape(1, d), p["norm2_g"].reshape(1, d), p["norm2_b"].reshape(1, d))


def pallas_memory_fusion(parts, fp):
    n, d = parts[0].shape
    n_parts = len(parts)
    dout = fp["w1"][0].shape[1]
    tm = _pick_tm(n, (n_parts * d + dout) * 4)
    in_specs = ([_row_spec(tm, d) for _ in parts]
                + [_const_spec((d, dout)) for _ in parts]
                + [_const_spec((1, dout)), _const_spec((dout, dout)),
                   _const_spec((1, dout)), _const_spec((1, dout)),
                   _const_spec((1, dout))])
    return pl.pallas_call(
        functools.partial(_fusion_kernel, n_parts=n_parts, inv_d=1.0 / dout),
        grid=(n // tm,),
        in_specs=in_specs,
        out_specs=_row_spec(tm, dout),
        out_shape=jax.ShapeDtypeStruct((n, dout), jnp.float32),
        compiler_params=_CPARAMS_ROWS,
    )(*parts, *fp["w1"], fp["b1"].reshape(1, dout), fp["w2"],
      fp["b2"].reshape(1, dout), fp["ln_g"].reshape(1, dout), fp["ln_b"].reshape(1, dout))


# ----------------------------------------------------------------------------
# Multi-scale deformable attention sampling core (grid_sample equivalent,
# bilinear, zero padding, align_corners=False).
# ----------------------------------------------------------------------------
# TODO(synk): the data-dependent bilinear gather stays in plain JAX; a Pallas
# version needs a manual make_async_copy / dynamic-gather formulation.
def ms_deform_attn_core(value, spatial_shapes_list, level_start_list,
                        sampling_locations, attention_weights):
    B, S, Hh, Dh = value.shape
    _, Nq, _, L, P, _ = sampling_locations.shape
    out = jnp.zeros((B, Nq, Hh, Dh), jnp.float32)
    b_idx = jnp.arange(B)[:, None, None, None]
    h_idx = jnp.arange(Hh)[None, None, :, None]
    for l, (H_, W_) in enumerate(spatial_shapes_list):
        start = level_start_list[l]
        v_l = value[:, start:start + H_ * W_]                 # (B, H_*W_, Hh, Dh)
        loc = sampling_locations[:, :, :, l]                  # (B, Nq, Hh, P, 2)
        x = loc[..., 0] * W_ - 0.5
        y = loc[..., 1] * H_ - 0.5
        x0 = jnp.floor(x)
        y0 = jnp.floor(y)
        x1 = x0 + 1.0
        y1 = y0 + 1.0
        wx1 = x - x0
        wx0 = 1.0 - wx1
        wy1 = y - y0
        wy0 = 1.0 - wy1

        def corner(yy, xx):
            valid = (xx >= 0) & (xx <= W_ - 1) & (yy >= 0) & (yy <= H_ - 1)
            xi = jnp.clip(xx, 0, W_ - 1).astype(jnp.int32)
            yi = jnp.clip(yy, 0, H_ - 1).astype(jnp.int32)
            idx = yi * W_ + xi                                # (B, Nq, Hh, P)
            g = v_l[b_idx, idx, h_idx]                        # (B, Nq, Hh, P, Dh)
            return g * valid[..., None].astype(jnp.float32)

        aw_l = attention_weights[:, :, :, l]                  # (B, Nq, Hh, P)
        # Fold bilinear corner weights into the attention weights so each corner
        # contributes via a single einsum (no summed `sampled` intermediate).
        out = out + jnp.einsum("bqhp,bqhpd->bqhd", aw_l * (wy0 * wx0), corner(y0, x0))
        out = out + jnp.einsum("bqhp,bqhpd->bqhd", aw_l * (wy0 * wx1), corner(y0, x1))
        out = out + jnp.einsum("bqhp,bqhpd->bqhd", aw_l * (wy1 * wx0), corner(y1, x0))
        out = out + jnp.einsum("bqhp,bqhpd->bqhd", aw_l * (wy1 * wx1), corner(y1, x1))
    return out.reshape(B, Nq, Hh * Dh)


# ----------------------------------------------------------------------------
# Encoder layer + encoder forward
# ----------------------------------------------------------------------------
def encoder_layer_forward(p, query, query_pos, reference_points,
                          spatial_shapes_list, level_start_list, *, H, L, P):
    B, S, D = query.shape
    Dh = D // H
    LP = L * P
    HLP = H * LP
    HLP2 = 2 * HLP
    q_with_pos = query if query_pos is None else query + query_pos
    q2d = q_with_pos.reshape(B * S, D)
    v2d = query.reshape(B * S, D)

    # --- fused value/offset/attention-weight projections (+ in-kernel softmax) ---
    proj = pallas_proj_softmax(q2d, v2d, p, D=D, H=H, LP=LP)  # (B*S, padded)
    value = proj[:, :D].reshape(B, S, H, Dh)
    off = proj[:, D:D + HLP2].reshape(B, S, H, L, P, 2)
    aw = proj[:, D + HLP2:D + HLP2 + HLP].reshape(B, S, H, L, P)

    # offset normalizer is (W, H) per level
    normalizer = jnp.array([[w_, h_] for (h_, w_) in spatial_shapes_list],
                           jnp.float32)
    loc = (reference_points[:, :, None, :, None, :]
           + off / normalizer[None, None, None, :, None, :])

    attn = ms_deform_attn_core(value, spatial_shapes_list, level_start_list,
                               loc, aw)                       # (B, S, D)

    # fused output projection + residual + norm1 (dropout = identity in eval mode)
    q1 = pallas_outproj_res_ln(attn.reshape(B * S, D), query.reshape(B * S, D), p)
    # fused FFN + residual + norm2
    q2 = pallas_ffn_ln(q1, p)
    return q2.reshape(B, S, D)


def relation_transformer_encoder(layer_params, fusion_params, query,
                                 spatial_shapes_list, level_start_list,
                                 reference_points, query_pos=None,
                                 query_key_padding_mask=None, *, H, L, P):
    # query_key_padding_mask is None in this synthetic setup
    del query_key_padding_mask
    B, S, D = query.shape
    queries = [query]
    for p in layer_params:
        query = encoder_layer_forward(p, query, query_pos, reference_points,
                                      spatial_shapes_list, level_start_list,
                                      H=H, L=L, P=P)
        queries.append(query)
    # memory_fusion without materialising the concat: per-layer slabs + split w1.
    parts = [q.reshape(B * S, D) for q in queries]
    out = pallas_memory_fusion(parts, fusion_params)
    return out.reshape(B, S, D)


# ----------------------------------------------------------------------------
# Deterministic parameter construction (weights stored bf16, bias/LN in f32)
# ----------------------------------------------------------------------------
def init_params(key, num_layers, D, H, L, P, Dffn):
    LP = L * P
    HLP = H * LP
    HLP2 = 2 * HLP
    drest = _round_up(D + HLP2 + HLP, 128) - D        # off|aw cols, zero-padded

    def dense(k, din, dout, scale=0.02):
        return jax.random.normal(k, (din, dout), jnp.float32) * scale

    layers = []
    for li in range(num_layers):
        k = jax.random.fold_in(key, li)
        ks = jax.random.split(k, 8)
        off_w = dense(ks[0], D, HLP2)
        aw_w = dense(ks[2], D, HLP)
        woa = jnp.zeros((D, drest), jnp.float32)
        woa = woa.at[:, :HLP2].set(off_w).at[:, HLP2:HLP2 + HLP].set(aw_w)
        off_b = jax.random.normal(ks[1], (HLP2,), jnp.float32) * 0.1
        boa = jnp.zeros((drest,), jnp.float32).at[:HLP2].set(off_b)
        layers.append(dict(
            wv=dense(ks[3], D, D).astype(jnp.bfloat16),
            bv=jnp.zeros((D,), jnp.float32),
            woa=woa.astype(jnp.bfloat16),
            boa=boa,
            out_w=dense(ks[4], D, D).astype(jnp.bfloat16),
            out_b=jnp.zeros((D,), jnp.float32),
            norm1_g=jnp.ones((D,), jnp.float32),
            norm1_b=jnp.zeros((D,), jnp.float32),
            lin1_w=dense(ks[5], D, Dffn).astype(jnp.bfloat16),
            lin1_b=jnp.zeros((Dffn,), jnp.float32),
            lin2_w=dense(ks[6], Dffn, D).astype(jnp.bfloat16),
            lin2_b=jnp.zeros((D,), jnp.float32),
            norm2_g=jnp.ones((D,), jnp.float32),
            norm2_b=jnp.zeros((D,), jnp.float32),
        ))
    kf1, kf2 = jax.random.split(jax.random.fold_in(key, 10_000))
    w1_full = dense(kf1, (num_layers + 1) * D, D)
    w1_parts = [w1_full[i * D:(i + 1) * D].astype(jnp.bfloat16)
                for i in range(num_layers + 1)]
    fusion = dict(
        w1=w1_parts,
        b1=jnp.zeros((D,), jnp.float32),
        w2=dense(kf2, D, D).astype(jnp.bfloat16),
        b2=jnp.zeros((D,), jnp.float32),
        ln_g=jnp.ones((D,), jnp.float32),
        ln_b=jnp.zeros((D,), jnp.float32),
    )
    return layers, fusion


# ----------------------------------------------------------------------------
# Main
# ----------------------------------------------------------------------------
if __name__ == "__main__":
    # Small but lane-dense toy config (embed dim = one full 128-lane vreg).
    B, D, H, L, P, Dffn, num_layers = 2, 128, 4, 2, 2, 256, 2
    spatial_shapes_list = [(8, 8), (4, 4)]
    level_start_list = [0, 64]
    S = sum(h * w for h, w in spatial_shapes_list)            # 80

    key = jax.random.PRNGKey(0)
    k1, k2, k3, kp = jax.random.split(key, 4)
    query = jax.random.normal(k1, (B, S, D), jnp.float32)
    query_pos = jax.random.normal(k2, (B, S, D), jnp.float32)
    reference_points = jax.random.uniform(k3, (B, S, L, 2), jnp.float32)

    # (kept for API parity with the PyTorch signature; static python copies drive the loop)
    spatial_shapes = jnp.array(spatial_shapes_list, jnp.int32)
    level_start_index = jnp.array(level_start_list, jnp.int32)

    layer_params, fusion_params = init_params(kp, num_layers, D, H, L, P, Dffn)

    fwd = jax.jit(lambda q, qp, rp: relation_transformer_encoder(
        layer_params, fusion_params, q,
        spatial_shapes_list, level_start_list, rp,
        query_pos=qp, query_key_padding_mask=None, H=H, L=L, P=P))

    out = fwd(query, query_pos, reference_points)
    out = jax.block_until_ready(out)
    assert out.shape == (B, S, D) and out.dtype == jnp.float32
    assert bool(jnp.all(jnp.isfinite(out)))
    print("KERNEL_OK")
</pallas_src>

<mosaic_0001>
module attributes {stable_mosaic.version = 11 : i64} {
  func.func @_proj_softmax_kernel(%arg0: i32, %arg1: memref<80x128xf32, #tpu.memory_space<vmem>>, %arg2: memref<80x128xf32, #tpu.memory_space<vmem>>, %arg3: memref<128x128xbf16, #tpu.memory_space<vmem>>, %arg4: memref<1x128xf32, #tpu.memory_space<vmem>>, %arg5: memref<128x128xbf16, #tpu.memory_space<vmem>>, %arg6: memref<1x128xf32, #tpu.memory_space<vmem>>, %arg7: memref<80x256xf32, #tpu.memory_space<vmem>>) attributes {dimension_semantics = [#tpu.dimension_semantics<parallel>], iteration_bounds = array<i64: 2>, scalar_prefetch = 0 : i64, scratch_operands = 0 : i64, tpu.core_type = #tpu.core_type<tc>, window_params = [{transform_indices = @transform_0, window_bounds = array<i64: 80, 128>}, {transform_indices = @transform_1, window_bounds = array<i64: 80, 128>}, {pipeline_mode = #tpu.pipeline_mode<synchronous>, transform_indices = @transform_2, window_bounds = array<i64: 128, 128>}, {pipeline_mode = #tpu.pipeline_mode<synchronous>, transform_indices = @transform_3, window_bounds = array<i64: 1, 128>}, {pipeline_mode = #tpu.pipeline_mode<synchronous>, transform_indices = @transform_4, window_bounds = array<i64: 128, 128>}, {pipeline_mode = #tpu.pipeline_mode<synchronous>, transform_indices = @transform_5, window_bounds = array<i64: 1, 128>}, {transform_indices = @transform_6, window_bounds = array<i64: 80, 256>}]} {
    %c0 = arith.constant 0 : index
    %c0_0 = arith.constant 0 : index
    %0 = vector.load %arg2[%c0, %c0_0] : memref<80x128xf32, #tpu.memory_space<vmem>>, vector<80x128xf32>
    %1 = arith.truncf %0 : vector<80x128xf32> to vector<80x128xbf16>
    %c0_1 = arith.constant 0 : index
    %c0_2 = arith.constant 0 : index
    %2 = vector.load %arg3[%c0_1, %c0_2] : memref<128x128xbf16, #tpu.memory_space<vmem>>, vector<128x128xbf16>
    %cst = arith.constant dense<0.000000e+00> : vector<80x128xf32>
    %3 = tpu.matmul %1, %2, %cst {dimension_numbers = #tpu.dot_dimension_numbers<[1], [0], [0], [1], [0, 0, 1, 1], [], []>} : vector<80x128xbf16>, vector<128x128xbf16>, vector<80x128xf32> -> vector<80x128xf32>
    %c0_3 = arith.constant 0 : index
    %c0_4 = arith.constant 0 : index
    %4 = vector.load %arg4[%c0_3, %c0_4] : memref<1x128xf32, #tpu.memory_space<vmem>>, vector<1x128xf32>
    %5 = vector.broadcast %4 : vector<1x128xf32> to vector<80x128xf32>
    %6 = arith.addf %3, %5 : vector<80x128xf32>
    %c0_5 = arith.constant 0 : index
    %c0_6 = arith.constant 0 : index
    %7 = vector.load %arg1[%c0_5, %c0_6] : memref<80x128xf32, #tpu.memory_space<vmem>>, vector<80x128xf32>
    %8 = arith.truncf %7 : vector<80x128xf32> to vector<80x128xbf16>
    %c0_7 = arith.constant 0 : index
    %c0_8 = arith.constant 0 : index
    %9 = vector.load %arg5[%c0_7, %c0_8] : memref<128x128xbf16, #tpu.memory_space<vmem>>, vector<128x128xbf16>
    %cst_9 = arith.constant dense<0.000000e+00> : vector<80x128xf32>
    %10 = tpu.matmul %8, %9, %cst_9 {dimension_numbers = #tpu.dot_dimension_numbers<[1], [0], [0], [1], [0, 0, 1, 1], [], []>} : vector<80x128xbf16>, vector<128x128xbf16>, vector<80x128xf32> -> vector<80x128xf32>
    %c0_10 = arith.constant 0 : index
    %c0_11 = arith.constant 0 : index
    %11 = vector.load %arg6[%c0_10, %c0_11] : memref<1x128xf32, #tpu.memory_space<vmem>>, vector<1x128xf32>
    %12 = vector.broadcast %11 : vector<1x128xf32> to vector<80x128xf32>
    %13 = arith.addf %10, %12 : vector<80x128xf32>
    %c0_12 = arith.constant 0 : index
    %c0_13 = arith.constant 0 : index
    %14 = vector.load %arg7[%c0_12, %c0_13] : memref<80x256xf32, #tpu.memory_space<vmem>>, vector<80x128xf32>
    tpu.vector_store %arg7[%c0_12, %c0_13], %6 {strides = array<i32>} : memref<80x256xf32, #tpu.memory_space<vmem>>, vector<80x128xf32>,
    %c0_14 = arith.constant 0 : index
    %c128 = arith.constant 128 : index
    %15 = vector.load %arg7[%c0_14, %c128] : memref<80x256xf32, #tpu.memory_space<vmem>>, vector<80x128xf32>
    tpu.vector_store %arg7[%c0_14, %c128], %13 {strides = array<i32>} : memref<80x256xf32, #tpu.memory_space<vmem>>, vector<80x128xf32>,
    %16 = vector.extract_strided_slice %13 {offsets = [0, 32], sizes = [80, 4], strides = [1, 1]} : vector<80x128xf32> to vector<80x4xf32>
    %cst_15 = arith.constant dense<0xFF800000> : vector<80xf32>
    %17 = vector.multi_reduction <maximumf>, %16, %cst_15 [1] : vector<80x4xf32> to vector<80xf32>
    %18 = vector.shape_cast %17 : vector<80xf32> to vector<80x1xf32>
    %19 = vector.broadcast %18 : vector<80x1xf32> to vector<80x4xf32>
    %20 = arith.subf %16, %19 : vector<80x4xf32>
    %21 = math.exp %20 : vector<80x4xf32>
    %cst_16 = arith.constant dense<0.000000e+00> : vector<80xf32>
    %22 = vector.multi_reduction <add>, %21, %cst_16 [1] : vector<80x4xf32> to vector<80xf32>
    %23 = vector.shape_cast %22 : vector<80xf32> to vector<80x1xf32>
    %24 = vector.broadcast %23 : vector<80x1xf32> to vector<80x4xf32>
    %25 = arith.divf %21, %24 : vector<80x4xf32>
    %c0_17 = arith.constant 0 : index
    %c160 = arith.constant 160 : index
    %26 = vector.load %arg7[%c0_17, %c160] : memref<80x256xf32, #tpu.memory_space<vmem>>, vector<80x4xf32>
    tpu.vector_store %arg7[%c0_17, %c160], %25 {strides = array<i32>} : memref<80x256xf32, #tpu.memory_space<vmem>>, vector<80x4xf32>,
    %27 = vector.extract_strided_slice %13 {offsets = [0, 36], sizes = [80, 4], strides = [1, 1]} : vector<80x128xf32> to vector<80x4xf32>
    %cst_18 = arith.constant dense<0xFF800000> : vector<80xf32>
    %28 = vector.multi_reduction <maximumf>, %27, %cst_18 [1] : vector<80x4xf32> to vector<80xf32>
    %29 = vector.shape_cast %28 : vector<80xf32> to vector<80x1xf32>
    %30 = vector.broadcast %29 : vector<80x1xf32> to vector<80x4xf32>
    %31 = arith.subf %27, %30 : vector<80x4xf32>
    %32 = math.exp %31 : vector<80x4xf32>
    %cst_19 = arith.constant dense<0.000000e+00> : vector<80xf32>
    %33 = vector.multi_reduction <add>, %32, %cst_19 [1] : vector<80x4xf32> to vector<80xf32>
    %34 = vector.shape_cast %33 : vector<80xf32> to vector<80x1xf32>
    %35 = vector.broadcast %34 : vector<80x1xf32> to vector<80x4xf32>
    %36 = arith.divf %32, %35 : vector<80x4xf32>
    %c0_20 = arith.constant 0 : index
    %c164 = arith.constant 164 : index
    %37 = vector.load %arg7[%c0_20, %c164] : memref<80x256xf32, #tpu.memory_space<vmem>>, vector<80x4xf32>
    tpu.vector_store %arg7[%c0_20, %c164], %36 {strides = array<i32>} : memref<80x256xf32, #tpu.memory_space<vmem>>, vector<80x4xf32>,
    %38 = vector.extract_strided_slice %13 {offsets = [0, 40], sizes = [80, 4], strides = [1, 1]} : vector<80x128xf32> to vector<80x4xf32>
    %cst_21 = arith.constant dense<0xFF800000> : vector<80xf32>
    %39 = vector.multi_reduction <maximumf>, %38, %cst_21 [1] : vector<80x4xf32> to vector<80xf32>
    %40 = vector.shape_cast %39 : vector<80xf32> to vector<80x1xf32>
    %41 = vector.broadcast %40 : vector<80x1xf32> to vector<80x4xf32>
    %42 = arith.subf %38, %41 : vector<80x4xf32>
    %43 = math.exp %42 : vector<80x4xf32>
    %cst_22 = arith.constant dense<0.000000e+00> : vector<80xf32>
    %44 = vector.multi_reduction <add>, %43, %cst_22 [1] : vector<80x4xf32> to vector<80xf32>
    %45 = vector.shape_cast %44 : vector<80xf32> to vector<80x1xf32>
    %46 = vector.broadcast %45 : vector<80x1xf32> to vector<80x4xf32>
    %47 = arith.divf %43, %46 : vector<80x4xf32>
    %c0_23 = arith.constant 0 : index
    %c168 = arith.constant 168 : index
    %48 = vector.load %arg7[%c0_23, %c168] : memref<80x256xf32, #tpu.memory_space<vmem>>, vector<80x4xf32>
    tpu.vector_store %arg7[%c0_23, %c168], %47 {strides = array<i32>} : memref<80x256xf32, #tpu.memory_space<vmem>>, vector<80x4xf32>,
    %49 = vector.extract_strided_slice %13 {offsets = [0, 44], sizes = [80, 4], strides = [1, 1]} : vector<80x128xf32> to vector<80x4xf32>
    %cst_24 = arith.constant dense<0xFF800000> : vector<80xf32>
    %50 = vector.multi_reduction <maximumf>, %49, %cst_24 [1] : vector<80x4xf32> to vector<80xf32>
    %51 = vector.shape_cast %50 : vector<80xf32> to vector<80x1xf32>
    %52 = vector.broadcast %51 : vector<80x1xf32> to vector<80x4xf32>
    %53 = arith.subf %49, %52 : vector<80x4xf32>
    %54 = math.exp %53 : vector<80x4xf32>
    %cst_25 = arith.constant dense<0.000000e+00> : vector<80xf32>
    %55 = vector.multi_reduction <add>, %54, %cst_25 [1] : vector<80x4xf32> to vector<80xf32>
    %56 = vector.shape_cast %55 : vector<80xf32> to vector<80x1xf32>
    %57 = vector.broadcast %56 : vector<80x1xf32> to vector<80x4xf32>
    %58 = arith.divf %54, %57 : vector<80x4xf32>
    %c0_26 = arith.constant 0 : index
    %c172 = arith.constant 172 : index
    %59 = vector.load %arg7[%c0_26, %c172] : memref<80x256xf32, #tpu.memory_space<vmem>>, vector<80x4xf32>
    tpu.vector_store %arg7[%c0_26, %c172], %58 {strides = array<i32>} : memref<80x256xf32, #tpu.memory_space<vmem>>, vector<80x4xf32>,
    return
  }
  func.func @transform_0(%arg0: i32) -> (i32, i32) {
    %c0_i32 = arith.constant 0 : i32
    %c0_i32_0 = arith.constant 0 : i32
    return %arg0, %c0_i32 : i32, i32
  }
  func.func @transform_1(%arg0: i32) -> (i32, i32) {
    %c0_i32 = arith.constant 0 : i32
    %c0_i32_0 = arith.constant 0 : i32
    return %arg0, %c0_i32 : i32, i32
  }
  func.func @transform_2(%arg0: i32) -> (i32, i32) {
    %c0_i32 = arith.constant 0 : i32
    %c0_i32_0 = arith.constant 0 : i32
    %c0_i32_1 = arith.constant 0 : i32
    return %c0_i32, %c0_i32_0 : i32, i32
  }
  func.func @transform_3(%arg0: i32) -> (i32, i32) {
    %c0_i32 = arith.constant 0 : i32
    %c0_i32_0 = arith.constant 0 : i32
    %c0_i32_1 = arith.constant 0 : i32
    return %c0_i32, %c0_i32_0 : i32, i32
  }
  func.func @transform_4(%arg0: i32) -> (i32, i32) {
    %c0_i32 = arith.constant 0 : i32
    %c0_i32_0 = arith.constant 0 : i32
    %c0_i32_1 = arith.constant 0 : i32
    return %c0_i32, %c0_i32_0 : i32, i32
  }
  func.func @transform_5(%arg0: i32) -> (i32, i32) {
    %c0_i32 = arith.constant 0 : i32
    %c0_i32_0 = arith.constant 0 : i32
    %c0_i32_1 = arith.constant 0 : i32
    return %c0_i32, %c0_i32_0 : i32, i32
  }
  func.func @transform_6(%arg0: i32) -> (i32, i32) {
    %c0_i32 = arith.constant 0 : i32
    %c0_i32_0 = arith.constant 0 : i32
    return %arg0, %c0_i32 : i32, i32
  }
}

module attributes {stable_mosaic.version = 11 : i64} {
  func.func @_ffn_ln_kernel(%arg0: i32, %arg1: memref<80x128xf32, #tpu.memory_space<vmem>>, %arg2: memref<128x256xbf16, #tpu.memory_space<vmem>>, %arg3: memref<1x256xf32, #tpu.memory_space<vmem>>, %arg4: memref<256x128xbf16, #tpu.memory_space<vmem>>, %arg5: memref<1x128xf32, #tpu.memory_space<vmem>>, %arg6: memref<1x128xf32, #tpu.memory_space<vmem>>, %arg7: memref<1x128xf32, #tpu.memory_space<vmem>>, %arg8: memref<80x128xf32, #tpu.memory_space<vmem>>) attributes {dimension_semantics = [#tpu.dimension_semantics<parallel>], iteration_bounds = array<i64: 2>, scalar_prefetch = 0 : i64, scratch_operands = 0 : i64, tpu.core_type = #tpu.core_type<tc>, window_params = [{transform_indices = @transform_0, window_bounds = array<i64: 80, 128>}, {pipeline_mode = #tpu.pipeline_mode<synchronous>, transform_indices = @transform_1, window_bounds = array<i64: 128, 256>}, {pipeline_mode = #tpu.pipeline_mode<synchronous>, transform_indices = @transform_2, window_bounds = array<i64: 1, 256>}, {pipeline_mode = #tpu.pipeline_mode<synchronous>, transform_indices = @transform_3, window_bounds = array<i64: 256, 128>}, {pipeline_mode = #tpu.pipeline_mode<synchronous>, transform_indices = @transform_4, window_bounds = array<i64: 1, 128>}, {pipeline_mode = #tpu.pipeline_mode<synchronous>, transform_indices = @transform_5, window_bounds = array<i64: 1, 128>}, {pipeline_mode = #tpu.pipeline_mode<synchronous>, transform_indices = @transform_6, window_bounds = array<i64: 1, 128>}, {transform_indices = @transform_7, window_bounds = array<i64: 80, 128>}]} {
    %c0 = arith.constant 0 : index
    %c0_0 = arith.constant 0 : index
    %0 = vector.load %arg1[%c0, %c0_0] : memref<80x128xf32, #tpu.memory_space<vmem>>, vector<80x128xf32>
    %1 = arith.truncf %0 : vector<80x128xf32> to vector<80x128xbf16>
    %c0_1 = arith.constant 0 : index
    %c0_2 = arith.constant 0 : index
    %2 = vector.load %arg2[%c0_1, %c0_2] : memref<128x256xbf16, #tpu.memory_space<vmem>>, vector<128x256xbf16>
    %cst = arith.constant dense<0.000000e+00> : vector<80x256xf32>
    %3 = tpu.matmul %1, %2, %cst {dimension_numbers = #tpu.dot_dimension_numbers<[1], [0], [0], [1], [0, 0, 1, 1], [], []>} : vector<80x128xbf16>, vector<128x256xbf16>, vector<80x256xf32> -> vector<80x256xf32>
    %c0_3 = arith.constant 0 : index
    %c0_4 = arith.constant 0 : index
    %4 = vector.load %arg3[%c0_3, %c0_4] : memref<1x256xf32, #tpu.memory_space<vmem>>, vector<1x256xf32>
    %5 = vector.broadcast %4 : vector<1x256xf32> to vector<80x256xf32>
    %6 = arith.addf %3, %5 : vector<80x256xf32>
    %cst_5 = arith.constant 0.000000e+00 : f32
    %7 = vector.broadcast %cst_5 : f32 to vector<80x256xf32>
    %8 = arith.maximumf %6, %7 : vector<80x256xf32>
    %9 = arith.truncf %8 : vector<80x256xf32> to vector<80x256xbf16>
    %c0_6 = arith.constant 0 : index
    %c0_7 = arith.constant 0 : index
    %10 = vector.load %arg4[%c0_6, %c0_7] : memref<256x128xbf16, #tpu.memory_space<vmem>>, vector<256x128xbf16>
    %cst_8 = arith.constant dense<0.000000e+00> : vector<80x128xf32>
    %11 = tpu.matmul %9, %10, %cst_8 {dimension_numbers = #tpu.dot_dimension_numbers<[1], [0], [0], [1], [0, 0, 1, 1], [], []>} : vector<80x256xbf16>, vector<256x128xbf16>, vector<80x128xf32> -> vector<80x128xf32>
    %12 = arith.addf %0, %11 : vector<80x128xf32>
    %c0_9 = arith.constant 0 : index
    %c0_10 = arith.constant 0 : index
    %13 = vector.load %arg5[%c0_9, %c0_10] : memref<1x128xf32, #tpu.memory_space<vmem>>, vector<1x128xf32>
    %14 = vector.broadcast %13 : vector<1x128xf32> to vector<80x128xf32>
    %15 = arith.addf %12, %14 : vector<80x128xf32>
    %c0_11 = arith.constant 0 : index
    %c0_12 = arith.constant 0 : index
    %16 = vector.load %arg6[%c0_11, %c0_12] : memref<1x128xf32, #tpu.memory_space<vmem>>, vector<1x128xf32>
    %c0_13 = arith.constant 0 : index
    %c0_14 = arith.constant 0 : index
    %17 = vector.load %arg7[%c0_13, %c0_14] : memref<1x128xf32, #tpu.memory_space<vmem>>, vector<1x128xf32>
    %cst_15 = arith.constant dense<0.000000e+00> : vector<80xf32>
    %18 = vector.multi_reduction <add>, %15, %cst_15 [1] : vector<80x128xf32> to vector<80xf32>
    %19 = vector.shape_cast %18 : vector<80xf32> to vector<80x1xf32>
    %20 = arith.mulf %15, %15 : vector<80x128xf32>
    %cst_16 = arith.constant dense<0.000000e+00> : vector<80xf32>
    %21 = vector.multi_reduction <add>, %20, %cst_16 [1] : vector<80x128xf32> to vector<80xf32>
    %22 = vector.shape_cast %21 : vector<80xf32> to vector<80x1xf32>
    %cst_17 = arith.constant 7.812500e-03 : f32
    %23 = vector.broadcast %cst_17 : f32 to vector<80x1xf32>
    %24 = arith.mulf %19, %23 : vector<80x1xf32>
    %cst_18 = arith.constant 7.812500e-03 : f32
    %25 = vector.broadcast %cst_18 : f32 to vector<80x1xf32>
    %26 = arith.mulf %22, %25 : vector<80x1xf32>
    %27 = arith.mulf %24, %24 : vector<80x1xf32>
    %28 = arith.subf %26, %27 : vector<80x1xf32>
    %29 = vector.broadcast %24 : vector<80x1xf32> to vector<80x128xf32>
    %30 = arith.subf %15, %29 : vector<80x128xf32>
    %cst_19 = arith.constant 9.99999974E-6 : f32
    %31 = vector.broadcast %cst_19 : f32 to vector<80x1xf32>
    %32 = arith.addf %28, %31 : vector<80x1xf32>
    %33 = math.rsqrt %32 : vector<80x1xf32>
    %34 = vector.broadcast %33 : vector<80x1xf32> to vector<80x128xf32>
    %35 = arith.mulf %30, %34 : vector<80x128xf32>
    %36 = vector.broadcast %16 : vector<1x128xf32> to vector<80x128xf32>
    %37 = arith.mulf %35, %36 : vector<80x128xf32>
    %38 = vector.broadcast %17 : vector<1x128xf32> to vector<80x128xf32>
    %39 = arith.addf %37, %38 : vector<80x128xf32>
    %c0_20 = arith.constant 0 : index
    %c0_21 = arith.constant 0 : index
    %40 = vector.load %arg8[%c0_20, %c0_21] : memref<80x128xf32, #tpu.memory_space<vmem>>, vector<80x128xf32>
    tpu.vector_store %arg8[%c0_20, %c0_21], %39 {strides = array<i32>} : memref<80x128xf32, #tpu.memory_space<vmem>>, vector<80x128xf32>,
    return
  }
  func.func @transform_0(%arg0: i32) -> (i32, i32) {
    %c0_i32 = arith.constant 0 : i32
    %c0_i32_0 = arith.constant 0 : i32
    return %arg0, %c0_i32 : i32, i32
  }
  func.func @transform_1(%arg0: i32) -> (i32, i32) {
    %c0_i32 = arith.constant 0 : i32
    %c0_i32_0 = arith.constant 0 : i32
    %c0_i32_1 = arith.constant 0 : i32
    return %c0_i32, %c0_i32_0 : i32, i32
  }
  func.func @transform_2(%arg0: i32) -> (i32, i32) {
    %c0_i32 = arith.constant 0 : i32
    %c0_i32_0 = arith.constant 0 : i32
    %c0_i32_1 = arith.constant 0 : i32
    return %c0_i32, %c0_i32_0 : i32, i32
  }
  func.func @transform_3(%arg0: i32) -> (i32, i32) {
    %c0_i32 = arith.constant 0 : i32
    %c0_i32_0 = arith.constant 0 : i32
    %c0_i32_1 = arith.constant 0 : i32
    return %c0_i32, %c0_i32_0 : i32, i32
  }
  func.func @transform_4(%arg0: i32) -> (i32, i32) {
    %c0_i32 = arith.constant 0 : i32
    %c0_i32_0 = arith.constant 0 : i32
    %c0_i32_1 = arith.constant 0 : i32
    return %c0_i32, %c0_i32_0 : i32, i32
  }
  func.func @transform_5(%arg0: i32) -> (i32, i32) {
    %c0_i32 = arith.constant 0 : i32
    %c0_i32_0 = arith.constant 0 : i32
    %c0_i32_1 = arith.constant 0 : i32
    return %c0_i32, %c0_i32_0 : i32, i32
  }
  func.func @transform_6(%arg0: i32) -> (i32, i32) {
    %c0_i32 = arith.constant 0 : i32
    %c0_i32_0 = arith.constant 0 : i32
    %c0_i32_1 = arith.constant 0 : i32
    return %c0_i32, %c0_i32_0 : i32, i32
  }
  func.func @transform_7(%arg0: i32) -> (i32, i32) {
    %c0_i32 = arith.constant 0 : i32
    %c0_i32_0 = arith.constant 0 : i32
    return %arg0, %c0_i32 : i32, i32
  }
}

module attributes {stable_mosaic.version = 11 : i64} {
  func.func @_outproj_res_ln_kernel(%arg0: i32, %arg1: memref<80x128xf32, #tpu.memory_space<vmem>>, %arg2: memref<80x128xf32, #tpu.memory_space<vmem>>, %arg3: memref<128x128xbf16, #tpu.memory_space<vmem>>, %arg4: memref<1x128xf32, #tpu.memory_space<vmem>>, %arg5: memref<1x128xf32, #tpu.memory_space<vmem>>, %arg6: memref<1x128xf32, #tpu.memory_space<vmem>>, %arg7: memref<80x128xf32, #tpu.memory_space<vmem>>) attributes {dimension_semantics = [#tpu.dimension_semantics<parallel>], iteration_bounds = array<i64: 2>, scalar_prefetch = 0 : i64, scratch_operands = 0 : i64, tpu.core_type = #tpu.core_type<tc>, window_params = [{transform_indices = @transform_0, window_bounds = array<i64: 80, 128>}, {transform_indices = @transform_1, window_bounds = array<i64: 80, 128>}, {pipeline_mode = #tpu.pipeline_mode<synchronous>, transform_indices = @transform_2, window_bounds = array<i64: 128, 128>}, {pipeline_mode = #tpu.pipeline_mode<synchronous>, transform_indices = @transform_3, window_bounds = array<i64: 1, 128>}, {pipeline_mode = #tpu.pipeline_mode<synchronous>, transform_indices = @transform_4, window_bounds = array<i64: 1, 128>}, {pipeline_mode = #tpu.pipeline_mode<synchronous>, transform_indices = @transform_5, window_bounds = array<i64: 1, 128>}, {transform_indices = @transform_6, window_bounds = array<i64: 80, 128>}]} {
    %c0 = arith.constant 0 : index
    %c0_0 = arith.constant 0 : index
    %0 = vector.load %arg2[%c0, %c0_0] : memref<80x128xf32, #tpu.memory_space<vmem>>, vector<80x128xf32>
    %c0_1 = arith.constant 0 : index
    %c0_2 = arith.constant 0 : index
    %1 = vector.load %arg1[%c0_1, %c0_2] : memref<80x128xf32, #tpu.memory_space<vmem>>, vector<80x128xf32>
    %2 = arith.truncf %1 : vector<80x128xf32> to vector<80x128xbf16>
    %c0_3 = arith.constant 0 : index
    %c0_4 = arith.constant 0 : index
    %3 = vector.load %arg3[%c0_3, %c0_4] : memref<128x128xbf16, #tpu.memory_space<vmem>>, vector<128x128xbf16>
    %cst = arith.constant dense<0.000000e+00> : vector<80x128xf32>
    %4 = tpu.matmul %2, %3, %cst {dimension_numbers = #tpu.dot_dimension_numbers<[1], [0], [0], [1], [0, 0, 1, 1], [], []>} : vector<80x128xbf16>, vector<128x128xbf16>, vector<80x128xf32> -> vector<80x128xf32>
    %5 = arith.addf %0, %4 : vector<80x128xf32>
    %c0_5 = arith.constant 0 : index
    %c0_6 = arith.constant 0 : index
    %6 = vector.load %arg4[%c0_5, %c0_6] : memref<1x128xf32, #tpu.memory_space<vmem>>, vector<1x128xf32>
    %7 = vector.broadcast %6 : vector<1x128xf32> to vector<80x128xf32>
    %8 = arith.addf %5, %7 : vector<80x128xf32>
    %c0_7 = arith.constant 0 : index
    %c0_8 = arith.constant 0 : index
    %9 = vector.load %arg5[%c0_7, %c0_8] : memref<1x128xf32, #tpu.memory_space<vmem>>, vector<1x128xf32>
    %c0_9 = arith.constant 0 : index
    %c0_10 = arith.constant 0 : index
    %10 = vector.load %arg6[%c0_9, %c0_10] : memref<1x128xf32, #tpu.memory_space<vmem>>, vector<1x128xf32>
    %cst_11 = arith.constant dense<0.000000e+00> : vector<80xf32>
    %11 = vector.multi_reduction <add>, %8, %cst_11 [1] : vector<80x128xf32> to vector<80xf32>
    %12 = vector.shape_cast %11 : vector<80xf32> to vector<80x1xf32>
    %13 = arith.mulf %8, %8 : vector<80x128xf32>
    %cst_12 = arith.constant dense<0.000000e+00> : vector<80xf32>
    %14 = vector.multi_reduction <add>, %13, %cst_12 [1] : vector<80x128xf32> to vector<80xf32>
    %15 = vector.shape_cast %14 : vector<80xf32> to vector<80x1xf32>
    %cst_13 = arith.constant 7.812500e-03 : f32
    %16 = vector.broadcast %cst_13 : f32 to vector<80x1xf32>
    %17 = arith.mulf %12, %16 : vector<80x1xf32>
    %cst_14 = arith.constant 7.812500e-03 : f32
    %18 = vector.broadcast %cst_14 : f32 to vector<80x1xf32>
    %19 = arith.mulf %15, %18 : vector<80x1xf32>
    %20 = arith.mulf %17, %17 : vector<80x1xf32>
    %21 = arith.subf %19, %20 : vector<80x1xf32>
    %22 = vector.broadcast %17 : vector<80x1xf32> to vector<80x128xf32>
    %23 = arith.subf %8, %22 : vector<80x128xf32>
    %cst_15 = arith.constant 9.99999974E-6 : f32
    %24 = vector.broadcast %cst_15 : f32 to vector<80x1xf32>
    %25 = arith.addf %21, %24 : vector<80x1xf32>
    %26 = math.rsqrt %25 : vector<80x1xf32>
    %27 = vector.broadcast %26 : vector<80x1xf32> to vector<80x128xf32>
    %28 = arith.mulf %23, %27 : vector<80x128xf32>
    %29 = vector.broadcast %9 : vector<1x128xf32> to vector<80x128xf32>
    %30 = arith.mulf %28, %29 : vector<80x128xf32>
    %31 = vector.broadcast %10 : vector<1x128xf32> to vector<80x128xf32>
    %32 = arith.addf %30, %31 : vector<80x128xf32>
    %c0_16 = arith.constant 0 : index
    %c0_17 = arith.constant 0 : index
    %33 = vector.load %arg7[%c0_16, %c0_17] : memref<80x128xf32, #tpu.memory_space<vmem>>, vector<80x128xf32>
    tpu.vector_store %arg7[%c0_16, %c0_17], %32 {strides = array<i32>} : memref<80x128xf32, #tpu.memory_space<vmem>>, vector<80x128xf32>,
    return
  }
  func.func @transform_0(%arg0: i32) -> (i32, i32) {
    %c0_i32 = arith.constant 0 : i32
    %c0_i32_0 = arith.constant 0 : i32
    return %arg0, %c0_i32 : i32, i32
  }
  func.func @transform_1(%arg0: i32) -> (i32, i32) {
    %c0_i32 = arith.constant 0 : i32
    %c0_i32_0 = arith.constant 0 : i32
    return %arg0, %c0_i32 : i32, i32
  }
  func.func @transform_2(%arg0: i32) -> (i32, i32) {
    %c0_i32 = arith.constant 0 : i32
    %c0_i32_0 = arith.constant 0 : i32
    %c0_i32_1 = arith.constant 0 : i32
    return %c0_i32, %c0_i32_0 : i32, i32
  }
  func.func @transform_3(%arg0: i32) -> (i32, i32) {
    %c0_i32 = arith.constant 0 : i32
    %c0_i32_0 = arith.constant 0 : i32
    %c0_i32_1 = arith.constant 0 : i32
    return %c0_i32, %c0_i32_0 : i32, i32
  }
  func.func @transform_4(%arg0: i32) -> (i32, i32) {
    %c0_i32 = arith.constant 0 : i32
    %c0_i32_0 = arith.constant 0 : i32
    %c0_i32_1 = arith.constant 0 : i32
    return %c0_i32, %c0_i32_0 : i32, i32
  }
  func.func @transform_5(%arg0: i32) -> (i32, i32) {
    %c0_i32 = arith.constant 0 : i32
    %c0_i32_0 = arith.constant 0 : i32
    %c0_i32_1 = arith.constant 0 : i32
    return %c0_i32, %c0_i32_0 : i32, i32
  }
  func.func @transform_6(%arg0: i32) -> (i32, i32) {
    %c0_i32 = arith.constant 0 : i32
    %c0_i32_0 = arith.constant 0 : i32
    return %arg0, %c0_i32 : i32, i32
  }
}

module attributes {stable_mosaic.version = 11 : i64} {
  func.func @_fusion_kernel(%arg0: i32, %arg1: memref<80x128xf32, #tpu.memory_space<vmem>>, %arg2: memref<80x128xf32, #tpu.memory_space<vmem>>, %arg3: memref<80x128xf32, #tpu.memory_space<vmem>>, %arg4: memref<128x128xbf16, #tpu.memory_space<vmem>>, %arg5: memref<128x128xbf16, #tpu.memory_space<vmem>>, %arg6: memref<128x128xbf16, #tpu.memory_space<vmem>>, %arg7: memref<1x128xf32, #tpu.memory_space<vmem>>, %arg8: memref<128x128xbf16, #tpu.memory_space<vmem>>, %arg9: memref<1x128xf32, #tpu.memory_space<vmem>>, %arg10: memref<1x128xf32, #tpu.memory_space<vmem>>, %arg11: memref<1x128xf32, #tpu.memory_space<vmem>>, %arg12: memref<80x128xf32, #tpu.memory_space<vmem>>) attributes {dimension_semantics = [#tpu.dimension_semantics<parallel>], iteration_bounds = array<i64: 2>, scalar_prefetch = 0 : i64, scratch_operands = 0 : i64, tpu.core_type = #tpu.core_type<tc>, window_params = [{transform_indices = @transform_0, window_bounds = array<i64: 80, 128>}, {transform_indices = @transform_1, window_bounds = array<i64: 80, 128>}, {transform_indices = @transform_2, window_bounds = array<i64: 80, 128>}, {pipeline_mode = #tpu.pipeline_mode<synchronous>, transform_indices = @transform_3, window_bounds = array<i64: 128, 128>}, {pipeline_mode = #tpu.pipeline_mode<synchronous>, transform_indices = @transform_4, window_bounds = array<i64: 128, 128>}, {pipeline_mode = #tpu.pipeline_mode<synchronous>, transform_indices = @transform_5, window_bounds = array<i64: 128, 128>}, {pipeline_mode = #tpu.pipeline_mode<synchronous>, transform_indices = @transform_6, window_bounds = array<i64: 1, 128>}, {pipeline_mode = #tpu.pipeline_mode<synchronous>, transform_indices = @transform_7, window_bounds = array<i64: 128, 128>}, {pipeline_mode = #tpu.pipeline_mode<synchronous>, transform_indices = @transform_8, window_bounds = array<i64: 1, 128>}, {pipeline_mode = #tpu.pipeline_mode<synchronous>, transform_indices = @transform_9, window_bounds = array<i64: 1, 128>}, {pipeline_mode = #tpu.pipeline_mode<synchronous>, transform_indices = @transform_10, window_bounds = array<i64: 1, 128>}, {transform_indices = @transform_11, window_bounds = array<i64: 80, 128>}]} {
    %c0 = arith.constant 0 : index
    %c0_0 = arith.constant 0 : index
    %0 = vector.load %arg1[%c0, %c0_0] : memref<80x128xf32, #tpu.memory_space<vmem>>, vector<80x128xf32>
    %1 = arith.truncf %0 : vector<80x128xf32> to vector<80x128xbf16>
    %c0_1 = arith.constant 0 : index
    %c0_2 = arith.constant 0 : index
    %2 = vector.load %arg4[%c0_1, %c0_2] : memref<128x128xbf16, #tpu.memory_space<vmem>>, vector<128x128xbf16>
    %cst = arith.constant dense<0.000000e+00> : vector<80x128xf32>
    %3 = tpu.matmul %1, %2, %cst {dimension_numbers = #tpu.dot_dimension_numbers<[1], [0], [0], [1], [0, 0, 1, 1], [], []>} : vector<80x128xbf16>, vector<128x128xbf16>, vector<80x128xf32> -> vector<80x128xf32>
    %c0_3 = arith.constant 0 : index
    %c0_4 = arith.constant 0 : index
    %4 = vector.load %arg2[%c0_3, %c0_4] : memref<80x128xf32, #tpu.memory_space<vmem>>, vector<80x128xf32>
    %5 = arith.truncf %4 : vector<80x128xf32> to vector<80x128xbf16>
    %c0_5 = arith.constant 0 : index
    %c0_6 = arith.constant 0 : index
    %6 = vector.load %arg5[%c0_5, %c0_6] : memref<128x128xbf16, #tpu.memory_space<vmem>>, vector<128x128xbf16>
    %cst_7 = arith.constant dense<0.000000e+00> : vector<80x128xf32>
    %7 = tpu.matmul %5, %6, %cst_7 {dimension_numbers = #tpu.dot_dimension_numbers<[1], [0], [0], [1], [0, 0, 1, 1], [], []>} : vector<80x128xbf16>, vector<128x128xbf16>, vector<80x128xf32> -> vector<80x128xf32>
    %8 = arith.addf %3, %7 : vector<80x128xf32>
    %c0_8 = arith.constant 0 : index
    %c0_9 = arith.constant 0 : index
    %9 = vector.load %arg3[%c0_8, %c0_9] : memref<80x128xf32, #tpu.memory_space<vmem>>, vector<80x128xf32>
    %10 = arith.truncf %9 : vector<80x128xf32> to vector<80x128xbf16>
    %c0_10 = arith.constant 0 : index
    %c0_11 = arith.constant 0 : index
    %11 = vector.load %arg6[%c0_10, %c0_11] : memref<128x128xbf16, #tpu.memory_space<vmem>>, vector<128x128xbf16>
    %cst_12 = arith.constant dense<0.000000e+00> : vector<80x128xf32>
    %12 = tpu.matmul %10, %11, %cst_12 {dimension_numbers = #tpu.dot_dimension_numbers<[1], [0], [0], [1], [0, 0, 1, 1], [], []>} : vector<80x128xbf16>, vector<128x128xbf16>, vector<80x128xf32> -> vector<80x128xf32>
    %13 = arith.addf %8, %12 : vector<80x128xf32>
    %c0_13 = arith.constant 0 : index
    %c0_14 = arith.constant 0 : index
    %14 = vector.load %arg7[%c0_13, %c0_14] : memref<1x128xf32, #tpu.memory_space<vmem>>, vector<1x128xf32>
    %15 = vector.broadcast %14 : vector<1x128xf32> to vector<80x128xf32>
    %16 = arith.addf %13, %15 : vector<80x128xf32>
    %cst_15 = arith.constant 0.000000e+00 : f32
    %17 = vector.broadcast %cst_15 : f32 to vector<80x128xf32>
    %18 = arith.maximumf %16, %17 : vector<80x128xf32>
    %19 = arith.truncf %18 : vector<80x128xf32> to vector<80x128xbf16>
    %c0_16 = arith.constant 0 : index
    %c0_17 = arith.constant 0 : index
    %20 = vector.load %arg8[%c0_16, %c0_17] : memref<128x128xbf16, #tpu.memory_space<vmem>>, vector<128x128xbf16>
    %cst_18 = arith.constant dense<0.000000e+00> : vector<80x128xf32>
    %21 = tpu.matmul %19, %20, %cst_18 {dimension_numbers = #tpu.dot_dimension_numbers<[1], [0], [0], [1], [0, 0, 1, 1], [], []>} : vector<80x128xbf16>, vector<128x128xbf16>, vector<80x128xf32> -> vector<80x128xf32>
    %c0_19 = arith.constant 0 : index
    %c0_20 = arith.constant 0 : index
    %22 = vector.load %arg9[%c0_19, %c0_20] : memref<1x128xf32, #tpu.memory_space<vmem>>, vector<1x128xf32>
    %23 = vector.broadcast %22 : vector<1x128xf32> to vector<80x128xf32>
    %24 = arith.addf %21, %23 : vector<80x128xf32>
    %c0_21 = arith.constant 0 : index
    %c0_22 = arith.constant 0 : index
    %25 = vector.load %arg10[%c0_21, %c0_22] : memref<1x128xf32, #tpu.memory_space<vmem>>, vector<1x128xf32>
    %c0_23 = arith.constant 0 : index
    %c0_24 = arith.constant 0 : index
    %26 = vector.load %arg11[%c0_23, %c0_24] : memref<1x128xf32, #tpu.memory_space<vmem>>, vector<1x128xf32>
    %cst_25 = arith.constant dense<0.000000e+00> : vector<80xf32>
    %27 = vector.multi_reduction <add>, %24, %cst_25 [1] : vector<80x128xf32> to vector<80xf32>
    %28 = vector.shape_cast %27 : vector<80xf32> to vector<80x1xf32>
    %29 = arith.mulf %24, %24 : vector<80x128xf32>
    %cst_26 = arith.constant dense<0.000000e+00> : vector<80xf32>
    %30 = vector.multi_reduction <add>, %29, %cst_26 [1] : vector<80x128xf32> to vector<80xf32>
    %31 = vector.shape_cast %30 : vector<80xf32> to vector<80x1xf32>
    %cst_27 = arith.constant 7.812500e-03 : f32
    %32 = vector.broadcast %cst_27 : f32 to vector<80x1xf32>
    %33 = arith.mulf %28, %32 : vector<80x1xf32>
    %cst_28 = arith.constant 7.812500e-03 : f32
    %34 = vector.broadcast %cst_28 : f32 to vector<80x1xf32>
    %35 = arith.mulf %31, %34 : vector<80x1xf32>
    %36 = arith.mulf %33, %33 : vector<80x1xf32>
    %37 = arith.subf %35, %36 : vector<80x1xf32>
    %38 = vector.broadcast %33 : vector<80x1xf32> to vector<80x128xf32>
    %39 = arith.subf %24, %38 : vector<80x128xf32>
    %cst_29 = arith.constant 9.99999974E-6 : f32
    %40 = vector.broadcast %cst_29 : f32 to vector<80x1xf32>
    %41 = arith.addf %37, %40 : vector<80x1xf32>
    %42 = math.rsqrt %41 : vector<80x1xf32>
    %43 = vector.broadcast %42 : vector<80x1xf32> to vector<80x128xf32>
    %44 = arith.mulf %39, %43 : vector<80x128xf32>
    %45 = vector.broadcast %25 : vector<1x128xf32> to vector<80x128xf32>
    %46 = arith.mulf %44, %45 : vector<80x128xf32>
    %47 = vector.broadcast %26 : vector<1x128xf32> to vector<80x128xf32>
    %48 = arith.addf %46, %47 : vector<80x128xf32>
    %c0_30 = arith.constant 0 : index
    %c0_31 = arith.constant 0 : index
    %49 = vector.load %arg12[%c0_30, %c0_31] : memref<80x128xf32, #tpu.memory_space<vmem>>, vector<80x128xf32>
    tpu.vector_store %arg12[%c0_30, %c0_31], %48 {strides = array<i32>} : memref<80x128xf32, #tpu.memory_space<vmem>>, vector<80x128xf32>,
    return
  }
  func.func @transform_0(%arg0: i32) -> (i32, i32) {
    %c0_i32 = arith.constant 0 : i32
    %c0_i32_0 = arith.constant 0 : i32
    return %arg0, %c0_i32 : i32, i32
  }
  func.func @transform_1(%arg0: i32) -> (i32, i32) {
    %c0_i32 = arith.constant 0 : i32
    %c0_i32_0 = arith.constant 0 : i32
    return %arg0, %c0_i32 : i32, i32
  }
  func.func @transform_2(%arg0: i32) -> (i32, i32) {
    %c0_i32 = arith.constant 0 : i32
    %c0_i32_0 = arith.constant 0 : i32
    return %arg0, %c0_i32 : i32, i32
  }
  func.func @transform_3(%arg0: i32) -> (i32, i32) {
    %c0_i32 = arith.constant 0 : i32
    %c0_i32_0 = arith.constant 0 : i32
    %c0_i32_1 = arith.constant 0 : i32
    return %c0_i32, %c0_i32_0 : i32, i32
  }
  func.func @transform_4(%arg0: i32) -> (i32, i32) {
    %c0_i32 = arith.constant 0 : i32
    %c0_i32_0 = arith.constant 0 : i32
    %c0_i32_1 = arith.constant 0 : i32
    return %c0_i32, %c0_i32_0 : i32, i32
  }
  func.func @transform_5(%arg0: i32) -> (i32, i32) {
    %c0_i32 = arith.constant 0 : i32
    %c0_i32_0 = arith.constant 0 : i32
    %c0_i32_1 = arith.constant 0 : i32
    return %c0_i32, %c0_i32_0 : i32, i32
  }
  func.func @transform_6(%arg0: i32) -> (i32, i32) {
    %c0_i32 = arith.constant 0 : i32
    %c0_i32_0 = arith.constant 0 : i32
    %c0_i32_1 = arith.constant 0 : i32
    return %c0_i32, %c0_i32_0 : i32, i32
  }
  func.func @transform_7(%arg0: i32) -> (i32, i32) {
    %c0_i32 = arith.constant 0 : i32
    %c0_i32_0 = arith.constant 0 : i32
    %c0_i32_1 = arith.constant 0 : i32
    return %c0_i32, %c0_i32_0 : i32, i32
  }
  func.func @transform_8(%arg0: i32) -> (i32, i32) {
    %c0_i32 = arith.constant 0 : i32
    %c0_i32_0 = arith.constant 0 : i32
    %c0_i32_1 = arith.constant 0 : i32
    return %c0_i32, %c0_i32_0 : i32, i32
  }
  func.func @transform_9(%arg0: i32) -> (i32, i32) {
    %c0_i32 = arith.constant 0 : i32
    %c0_i32_0 = arith.constant 0 : i32
    %c0_i32_1 = arith.constant 0 : i32
    return %c0_i32, %c0_i32_0 : i32, i32
  }
  func.func @transform_10(%arg0: i32) -> (i32, i32) {
    %c0_i32 = arith.constant 0 : i32
    %c0_i32_0 = arith.constant 0 : i32
    %c0_i32_1 = arith.constant 0 : i32
    return %c0_i32, %c0_i32_0 : i32, i32
  }
  func.func @transform_11(%arg0: i32) -> (i32, i32) {
    %c0_i32 = arith.constant 0 : i32
    %c0_i32_0 = arith.constant 0 : i32
    return %arg0, %c0_i32 : i32, i32
  }
}

</mosaic_0001>

<bundles_post_ra>
// kernel: _lambda_.7
= control target key start
LH: loop header
LB: loop body
LE: loop exit
PB: predicated region body
PF: predicated region fallthrough
CT: control target
= control target key end

     0   :  { %s1700_s21 = smov 0   ;;  %s2370_s0 = inlined_call_operand.vmem [shape: f32[160,128], index: 0, kind: input, shape index: {}]   ;;  %s2371_s1 = inlined_call_operand.vmem [shape: f32[160,128], index: 1, kind: input, shape index: {}]   ;;  %s2372_s2 = inlined_call_operand.vmem [shape: bf16[128,128], index: 2, kind: input, shape index: {}]   ;;  %s2373_s3 = inlined_call_operand.vmem [shape: f32[1,128], index: 3, kind: input, shape index: {}]   ;;  %s2374_s4 = inlined_call_operand.vmem [shape: bf16[128,128], index: 4, kind: input, shape index: {}]   ;;  %s2375_s5 = inlined_call_operand.vmem [shape: f32[1,128], index: 5, kind: input, shape index: {}]   ;;  %s2376_s6 = inlined_call_operand.vmem [shape: f32[160,256], index: 6, kind: output, shape index: {}]  }
   0x1 LB: > { %s1333_s22 = sadd.s32 4294967295, %s1657_s21   ;;  %p1337_p0 = scmp.ge.s32.totalorder %s1657_s21, 1  ;;  %s1657_s21 = sphi %s1700_s21, %s16_s21  }
   0x2   : > { %p224_p1 = scmp.lt.s32.totalorder %s1657_s21, 3 }
   0x4   : > { %p225_p2 = pnand %p1337_p0, %p224_p1 }
   0x5   : > { %s260_s27 = smul.u32 (!%p225_p2), 10, %s1333_s22  ;;  %s1661_s10 = smov (!%p225_p2), 96  }
   0x6   : > { %228 = sbr.rel (%p225_p2) target bundleno = 783 (0x30f), region = 44  ;;  %s1662_s16 = smov (!%p225_p2), 92  }
   0x7   : > { %p261_p3 = scmp.lt.s32.totalorder (!%p225_p2), %s260_s27, 19  ;;  %s1664_s23 = smov (!%p225_p2), 84  }
   0xb   : > { %v1475_v0 = vld [vmem:[%s2374_s4 + $0x38] sm:$0xff]   ;;  %v1659_v1 = vmov 0.0   ;;  %v1476_v2 = vld [vmem:[%s2374_s4 + $0x30] sm:$0xff]   ;;  %vm1660_vm0 = vmmov 0   ;;  %v1477_v3 = vld [vmem:[%s2374_s4 + $0x28] sm:$0xff]   ;;  %s2378_s27 = smov (!%p261_p3, %s260_s27), 19 }
   0xc   : > { %1425 = vmatprep.subr.bf16.mxu1 %v1659_v1  ;;  %1389 = vmatprep.subr.bf16.mxu0 %v1659_v1  ;;  %v1478_v4 = vld [vmem:[%s2374_s4 + $0x20] sm:$0xff]   ;;  %v1479_v5 = vld [vmem:[%s2374_s4 + $0x18] sm:$0xff]   ;;  %v1480_v6 = vld [vmem:[%s2374_s4 + $0x10] sm:$0xff]   ;;  %s1338_s12 = sshll.u32 %s2378_s27, 3  ;;  %s1362_s20 = sshll.u32 %s2378_s27, 4  ;;  %vm618_vm1 = vcmask 294144  }
   0xd   : > { %1426 = vmatpush3.bf16.msra.mxu1 %v1475_v0  ;;  %1441 = vmatprep.mubr.msk.bf16.mxu1 %vm1660_vm0, %v1659_v1  ;;  %v1481_v7 = vld [vmem:[%s2374_s4 + $0x8] sm:$0xff]   ;;  %s264_s17 = scalar_lea.vmem %s2370_s0, %s1338_s12  ;;  %v1482_v8 = vld [vmem:[%s2374_s4] sm:$0xff]   ;;  %s1770_s26 = scalar_lea.vmem %s2376_s6, %s1362_s20  ;;  %vm780_vm2 = vcmask 326944   ;;  %vm941_vm3 = vcmask 359744   ;;  %vm1102_vm4 = vcmask 392544   ;;  %vm719_vm5 = vcmask 31744  }
   0xe   : > { %1427 = vmatprep.subr.bf16.mxu1 %v1659_v1  ;;  %1405 = vmatprep.mubr.msk.bf16.mxu0 %vm1660_vm0, %v1659_v1  ;;  %v439_v9 = vld [vmem:[%s264_s17] sm:$0xff]  ;;  %v440_v10 = vld [vmem:[%s264_s17 + $0x8] sm:$0xff]  ;;  %v441_v12 = vld [vmem:[%s264_s17 + $0x10] sm:$0xff]  ;;  %s1981_s30 = scalar_lea.vmem %s2371_s1, %s1338_s12 }
   0xf   : > { %v449_v11 = vpack.c.bf16 %v440_v10, %v439_v9  ;;  %v442_v13 = vld [vmem:[%s264_s17 + $0x18] sm:$0xff]  ;;  %v443_v15 = vld [vmem:[%s264_s17 + $0x20] sm:$0xff]  ;;  %v444_v16 = vld [vmem:[%s264_s17 + $0x28] sm:$0xff] }
  0x10   : > { %v450_v14 = vpack.c.bf16 %v442_v13, %v441_v12  ;;  %v451_v17 = vpack.c.bf16 %v444_v16, %v443_v15  ;;  %v445_v18 = vld [vmem:[%s264_s17 + $0x30] sm:$0xff]  ;;  %v446_v19 = vld [vmem:[%s264_s17 + $0x38] sm:$0xff]  ;;  %v447_v21 = vld [vmem:[%s264_s17 + $0x40] sm:$0xff] }
  0x11   : > { %1428 = vmatpush3.bf16.msra.mxu1 %v1476_v2  ;;  %v452_v20 = vpack.c.bf16 %v446_v19, %v445_v18  ;;  %v448_v22 = vld [vmem:[%s264_s17 + $0x48] sm:$0xff]  ;;  %v1765_v24 = vld [vmem:[%s2375_s5] ss:$0 sm:$0xff]  ;;  %s1663_s17 = smov 88  }
  0x12   : > { %1429 = vmatprep.subr.bf16.mxu1 %v1659_v1  ;;  %v453_v23 = vpack.c.bf16 %v448_v22, %v447_v21 }
  0x15   : > { %1430 = vmatpush3.bf16.msra.mxu1 %v1477_v3 }
  0x16   : > { %1431 = vmatprep.subr.bf16.mxu1 %v1659_v1 }
  0x19   : > { %1432 = vmatpush3.bf16.msra.mxu1 %v1478_v4 }
  0x1a   : > { %1433 = vmatprep.subr.bf16.mxu1 %v1659_v1 }
  0x1d   : > { %1434 = vmatpush3.bf16.msra.mxu1 %v1479_v5 }
  0x1e   : > { %1435 = vmatprep.subr.bf16.mxu1 %v1659_v1 }
  0x21   : > { %1436 = vmatpush3.bf16.msra.mxu1 %v1480_v6 }
  0x22   : > { %1437 = vmatprep.subr.bf16.mxu1 %v1659_v1 }
  0x25   : > { %1438 = vmatpush3.bf16.msra.mxu1 %v1481_v7 }
  0x26   : > { %1439 = vmatprep.subr.bf16.mxu1 %v1659_v1 }
  0x29   : > { %1440 = vmatpush3.bf16.msra.mxu1 %v1482_v8 }
  0x2c   : > { %1442 = vmatmul.mubr.bf16.vlgmr.msra.gmra.mxu1 %v449_v11 }
  0x2d   : > { %1445 = vmatprep.mubr.msk.bf16.mxu1 %vm1660_vm0, %v1659_v1 }
  0x34   : > { %1446 = vmatmul.mubr.bf16.gmra.mxu1 %v450_v14 }
  0x35   : > { %1449 = vmatprep.mubr.msk.bf16.mxu1 %vm1660_vm0, %v1659_v1 }
  0x3c   : > { %1450 = vmatmul.mubr.bf16.gmra.mxu1 %v451_v17 }
  0x3d   : > { %1453 = vmatprep.mubr.msk.bf16.mxu1 %vm1660_vm0, %v1659_v1 }
  0x44   : > { %1454 = vmatmul.mubr.bf16.gmra.mxu1 %v452_v20 }
  0x45   : > { %1457 = vmatprep.mubr.msk.bf16.mxu1 %vm1660_vm0, %v1659_v1 }
  0x4c   : > { %1458 = vmatmul.mubr.bf16.gmra.mxu1 %v453_v23 }
  0xec   : > { %v559_v25 = vpop.f32.mrf.mxu1 }
  0xed   : > { %v1773_v26 = vadd.f32 %v1765_v24, %v559_v25 }
  0xee   : > { %v1443_v27 = vpop.f32.mrf.mxu1 }
  0xef   : > { %608 = vst [vmem:[%s1770_s26 + $0x8] sm:$0xff] %v1773_v26  ;;  %v619_v28 = vsel %vm618_vm1, %v1773_v26, -inf  ;;  %v781_v32 = vsel %vm780_vm2, %v1773_v26, -inf  ;;  %v942_v37 = vsel %vm941_vm3, %v1773_v26, -inf  ;;  %v1103_v42 = vsel %vm1102_vm4, %v1773_v26, -inf }
  0xf0   : > { %620 = vmax.xlane.f32.xlu0 %v619_v28  ;;  %v562_v29 = vpop.f32.mrf.mxu1 }
  0xf1   : > { %v1780_v30 = vadd.f32 %v1765_v24, %v562_v29 }
  0xf2   : > { %v1444_v31 = vpop.f32.mrf.mxu1 }
  0xf3   : > { %609 = vst [vmem:[%s1770_s26 + $0x18] sm:$0xff] %v1780_v30  ;;  %v784_v33 = vsel %vm780_vm2, %v1780_v30, -inf  ;;  %v945_v38 = vsel %vm941_vm3, %v1780_v30, -inf  ;;  %v1106_v43 = vsel %vm1102_vm4, %v1780_v30, -inf  ;;  %v622_v48 = vsel %vm618_vm1, %v1780_v30, -inf }
  0xf4   : > { %782 = vmax.xlane.f32.xlu0 %v781_v32  ;;  %785 = vmax.xlane.f32.xlu1 %v784_v33  ;;  %v567_v34 = vpop.f32.mrf.mxu1 }
  0xf5   : > { %v1789_v35 = vadd.f32 %v1765_v24, %v567_v34 }
  0xf6   : > { %v1447_v36 = vpop.f32.mrf.mxu1 }
  0xf7   : > { %610 = vst [vmem:[%s1770_s26 + $0x28] sm:$0xff] %v1789_v35  ;;  %v625_v45 = vsel %vm618_vm1, %v1789_v35, -inf  ;;  %v787_v50 = vsel %vm780_vm2, %v1789_v35, -inf  ;;  %v948_v55 = vsel %vm941_vm3, %v1789_v35, -inf  ;;  %v1109_v60 = vsel %vm1102_vm4, %v1789_v35, -inf }
  0xf8   : > { %943 = vmax.xlane.f32.xlu0 %v942_v37  ;;  %946 = vmax.xlane.f32.xlu1 %v945_v38  ;;  %v570_v39 = vpop.f32.mrf.mxu1 }
  0xf9   : > { %v1798_v40 = vadd.f32 %v1765_v24, %v570_v39 }
  0xfa   : > { %v1448_v41 = vpop.f32.mrf.mxu1 }
  0xfb   : > { %611 = vst [vmem:[%s1770_s26 + $0x38] sm:$0xff] %v1798_v40  ;;  %v628_v51 = vsel %vm618_vm1, %v1798_v40, -inf  ;;  %v790_v56 = vsel %vm780_vm2, %v1798_v40, -inf  ;;  %v951_v61 = vsel %vm941_vm3, %v1798_v40, -inf  ;;  %v1112_v2 = vsel %vm1102_vm4, %v1798_v40, -inf }
  0xfc   : > { %1104 = vmax.xlane.f32.xlu0 %v1103_v42  ;;  %1107 = vmax.xlane.f32.xlu1 %v1106_v43  ;;  %v575_v44 = vpop.f32.mrf.mxu1  ;;  %v1483_v43 = vld [vmem:[%s2372_s2 + $0x38] sm:$0xff]  }
  0xfd   : > { %v1809_v46 = vadd.f32 %v1765_v24, %v575_v44  ;;  %1390 = vmatpush3.bf16.msra.mxu0 %v1483_v43 }
  0xfe   : > { %v1451_v47 = vpop.f32.mrf.mxu1  ;;  %1391 = vmatprep.subr.bf16.mxu0 %v1659_v1 }
  0xff   : > { %612 = vst [vmem:[%s1770_s26 + $0x48] sm:$0xff] %v1809_v46  ;;  %v631_v3 = vsel %vm618_vm1, %v1809_v46, -inf  ;;  %v793_v7 = vsel %vm780_vm2, %v1809_v46, -inf  ;;  %v954_v11 = vsel %vm941_vm3, %v1809_v46, -inf  ;;  %v1115_v13 = vsel %vm1102_vm4, %v1809_v46, -inf }
 0x100   : > { %623 = vmax.xlane.f32.xlu0 %v622_v48  ;;  %626 = vmax.xlane.f32.xlu1 %v625_v45  ;;  %v578_v49 = vpop.f32.mrf.mxu1 }
 0x101   : > { %v1820_v52 = vadd.f32 %v1765_v24, %v578_v49  ;;  %v1484_v49 = vld [vmem:[%s2372_s2 + $0x30] sm:$0xff]  }
 0x102   : > { %v1452_v53 = vpop.f32.mrf.mxu1  ;;  %1392 = vmatpush3.bf16.msra.mxu0 %v1484_v49 }
 0x103   : > { %613 = vst [vmem:[%s1770_s26 + $0x58] sm:$0xff] %v1820_v52  ;;  %v634_v8 = vsel %vm618_vm1, %v1820_v52, -inf  ;;  %v796_v12 = vsel %vm780_vm2, %v1820_v52, -inf  ;;  %v957_v14 = vsel %vm941_vm3, %v1820_v52, -inf  ;;  %v1118_v15 = vsel %vm1102_vm4, %v1820_v52, -inf  ;;  %1393 = vmatprep.subr.bf16.mxu0 %v1659_v1 }
 0x104   : > { %788 = vmax.xlane.f32.xlu0 %v787_v50  ;;  %629 = vmax.xlane.f32.xlu1 %v628_v51  ;;  %v583_v54 = vpop.f32.mrf.mxu1 }
 0x105   : > { %v1829_v57 = vadd.f32 %v1765_v24, %v583_v54 }
 0x106   : > { %v1455_v58 = vpop.f32.mrf.mxu1 }
 0x107   : > { %614 = vst [vmem:[%s1770_s26 + $0x68] sm:$0xff] %v1829_v57  ;;  %v637_v16 = vsel %vm618_vm1, %v1829_v57, -inf  ;;  %v799_v17 = vsel %vm780_vm2, %v1829_v57, -inf  ;;  %v960_v19 = vsel %vm941_vm3, %v1829_v57, -inf  ;;  %v1121_v21 = vsel %vm1102_vm4, %v1829_v57, -inf }
 0x108   : > { %949 = vmax.xlane.f32.xlu0 %v948_v55  ;;  %791 = vmax.xlane.f32.xlu1 %v790_v56  ;;  %v586_v59 = vpop.f32.mrf.mxu1  ;;  %v1485_v55 = vld [vmem:[%s2372_s2 + $0x28] sm:$0xff]  }
 0x109   : > { %v1838_v62 = vadd.f32 %v1765_v24, %v586_v59  ;;  %1394 = vmatpush3.bf16.msra.mxu0 %v1485_v55  ;;  %v283_v55 = vld [vmem:[%s1981_s30 + $0x18] sm:$0xff] }
 0x10a   : > { %v1456_v63 = vpop.f32.mrf.mxu1  ;;  %1395 = vmatprep.subr.bf16.mxu0 %v1659_v1 }
 0x10b   : > { %615 = vst [vmem:[%s1770_s26 + $0x78] sm:$0xff] %v1838_v62  ;;  %v640_v18 = vsel %vm618_vm1, %v1838_v62, -inf  ;;  %v802_v20 = vsel %vm780_vm2, %v1838_v62, -inf  ;;  %v963_v22 = vsel %vm941_vm3, %v1838_v62, -inf  ;;  %v1124_v23 = vsel %vm1102_vm4, %v1838_v62, -inf  ;;  %v1486_v63 = vld [vmem:[%s2372_s2 + $0x20] sm:$0xff]  }
 0x10c   : > { %1110 = vmax.xlane.f32.xlu0 %v1109_v60  ;;  %952 = vmax.xlane.f32.xlu1 %v951_v61  ;;  %v591_v0 = vpop.f32.mrf.mxu1 }
 0x10d   : > { %v1847_v4 = vadd.f32 %v1765_v24, %v591_v0  ;;  %1396 = vmatpush3.bf16.msra.mxu0 %v1486_v63 }
 0x10e   : > { %v1459_v5 = vpop.f32.mrf.mxu1  ;;  %1397 = vmatprep.subr.bf16.mxu0 %v1659_v1 }
 0x10f   : > { %616 = vst [vmem:[%s1770_s26 + $0x88] sm:$0xff] %v1847_v4  ;;  %v805_v25 = vsel %vm780_vm2, %v1847_v4, -inf  ;;  %v966_v28 = vsel %vm941_vm3, %v1847_v4, -inf  ;;  %v1127_v31 = vsel %vm1102_vm4, %v1847_v4, -inf }
 0x110   : > { %1113 = vmax.xlane.f32.xlu1 %v1112_v2  ;;  %632 = vmax.xlane.f32.xlu0 %v631_v3  ;;  %v594_v6 = vpop.f32.mrf.mxu1 }
 0x111   : > { %v1856_v9 = vadd.f32 %v1765_v24, %v594_v6  ;;  %v643_v24 = vsel %vm618_vm1, %v1847_v4, -inf  ;;  %v1487_v6 = vld [vmem:[%s2372_s2 + $0x18] sm:$0xff]  }
 0x112   : > { %v1460_v10 = vpop.f32.mrf.mxu1  ;;  %1398 = vmatpush3.bf16.msra.mxu0 %v1487_v6 }
 0x113   : > { %617 = vst [vmem:[%s1770_s26 + $0x98] sm:$0xff] %v1856_v9  ;;  %v646_v27 = vsel %vm618_vm1, %v1856_v9, -inf  ;;  %v808_v29 = vsel %vm780_vm2, %v1856_v9, -inf  ;;  %v969_v32 = vsel %vm941_vm3, %v1856_v9, -inf  ;;  %v1130_v33 = vsel %vm1102_vm4, %v1856_v9, -inf  ;;  %1399 = vmatprep.subr.bf16.mxu0 %v1659_v1 }
 0x114   : > { %794 = vmax.xlane.f32.xlu0 %v793_v7  ;;  %635 = vmax.xlane.f32.xlu1 %v634_v8 }
 0x118   : > { %955 = vmax.xlane.f32.xlu0 %v954_v11  ;;  %797 = vmax.xlane.f32.xlu1 %v796_v12 }
 0x11c   : > { %1116 = vmax.xlane.f32.xlu0 %v1115_v13  ;;  %958 = vmax.xlane.f32.xlu1 %v957_v14  ;;  %v1488_v14 = vld [vmem:[%s2372_s2 + $0x10] sm:$0xff]  }
 0x11d   : > { %1400 = vmatpush3.bf16.msra.mxu0 %v1488_v14 }
 0x11e   : > { %1401 = vmatprep.subr.bf16.mxu0 %v1659_v1 }
 0x120   : > { %1119 = vmax.xlane.f32.xlu1 %v1118_v15  ;;  %638 = vmax.xlane.f32.xlu0 %v637_v16 }
 0x124   : > { %800 = vmax.xlane.f32.xlu0 %v799_v17  ;;  %641 = vmax.xlane.f32.xlu1 %v640_v18 }
 0x128   : > { %961 = vmax.xlane.f32.xlu0 %v960_v19  ;;  %803 = vmax.xlane.f32.xlu1 %v802_v20  ;;  %v1489_v19 = vld [vmem:[%s2372_s2 + $0x8] sm:$0xff]  }
 0x129   : > { %1402 = vmatpush3.bf16.msra.mxu0 %v1489_v19 }
 0x12a   : > { %1403 = vmatprep.subr.bf16.mxu0 %v1659_v1 }
 0x12c   : > { %1122 = vmax.xlane.f32.xlu0 %v1121_v21  ;;  %964 = vmax.xlane.f32.xlu1 %v963_v22 }
 0x130   : > { %1125 = vmax.xlane.f32.xlu1 %v1124_v23  ;;  %644 = vmax.xlane.f32.xlu0 %v643_v24 }
 0x134   : > { %806 = vmax.xlane.f32.xlu0 %v805_v25  ;;  %647 = vmax.xlane.f32.xlu1 %v646_v27  ;;  %v1490_v27 = vld [vmem:[%s2372_s2] sm:$0xff]  }
 0x135   : > { %1404 = vmatpush3.bf16.msra.mxu0 %v1490_v27 }
 0x138   : > { %967 = vmax.xlane.f32.xlu0 %v966_v28  ;;  %809 = vmax.xlane.f32.xlu1 %v808_v29 }
 0x13c   : > { %1128 = vmax.xlane.f32.xlu0 %v1127_v31  ;;  %970 = vmax.xlane.f32.xlu1 %v969_v32 }
 0x140   : > { %1131 = vmax.xlane.f32.xlu1 %v1130_v33 }
 0x179   : > { %v621_v34 = vpop.xlane.xlu0 %620 }
 0x17a   : > { %v649_v36 = vsub.f32 %v1773_v26, %v621_v34 }
 0x17c   : > { %v659_v37 = vmul.f32 1.442695, %v649_v36 }
 0x17d   : > { %v783_v38 = vpop.xlane.xlu0 %782  ;;  %v786_v39 = vpop.xlane.xlu1 %785 }
 0x17e   : > { %1491 = vpow2.f32 %v659_v37  ;;  %v811_v41 = vsub.f32 %v1773_v26, %v783_v38  ;;  %v812_v59 = vsub.f32 %v1780_v30, %v786_v39  ;;  %v280_v37 = vld [vmem:[%s1981_s30] sm:$0xff]  ;;  %v281_v38 = vld [vmem:[%s1981_s30 + $0x8] sm:$0xff] }
 0x180   : > { %v821_v42 = vmul.f32 1.442695, %v811_v41  ;;  %v823_v3 = vmul.f32 1.442695, %v812_v59  ;;  %v290_v41 = vpack.c.bf16 %v281_v38, %v280_v37  ;;  %v286_v38 = vld [vmem:[%s1981_s30 + $0x30] sm:$0xff] }
 0x181   : > { %v944_v44 = vpop.xlane.xlu0 %943  ;;  %v947_v45 = vpop.xlane.xlu1 %946 }
 0x182   : > { %1493 = vpow2.f32 %v821_v42  ;;  %v972_v47 = vsub.f32 %v1773_v26, %v944_v44  ;;  %v973_v5 = vsub.f32 %v1780_v30, %v947_v45  ;;  %1406 = vmatmul.mubr.bf16.vlgmr.msra.gmra.mxu0 %v290_v41 }
 0x183   : > { %1409 = vmatprep.mubr.msk.bf16.mxu0 %vm1660_vm0, %v1659_v1 }
 0x184   : > { %v982_v48 = vmul.f32 1.442695, %v972_v47  ;;  %v984_v11 = vmul.f32 1.442695, %v973_v5 }
 0x185   : > { %v1105_v50 = vpop.xlane.xlu0 %1104  ;;  %v1108_v51 = vpop.xlane.xlu1 %1107 }
 0x186   : > { %1495 = vpow2.f32 %v982_v48  ;;  %v1133_v53 = vsub.f32 %v1773_v26, %v1105_v50  ;;  %v1134_v12 = vsub.f32 %v1780_v30, %v1108_v51 }
 0x188   : > { %v1143_v54 = vmul.f32 1.442695, %v1133_v53  ;;  %v1145_v17 = vmul.f32 1.442695, %v1134_v12 }
 0x189   : > { %v624_v56 = vpop.xlane.xlu0 %623  ;;  %v627_v58 = vpop.xlane.xlu1 %626 }
 0x18a   : > { %1497 = vpow2.f32 %v1143_v54  ;;  %v650_v60 = vsub.f32 %v1780_v30, %v624_v56  ;;  %v651_v30 = vsub.f32 %v1789_v35, %v627_v58  ;;  %v282_v54 = vld [vmem:[%s1981_s30 + $0x10] sm:$0xff] }
 0x18b   : > { %v1919_v61 = vpop.eup %1491  ;;  %v291_v58 = vpack.c.bf16 %v283_v55, %v282_v54 }
 0x18c   : > { %v661_v26 = vmul.f32 1.442695, %v650_v60  ;;  %689 = vrot.lane.b32.xlu0 %v1919_v61, %s1661_s10  ;;  %v663_v23 = vmul.f32 1.442695, %v651_v30  ;;  %v285_v30 = vld [vmem:[%s1981_s30 + $0x28] sm:$0xff] }
 0x18d   : > { %v789_v0 = vpop.xlane.xlu0 %788  ;;  %v1927_v2 = vpop.xlane.xlu1 %629  ;;  %1410 = vmatmul.mubr.bf16.gmra.mxu0 %v291_v58 }
 0x18e   : > { %1499 = vpow2.f32 %v661_v26  ;;  %v813_v20 = vsub.f32 %v1789_v35, %v789_v0  ;;  %v652_v50 = vsub.f32 %v1798_v40, %v1927_v2  ;;  %1413 = vmatprep.mubr.msk.bf16.mxu0 %vm1660_vm0, %v1659_v1 }
 0x18f   : > { %v1933_v7 = vpop.eup %1493  ;;  %1501 = vpow2.f32 %v823_v3 }
 0x190   : > { %851 = vrot.lane.b32.xlu0 %v1933_v7, %s1662_s16  ;;  %1503 = vpow2.f32 %v984_v11  ;;  %v825_v29 = vmul.f32 1.442695, %v813_v20  ;;  %v665_v63 = vmul.f32 1.442695, %v652_v50 }
 0x191   : > { %v950_v8 = vpop.xlane.xlu0 %949  ;;  %v1938_v10 = vpop.xlane.xlu1 %791  ;;  %1505 = vpow2.f32 %v1145_v17  ;;  %v284_v17 = vld [vmem:[%s1981_s30 + $0x20] sm:$0xff] }
 0x192   : > { %1507 = vpow2.f32 %v663_v23  ;;  %v974_v33 = vsub.f32 %v1789_v35, %v950_v8  ;;  %v814_v59 = vsub.f32 %v1798_v40, %v1938_v10  ;;  %v292_v20 = vpack.c.bf16 %v285_v30, %v284_v17 }
 0x193   : > { %v1941_v13 = vpop.eup %1495 }
 0x194   : > { %1012 = vrot.lane.b32.xlu1 %v1941_v13, %s1663_s17  ;;  %v986_v45 = vmul.f32 1.442695, %v974_v33  ;;  %v827_v6 = vmul.f32 1.442695, %v814_v59 }
 0x195   : > { %v1111_v15 = vpop.xlane.xlu0 %1110  ;;  %v1949_v16 = vpop.xlane.xlu1 %952  ;;  %1414 = vmatmul.mubr.bf16.gmra.mxu0 %v292_v20 }
 0x196   : > { %v1135_v42 = vsub.f32 %v1789_v35, %v1111_v15  ;;  %v975_v12 = vsub.f32 %v1798_v40, %v1949_v16  ;;  %1417 = vmatprep.mubr.msk.bf16.mxu0 %vm1660_vm0, %v1659_v1 }
 0x197   : > { %v1952_v18 = vpop.eup %1497 }
 0x198   : > { %1173 = vrot.lane.b32.xlu1 %v1952_v18, %s1664_s23  ;;  %v1147_v48 = vmul.f32 1.442695, %v1135_v42 }
 0x199   : > { %v1961_v21 = vpop.xlane.xlu1 %1113  ;;  %v633_v22 = vpop.xlane.xlu0 %632 }
 0x19a   : > { %v653_v24 = vsub.f32 %v1809_v46, %v633_v22  ;;  %v1136_v22 = vsub.f32 %v1798_v40, %v1961_v21 }
 0x19b   : > { %v1964_v25 = vpop.eup %1499 }
 0x19c   : > { %v667_v28 = vmul.f32 1.442695, %v653_v24  ;;  %691 = vrot.lane.b32.xlu1 %v1964_v25, %s1661_s10  ;;  %v1983_v36 = vpop.eup %1501  ;;  %v988_v24 = vmul.f32 1.442695, %v975_v12  ;;  %v1149_v40 = vmul.f32 1.442695, %v1136_v22 }
 0x19d   : > { %v795_v31 = vpop.xlane.xlu0 %794  ;;  %v1972_v32 = vpop.xlane.xlu1 %635 }
 0x19e   : > { %v815_v34 = vsub.f32 %v1809_v46, %v795_v31  ;;  %1509 = vpow2.f32 %v667_v28  ;;  %v1994_v47 = vpop.eup %1503  ;;  %v654_v42 = vsub.f32 %v1820_v52, %v1972_v32 }
 0x19f   : > { %1511 = vpow2.f32 %v825_v29  ;;  %v2005_v53 = vpop.eup %1505 }
 0x1a0   : > { %v829_v39 = vmul.f32 1.442695, %v815_v34  ;;  %853 = vrot.lane.b32.xlu1 %v1983_v36, %s1662_s16  ;;  %v2016_v2 = vpop.eup %1507  ;;  %v669_v32 = vmul.f32 1.442695, %v654_v42 }
 0x1a1   : > { %v1990_v43 = vpop.xlane.xlu0 %955  ;;  %v1992_v44 = vpop.xlane.xlu1 %797 }
 0x1a2   : > { %1513 = vpow2.f32 %v829_v39  ;;  %v976_v21 = vsub.f32 %v1809_v46, %v1990_v43  ;;  %v287_v39 = vld [vmem:[%s1981_s30 + $0x38] sm:$0xff]  ;;  %v816_v54 = vsub.f32 %v1820_v52, %v1992_v44 }
 0x1a3   : > { %1515 = vpow2.f32 %v986_v45 }
 0x1a4   : > { %1014 = vrot.lane.b32.xlu1 %v1994_v47, %s1663_s17  ;;  %1517 = vpow2.f32 %v1147_v48  ;;  %v990_v43 = vmul.f32 1.442695, %v976_v21  ;;  %v831_v44 = vmul.f32 1.442695, %v816_v54 }
 0x1a5   : > { %v1117_v49 = vpop.xlane.xlu0 %1116  ;;  %v2000_v35 = vpop.xlane.xlu1 %958 }
 0x1a6   : > { %v1137_v51 = vsub.f32 %v1809_v46, %v1117_v49  ;;  %v293_v46 = vpack.c.bf16 %v287_v39, %v286_v38 }
 0x1a8   : > { %v1151_v56 = vmul.f32 1.442695, %v1137_v51  ;;  %1175 = vrot.lane.b32.xlu1 %v2005_v53, %s1664_s23  ;;  %1418 = vmatmul.mubr.bf16.gmra.mxu0 %v293_v46 }
 0x1a9   : > { %v2013_v60 = vpop.xlane.xlu1 %1119  ;;  %v639_v26 = vpop.xlane.xlu0 %638  ;;  %1421 = vmatprep.mubr.msk.bf16.mxu0 %vm1660_vm0, %v1659_v1 }
 0x1aa   : > { %1519 = vpow2.f32 %v1151_v56  ;;  %v655_v0 = vsub.f32 %v1829_v57, %v639_v26  ;;  %v288_v26 = vld [vmem:[%s1981_s30 + $0x40] sm:$0xff] }
 0x1ab   : > { %v2020_v3 = vpop.eup %1509  ;;  %1521 = vpow2.f32 %v665_v63  ;;  %v289_v63 = vld [vmem:[%s1981_s30 + $0x48] sm:$0xff] }
 0x1ac   : > { %v671_v5 = vmul.f32 1.442695, %v655_v0  ;;  %693 = vrot.lane.b32.xlu1 %v2016_v2, %s1661_s10  ;;  %697 = vrot.lane.b32.xlu0 %v2020_v3, %s1661_s10  ;;  %v2028_v11 = vpop.eup %1511  ;;  %v294_v0 = vpack.c.bf16 %v289_v63, %v288_v26 }
 0x1ad   : > { %v801_v8 = vpop.xlane.xlu0 %800  ;;  %v2026_v10 = vpop.xlane.xlu1 %641 }
 0x1ae   : > { %v817_v14 = vsub.f32 %v1829_v57, %v801_v8  ;;  %1523 = vpow2.f32 %v671_v5  ;;  %v977_v5 = vsub.f32 %v1820_v52, %v2000_v35  ;;  %v1138_v35 = vsub.f32 %v1820_v52, %v2013_v60 }
 0x1af   : > { %v2033_v15 = vpop.eup %1513  ;;  %1525 = vpow2.f32 %v827_v6 }
 0x1b0   : > { %v833_v19 = vmul.f32 1.442695, %v817_v14  ;;  %855 = vrot.lane.b32.xlu1 %v2028_v11, %s1662_s16  ;;  %859 = vrot.lane.b32.xlu0 %v2033_v15, %s1662_s16  ;;  %v2047_v27 = vpop.eup %1515  ;;  %v992_v14 = vmul.f32 1.442695, %v977_v5 }
 0x1b1   : > { %v2043_v16 = vpop.xlane.xlu0 %961  ;;  %v2045_v23 = vpop.xlane.xlu1 %803  ;;  %1422 = vmatmul.mubr.bf16.gmra.mxu0 %v294_v0 }
 0x1b2   : > { %1527 = vpow2.f32 %v833_v19  ;;  %v2055_v31 = vpop.eup %1517  ;;  %v978_v21 = vsub.f32 %v1829_v57, %v2043_v16  ;;  %v818_v38 = vsub.f32 %v1838_v62, %v2045_v23 }
 0x1b3   : > { %1529 = vpow2.f32 %v988_v24 }
 0x1b4   : > { %1016 = vrot.lane.b32.xlu1 %v2047_v27, %s1663_s17  ;;  %1531 = vpow2.f32 %v1149_v40  ;;  %v1153_v40 = vmul.f32 1.442695, %v1138_v35  ;;  %v835_v46 = vmul.f32 1.442695, %v818_v38 }
 0x1b5   : > { %v1123_v28 = vpop.xlane.xlu0 %1122  ;;  %v965_v29 = vpop.xlane.xlu1 %964 }
 0x1b6   : > { %v1139_v33 = vsub.f32 %v1829_v57, %v1123_v28  ;;  %v979_v34 = vsub.f32 %v1838_v62, %v965_v29  ;;  %v656_v28 = vsub.f32 %v1838_v62, %v2026_v10  ;;  %v994_v29 = vmul.f32 1.442695, %v978_v21 }
 0x1b7   : > { %v2059_v37 = vpop.eup %1519 }
 0x1b8   : > { %v1155_v41 = vmul.f32 1.442695, %v1139_v33  ;;  %1181 = vrot.lane.b32.xlu0 %v2059_v37, %s1664_s23  ;;  %1177 = vrot.lane.b32.xlu1 %v2055_v31, %s1664_s23  ;;  %v996_v48 = vmul.f32 1.442695, %v979_v34  ;;  %v2070_v50 = vpop.eup %1521  ;;  %v673_v16 = vmul.f32 1.442695, %v656_v28 }
 0x1b9   : > { %v645_v45 = vpop.xlane.xlu0 %644  ;;  %v1126_v34 = vpop.xlane.xlu1 %1125 }
 0x1ba   : > { %1533 = vpow2.f32 %v1155_v41  ;;  %v657_v49 = vsub.f32 %v1847_v4, %v645_v45  ;;  %v1140_v42 = vsub.f32 %v1838_v62, %v1126_v34 }
 0x1bb   : > { %v2074_v51 = vpop.eup %1523  ;;  %1535 = vpow2.f32 %v990_v43 }
 0x1bc   : > { %695 = vrot.lane.b32.xlu1 %v2070_v50, %s1661_s10  ;;  %701 = vrot.lane.b32.xlu0 %v2074_v51, %s1661_s10  ;;  %v2082_v56 = vpop.eup %1525  ;;  %1537 = vpow2.f32 %v996_v48  ;;  %v675_v58 = vmul.f32 1.442695, %v657_v49  ;;  %v1157_v23 = vmul.f32 1.442695, %v1140_v42 }
 0x1bd   : > { %v807_v55 = vpop.xlane.xlu0 %806  ;;  %1539 = vpow2.f32 %v669_v32  ;;  %v648_v10 = vpop.xlane.xlu1 %647 }
 0x1be   : > { %v819_v1 = vsub.f32 %v1847_v4, %v807_v55  ;;  %1541 = vpow2.f32 %v675_v58  ;;  %v658_v62 = vsub.f32 %v1856_v9, %v648_v10 }
 0x1bf   : > { %v2085_v59 = vpop.eup %1527  ;;  %1543 = vpow2.f32 %v831_v44 }
 0x1c0   : > { %857 = vrot.lane.b32.xlu1 %v2082_v56, %s1662_s16  ;;  %863 = vrot.lane.b32.xlu0 %v2085_v59, %s1662_s16  ;;  %v837_v8 = vmul.f32 1.442695, %v819_v1  ;;  %v2095_v12 = vpop.eup %1529  ;;  %v677_v58 = vmul.f32 1.442695, %v658_v62 }
 0x1c1   : > { %v968_v6 = vpop.xlane.xlu0 %967  ;;  %v2099_v30 = vpop.eup %1531 }
 0x1c2   : > { %1545 = vpow2.f32 %v837_v8  ;;  %v980_v45 = vsub.f32 %v1847_v4, %v968_v6  ;;  %v810_v49 = vpop.xlane.xlu1 %809 }
 0x1c3   : > { %1547 = vpow2.f32 %v992_v14 }
 0x1c4   : > { %1018 = vrot.lane.b32.xlu1 %v2095_v12, %s1663_s17  ;;  %v998_v32 = vmul.f32 1.442695, %v980_v45 }
 0x1c5   : > { %v1129_v17 = vpop.xlane.xlu0 %1128 }
 0x1c6   : > { %v1141_v19 = vsub.f32 %v1847_v4, %v1129_v17  ;;  %v971_v55 = vpop.xlane.xlu1 %970  ;;  %v820_v4 = vsub.f32 %v1856_v9, %v810_v49 }
 0x1c7   : > { %v2104_v20 = vpop.eup %1533  ;;  %v981_v63 = vsub.f32 %v1856_v9, %v971_v55 }
 0x1c8   : > { %v1159_v22 = vmul.f32 1.442695, %v1141_v19  ;;  %1185 = vrot.lane.b32.xlu0 %v2104_v20, %s1664_s23  ;;  %1179 = vrot.lane.b32.xlu1 %v2099_v30, %s1664_s23  ;;  %v2110_v24 = vpop.eup %1535  ;;  %v839_v26 = vmul.f32 1.442695, %v820_v4 }
 0x1c9   : > { %v2114_v52 = vpop.eup %1537  ;;  %v1000_v5 = vmul.f32 1.442695, %v981_v63 }
 0x1ca   : > { %1549 = vpow2.f32 %v1159_v22  ;;  %v2120_v60 = vpop.eup %1539  ;;  %v1132_v44 = vpop.xlane.xlu1 %1131 }
 0x1cb   : > { %1551 = vpow2.f32 %v1153_v40  ;;  %v2124_v33 = vpop.eup %1541  ;;  %v1142_v6 = vsub.f32 %v1856_v9, %v1132_v44 }
 0x1cc   : > { %1026 = vrot.lane.b32.xlu0 %v2114_v52, %s1663_s17  ;;  %1020 = vrot.lane.b32.xlu1 %v2110_v24, %s1663_s17  ;;  %v2130_v57 = vpop.eup %1543  ;;  %1553 = vpow2.f32 %v994_v29 }
 0x1cd   : > { %1555 = vpow2.f32 %v673_v16  ;;  %v1161_v14 = vmul.f32 1.442695, %v1142_v6 }
 0x1ce   : > { %1557 = vpow2.f32 %v835_v46 }
 0x1cf   : > { %v2134_v39 = vpop.eup %1545  ;;  %1559 = vpow2.f32 %v1157_v23 }
 0x1d0   : > { %705 = vrot.lane.b32.xlu0 %v2124_v33, %s1661_s10  ;;  %699 = vrot.lane.b32.xlu1 %v2120_v60, %s1661_s10  ;;  %v2140_v41 = vpop.eup %1547  ;;  %1561 = vpow2.f32 %v998_v32 }
 0x1d1   : > { %1563 = vpow2.f32 %v677_v58 }
 0x1d2   : > { %1565 = vpow2.f32 %v839_v26 }
 0x1d3   : > { %1567 = vpow2.f32 %v1000_v5 }
 0x1d4   : > { %867 = vrot.lane.b32.xlu0 %v2134_v39, %s1662_s16  ;;  %861 = vrot.lane.b32.xlu1 %v2130_v57, %s1662_s16  ;;  %1569 = vpow2.f32 %v1161_v14 }
 0x1d7   : > { %v2143_v43 = vpop.eup %1549 }
 0x1d8   : > { %1189 = vrot.lane.b32.xlu0 %v2143_v43, %s1664_s23  ;;  %1022 = vrot.lane.b32.xlu1 %v2140_v41, %s1663_s17  ;;  %v2150_v48 = vpop.eup %1551 }
 0x1d9   : > { %v2155_v54 = vpop.eup %1553 }
 0x1da   : > { %v2160_v1 = vpop.eup %1555 }
 0x1db   : > { %v2165_v0 = vpop.eup %1557 }
 0x1dc   : > { %1183 = vrot.lane.b32.xlu1 %v2150_v48, %s1664_s23  ;;  %v2170_v8 = vpop.eup %1559 }
 0x1dd   : > { %v2174_v17 = vpop.eup %1561 }
 0x1de   : > { %v2178_v35 = vpop.eup %1563 }
 0x1df   : > { %v2182_v19 = vpop.eup %1565 }
 0x1e0   : > { %1024 = vrot.lane.b32.xlu1 %v2155_v54, %s1663_s17  ;;  %v2186_v9 = vpop.eup %1567 }
 0x1e1   : > { %v2190_v40 = vpop.eup %1569 }
 0x1e4   : > { %703 = vrot.lane.b32.xlu1 %v2160_v1, %s1661_s10 }
 0x1e8   : > { %865 = vrot.lane.b32.xlu1 %v2165_v0, %s1662_s16 }
 0x1ec   : > { %1187 = vrot.lane.b32.xlu1 %v2170_v8, %s1664_s23 }
 0x1f0   : > { %1028 = vrot.lane.b32.xlu1 %v2174_v17, %s1663_s17 }
 0x1f4   : > { %707 = vrot.lane.b32.xlu1 %v2178_v35, %s1661_s10 }
 0x1f8   : > { %869 = vrot.lane.b32.xlu1 %v2182_v19, %s1662_s16 }
 0x1fc   : > { %1030 = vrot.lane.b32.xlu1 %v2186_v9, %s1663_s17 }
 0x1fe   : > { %v690_v22 = vpop.permute.xlu0 %689 }
 0x1ff   : > { %v720_v21 = vsel %vm719_vm5, %v690_v22, 0.0 }
 0x200   : > { %721 = vadd.xlane.f32.xlu0 %v720_v21  ;;  %1191 = vrot.lane.b32.xlu1 %v2190_v40, %s1664_s23 }
 0x202   : > { %v852_v28 = vpop.permute.xlu0 %851 }
 0x203   : > { %v881_v29 = vsel %vm719_vm5, %v852_v28, 0.0 }
 0x204   : > { %882 = vadd.xlane.f32.xlu0 %v881_v29 }
 0x206   : > { %v1013_v34 = vpop.permute.xlu1 %1012 }
 0x207   : > { %v1042_v16 = vsel %vm719_vm5, %v1013_v34, 0.0 }
 0x208   : > { %1043 = vadd.xlane.f32.xlu0 %v1042_v16 }
 0x20a   : > { %v1174_v38 = vpop.permute.xlu1 %1173 }
 0x20b   : > { %v1203_v10 = vsel %vm719_vm5, %v1174_v38, 0.0 }
 0x20c   : > { %1204 = vadd.xlane.f32.xlu0 %v1203_v10 }
 0x20e   : > { %v692_v46 = vpop.permute.xlu1 %691 }
 0x20f   : > { %v723_v58 = vsel %vm719_vm5, %v692_v46, 0.0 }
 0x212   : > { %v854_v42 = vpop.permute.xlu1 %853 }
 0x213   : > { %v884_v23 = vsel %vm719_vm5, %v854_v42, 0.0 }
 0x214   : > { %885 = vadd.xlane.f32.xlu0 %v884_v23 }
 0x216   : > { %v1015_v45 = vpop.permute.xlu1 %1014 }
 0x217   : > { %v1045_v26 = vsel %vm719_vm5, %v1015_v45, 0.0 }
 0x21a   : > { %v1176_v49 = vpop.permute.xlu1 %1175 }
 0x21b   : > { %v1206_v5 = vsel %vm719_vm5, %v1176_v49, 0.0 }
 0x21e   : > { %v694_v62 = vpop.permute.xlu1 %693  ;;  %v698_v28 = vpop.permute.xlu0 %697 }
 0x21f   : > { %v726_v32 = vsel %vm719_vm5, %v694_v62, 0.0  ;;  %v732_v46 = vsel %vm719_vm5, %v698_v28, 0.0 }
 0x220   : > { %727 = vadd.xlane.f32.xlu0 %v726_v32 }
 0x222   : > { %v856_v55 = vpop.permute.xlu1 %855  ;;  %v860_v16 = vpop.permute.xlu0 %859 }
 0x223   : > { %v887_v22 = vsel %vm719_vm5, %v856_v55, 0.0  ;;  %v893_v49 = vsel %vm719_vm5, %v860_v16, 0.0 }
 0x224   : > { %724 = vadd.xlane.f32.xlu1 %v723_v58 }
 0x226   : > { %v1017_v4 = vpop.permute.xlu1 %1016 }
 0x227   : > { %v1048_v63 = vsel %vm719_vm5, %v1017_v4, 0.0 }
 0x228   : > { %1046 = vadd.xlane.f32.xlu1 %v1045_v26  ;;  %1049 = vadd.xlane.f32.xlu0 %v1048_v63 }
 0x22a   : > { %v1178_v44 = vpop.permute.xlu1 %1177  ;;  %v1182_v42 = vpop.permute.xlu0 %1181 }
 0x22b   : > { %v1209_v6 = vsel %vm719_vm5, %v1178_v44, 0.0  ;;  %v1215_v26 = vsel %vm719_vm5, %v1182_v42, 0.0 }
 0x22c   : > { %1207 = vadd.xlane.f32.xlu1 %v1206_v5  ;;  %1210 = vadd.xlane.f32.xlu0 %v1209_v6 }
 0x22e   : > { %v696_v14 = vpop.permute.xlu1 %695  ;;  %v702_v55 = vpop.permute.xlu0 %701 }
 0x22f   : > { %v729_v21 = vsel %vm719_vm5, %v696_v14, 0.0  ;;  %v738_v6 = vsel %vm719_vm5, %v702_v55, 0.0 }
 0x230   : > { %888 = vadd.xlane.f32.xlu1 %v887_v22  ;;  %730 = vadd.xlane.f32.xlu0 %v729_v21 }
 0x232   : > { %v858_v29 = vpop.permute.xlu1 %857  ;;  %v864_v63 = vpop.permute.xlu0 %863 }
 0x233   : > { %v890_v34 = vsel %vm719_vm5, %v858_v29, 0.0  ;;  %v899_v28 = vsel %vm719_vm5, %v864_v63, 0.0 }
 0x234   : > { %891 = vadd.xlane.f32.xlu0 %v890_v34 }
 0x236   : > { %v1019_v38 = vpop.permute.xlu1 %1018 }
 0x237   : > { %v1051_v10 = vsel %vm719_vm5, %v1019_v38, 0.0 }
 0x238   : > { %733 = vadd.xlane.f32.xlu0 %v732_v46  ;;  %1052 = vadd.xlane.f32.xlu1 %v1051_v10 }
 0x23a   : > { %v1180_v23 = vpop.permute.xlu1 %1179  ;;  %v1186_v14 = vpop.permute.xlu0 %1185 }
 0x23b   : > { %v1212_v45 = vsel %vm719_vm5, %v1180_v23, 0.0  ;;  %v1221_v23 = vsel %vm719_vm5, %v1186_v14, 0.0 }
 0x23c   : > { %894 = vadd.xlane.f32.xlu0 %v893_v49  ;;  %1213 = vadd.xlane.f32.xlu1 %v1212_v45 }
 0x23e   : > { %v1021_v62 = vpop.permute.xlu1 %1020  ;;  %v1027_v16 = vpop.permute.xlu0 %1026 }
 0x23f   : > { %v1054_v32 = vsel %vm719_vm5, %v1021_v62, 0.0 }
 0x240   : > { %1055 = vadd.xlane.f32.xlu0 %v1054_v32 }
 0x242   : > { %v700_v58 = vpop.permute.xlu1 %699  ;;  %v706_v46 = vpop.permute.xlu0 %705 }
 0x243   : > { %v735_v4 = vsel %vm719_vm5, %v700_v58, 0.0  ;;  %v744_v62 = vsel %vm719_vm5, %v706_v46, 0.0 }
 0x244   : > { %1216 = vadd.xlane.f32.xlu0 %v1215_v26  ;;  %736 = vadd.xlane.f32.xlu1 %v735_v4  ;;  %v1063_v4 = vsel %vm719_vm5, %v1027_v16, 0.0  ;;  %v1342_v16 = vld [vmem:[%s2373_s3] ss:$0 sm:$0xff] }
 0x246   : > { %v862_v44 = vpop.permute.xlu1 %861  ;;  %v868_v55 = vpop.permute.xlu0 %867 }
 0x247   : > { %v896_v5 = vsel %vm719_vm5, %v862_v44, 0.0  ;;  %v905_v26 = vsel %vm719_vm5, %v868_v55, 0.0  ;;  %v400_v44 = vpop.f32.mrf.mxu0 }
 0x248   : > { %739 = vadd.xlane.f32.xlu0 %v738_v6  ;;  %897 = vadd.xlane.f32.xlu1 %v896_v5 }
 0x24a   : > { %v1023_v22 = vpop.permute.xlu1 %1022  ;;  %v1190_v14 = vpop.permute.xlu0 %1189 }
 0x24b   : > { %v1057_v21 = vsel %vm719_vm5, %v1023_v22, 0.0  ;;  %v1407_v22 = vpop.f32.mrf.mxu0 }
 0x24c   : > { %900 = vadd.xlane.f32.xlu0 %v899_v28  ;;  %1058 = vadd.xlane.f32.xlu1 %v1057_v21 }
 0x24d   : > { %v403_v28 = vpop.f32.mrf.mxu0 }
 0x24e   : > { %v1184_v29 = vpop.permute.xlu1 %1183  ;;  %v404_v46 = vadd.f32 %v1342_v16, %v403_v28 }
 0x24f   : > { %v1218_v34 = vsel %vm719_vm5, %v1184_v29, 0.0  ;;  %v1227_v29 = vsel %vm719_vm5, %v1190_v14, 0.0 }
 0x250   : > { %1219 = vadd.xlane.f32.xlu1 %v1218_v34  ;;  %599 = vst [vmem:[%s1770_s26 + $0x10] sm:$0xff] %v404_v46 }
 0x252   : > { %v1025_v38 = vpop.permute.xlu1 %1024 }
 0x253   : > { %v1060_v10 = vsel %vm719_vm5, %v1025_v38, 0.0  ;;  %v1408_v38 = vpop.f32.mrf.mxu0 }
 0x254   : > { %1061 = vadd.xlane.f32.xlu0 %v1060_v10  ;;  %v401_v10 = vadd.f32 %v1342_v16, %v400_v44 }
 0x256   : > { %v704_v42 = vpop.permute.xlu1 %703  ;;  %598 = vst [vmem:[%s1770_s26] sm:$0xff] %v401_v10 }
 0x257   : > { %v741_v45 = vsel %vm719_vm5, %v704_v42, 0.0 }
 0x258   : > { %1222 = vadd.xlane.f32.xlu0 %v1221_v23  ;;  %742 = vadd.xlane.f32.xlu1 %v741_v45  ;;  %v408_v23 = vpop.f32.mrf.mxu0 }
 0x25a   : > { %v866_v49 = vpop.permute.xlu1 %865 }
 0x25b   : > { %v902_v32 = vsel %vm719_vm5, %v866_v49, 0.0  ;;  %v1411_v49 = vpop.f32.mrf.mxu0 }
 0x25c   : > { %745 = vadd.xlane.f32.xlu0 %v744_v62  ;;  %903 = vadd.xlane.f32.xlu1 %v902_v32 }
 0x25d   : > { %v411_v32 = vpop.f32.mrf.mxu0 }
 0x25e   : > { %v1188_v58 = vpop.permute.xlu1 %1187 }
 0x25f   : > { %v1224_v5 = vsel %vm719_vm5, %v1188_v58, 0.0  ;;  %v1412_v58 = vpop.f32.mrf.mxu0 }
 0x260   : > { %906 = vadd.xlane.f32.xlu0 %v905_v26  ;;  %1064 = vadd.xlane.f32.xlu1 %v1063_v4  ;;  %v409_v4 = vadd.f32 %v1342_v16, %v408_v23  ;;  %v412_v26 = vadd.f32 %v1342_v16, %v411_v32 }
 0x261   : > { %v416_v44 = vpop.f32.mrf.mxu0 }
 0x262   : > { %v1029_v63 = vpop.permute.xlu1 %1028  ;;  %600 = vst [vmem:[%s1770_s26 + $0x20] sm:$0xff] %v409_v4  ;;  %601 = vst [vmem:[%s1770_s26 + $0x30] sm:$0xff] %v412_v26 }
 0x263   : > { %v1066_v6 = vsel %vm719_vm5, %v1029_v63, 0.0 }
 0x264   : > { %1225 = vadd.xlane.f32.xlu1 %v1224_v5  ;;  %1067 = vadd.xlane.f32.xlu0 %v1066_v6  ;;  %v1415_v6 = vpop.f32.mrf.mxu0 }
 0x266   : > { %v708_v21 = vpop.permute.xlu1 %707  ;;  %v419_v14 = vpop.f32.mrf.mxu0 }
 0x267   : > { %v747_v34 = vsel %vm719_vm5, %v708_v21, 0.0  ;;  %v417_v21 = vadd.f32 %v1342_v16, %v416_v44  ;;  %v420_v28 = vadd.f32 %v1342_v16, %v419_v14 }
 0x268   : > { %1228 = vadd.xlane.f32.xlu0 %v1227_v29  ;;  %748 = vadd.xlane.f32.xlu1 %v747_v34  ;;  %v1416_v22 = vpop.f32.mrf.mxu0 }
 0x269   : > { %602 = vst [vmem:[%s1770_s26 + $0x40] sm:$0xff] %v417_v21  ;;  %603 = vst [vmem:[%s1770_s26 + $0x50] sm:$0xff] %v420_v28 }
 0x26a   : > { %v870_v42 = vpop.permute.xlu1 %869  ;;  %v424_v29 = vpop.f32.mrf.mxu0 }
 0x26b   : > { %v908_v45 = vsel %vm719_vm5, %v870_v42, 0.0  ;;  %v425_v46 = vadd.f32 %v1342_v16, %v424_v29 }
 0x26c   : > { %909 = vadd.xlane.f32.xlu1 %v908_v45  ;;  %v1419_v34 = vpop.f32.mrf.mxu0 }
 0x26d   : > { %604 = vst [vmem:[%s1770_s26 + $0x60] sm:$0xff] %v425_v46 }
 0x26e   : > { %v1031_v62 = vpop.permute.xlu1 %1030  ;;  %v427_v38 = vpop.f32.mrf.mxu0 }
 0x26f   : > { %v1069_v55 = vsel %vm719_vm5, %v1031_v62, 0.0  ;;  %v428_v42 = vadd.f32 %v1342_v16, %v427_v38 }
 0x270   : > { %1070 = vadd.xlane.f32.xlu1 %v1069_v55  ;;  %v1420_v10 = vpop.f32.mrf.mxu0 }
 0x271   : > { %605 = vst [vmem:[%s1770_s26 + $0x70] sm:$0xff] %v428_v42 }
 0x272   : > { %v1192_v63 = vpop.permute.xlu1 %1191  ;;  %v432_v23 = vpop.f32.mrf.mxu0 }
 0x273   : > { %v1230_v5 = vsel %vm719_vm5, %v1192_v63, 0.0  ;;  %v433_v55 = vadd.f32 %v1342_v16, %v432_v23 }
 0x274   : > { %1231 = vadd.xlane.f32.xlu1 %v1230_v5  ;;  %v1423_v45 = vpop.f32.mrf.mxu0 }
 0x275   : > { %606 = vst [vmem:[%s1770_s26 + $0x80] sm:$0xff] %v433_v55 }
 0x276   : > { %v435_v49 = vpop.f32.mrf.mxu0 }
 0x277   : > { %v436_v58 = vadd.f32 %v1342_v16, %v435_v49 }
 0x278   : > { %v1424_v62 = vpop.f32.mrf.mxu0 }
 0x279   : > { %607 = vst [vmem:[%s1770_s26 + $0x90] sm:$0xff] %v436_v58 }
 0x289   : > { %v722_v32 = vpop.xlane.xlu0 %721 }
 0x28a   : > { %1571 = vrcp.f32 %v722_v32 }
 0x28d   : > { %v883_v4 = vpop.xlane.xlu0 %882 }
 0x28e   : > { %1573 = vrcp.f32 %v883_v4 }
 0x291   : > { %v1044_v26 = vpop.xlane.xlu0 %1043 }
 0x292   : > { %1575 = vrcp.f32 %v1044_v26 }
 0x295   : > { %v1205_v63 = vpop.xlane.xlu0 %1204 }
 0x296   : > { %1577 = vrcp.f32 %v1205_v63 }
 0x297   : > { %v1572_v44 = vpop.eup %1571 }
 0x298   : > { %v751_v5 = vmul.f32 %v1572_v44, %v1919_v61 }
 0x29a   : > { %770 = vst.msk [vmem:[%s1770_s26 + $0x8] sm:$0xff] %vm618_vm1, %v751_v5 }
 0x29b   : > { %v1574_v6 = vpop.eup %1573 }
 0x29c   : > { %v912_v14 = vmul.f32 %v1574_v6, %v1933_v7 }
 0x29d   : > { %v886_v29 = vpop.xlane.xlu0 %885 }
 0x29e   : > { %931 = vst.msk [vmem:[%s1770_s26 + $0x8] sm:$0xff] %vm780_vm2, %v912_v14 }
 0x29f   : > { %v1576_v16 = vpop.eup %1575 }
 0x2a0   : > { %v1073_v22 = vmul.f32 %v1576_v16, %v1941_v13 }
 0x2a2   : > { %1092 = vst.msk [vmem:[%s1770_s26 + $0x8] sm:$0xff] %vm941_vm3, %v1073_v22 }
 0x2a3   : > { %v1578_v21 = vpop.eup %1577 }
 0x2a4   : > { %v1234_v28 = vmul.f32 %v1578_v21, %v1952_v18 }
 0x2a6   : > { %1253 = vst.msk [vmem:[%s1770_s26 + $0x8] sm:$0xff] %vm1102_vm4, %v1234_v28 }
 0x2a9   : > { %v728_v34 = vpop.xlane.xlu0 %727 }
 0x2aa   : > { %1579 = vrcp.f32 %v728_v34 }
 0x2ab   : > { %1581 = vrcp.f32 %v886_v29 }
 0x2ad   : > { %v725_v61 = vpop.xlane.xlu1 %724 }
 0x2ae   : > { %1583 = vrcp.f32 %v725_v61 }
 0x2b1   : > { %v1050_v7 = vpop.xlane.xlu0 %1049  ;;  %v1047_v38 = vpop.xlane.xlu1 %1046 }
 0x2b2   : > { %1585 = vrcp.f32 %v1047_v38 }
 0x2b5   : > { %v1211_v10 = vpop.xlane.xlu0 %1210  ;;  %v1208_v46 = vpop.xlane.xlu1 %1207 }
 0x2b6   : > { %1587 = vrcp.f32 %v1208_v46 }
 0x2b7   : > { %v1580_v13 = vpop.eup %1579  ;;  %1589 = vrcp.f32 %v1050_v7 }
 0x2b8   : > { %v755_v18 = vmul.f32 %v1580_v13, %v2016_v2  ;;  %1591 = vrcp.f32 %v1211_v10  ;;  %v1582_v45 = vpop.eup %1581 }
 0x2b9   : > { %v731_v42 = vpop.xlane.xlu0 %730  ;;  %v889_v23 = vpop.xlane.xlu1 %888  ;;  %v914_v32 = vmul.f32 %v1582_v45, %v1983_v36 }
 0x2ba   : > { %772 = vst.msk [vmem:[%s1770_s26 + $0x28] sm:$0xff] %vm618_vm1, %v755_v18  ;;  %1593 = vrcp.f32 %v731_v42 }
 0x2bb   : > { %v1584_v49 = vpop.eup %1583  ;;  %1595 = vrcp.f32 %v889_v23 }
 0x2bc   : > { %v753_v62 = vmul.f32 %v1584_v49, %v1964_v25 }
 0x2bd   : > { %v892_v55 = vpop.xlane.xlu0 %891 }
 0x2be   : > { %771 = vst.msk [vmem:[%s1770_s26 + $0x18] sm:$0xff] %vm618_vm1, %v753_v62  ;;  %1597 = vrcp.f32 %v892_v55 }
 0x2bf   : > { %932 = vst.msk [vmem:[%s1770_s26 + $0x18] sm:$0xff] %vm780_vm2, %v914_v32  ;;  %v1586_v2 = vpop.eup %1585 }
 0x2c0   : > { %v1075_v58 = vmul.f32 %v1586_v2, %v1994_v47 }
 0x2c1   : > { %v734_v4 = vpop.xlane.xlu0 %733  ;;  %v1053_v26 = vpop.xlane.xlu1 %1052 }
 0x2c2   : > { %1599 = vrcp.f32 %v734_v4  ;;  %1093 = vst.msk [vmem:[%s1770_s26 + $0x18] sm:$0xff] %vm941_vm3, %v1075_v58 }
 0x2c3   : > { %1601 = vrcp.f32 %v1053_v26  ;;  %v1588_v25 = vpop.eup %1587 }
 0x2c4   : > { %v1590_v63 = vpop.eup %1589  ;;  %v1236_v36 = vmul.f32 %v1588_v25, %v2005_v53 }
 0x2c5   : > { %v895_v44 = vpop.xlane.xlu0 %894  ;;  %v1214_v5 = vpop.xlane.xlu1 %1213  ;;  %v1077_v53 = vmul.f32 %v1590_v63, %v2047_v27 }
 0x2c6   : > { %v1592_v6 = vpop.eup %1591  ;;  %1603 = vrcp.f32 %v895_v44  ;;  %1254 = vst.msk [vmem:[%s1770_s26 + $0x18] sm:$0xff] %vm1102_vm4, %v1236_v36 }
 0x2c7   : > { %v1594_v14 = vpop.eup %1593  ;;  %1605 = vrcp.f32 %v1214_v5  ;;  %v1238_v29 = vmul.f32 %v1592_v6, %v2055_v31 }
 0x2c8   : > { %v1596_v47 = vpop.eup %1595  ;;  %v757_v16 = vmul.f32 %v1594_v14, %v2070_v50 }
 0x2c9   : > { %v916_v22 = vmul.f32 %v1596_v47, %v2028_v11  ;;  %v1056_v21 = vpop.xlane.xlu0 %1055 }
 0x2ca   : > { %773 = vst.msk [vmem:[%s1770_s26 + $0x38] sm:$0xff] %vm618_vm1, %v757_v16  ;;  %1607 = vrcp.f32 %v1056_v21 }
 0x2cb   : > { %v1598_v28 = vpop.eup %1597  ;;  %933 = vst.msk [vmem:[%s1770_s26 + $0x28] sm:$0xff] %vm780_vm2, %v916_v22 }
 0x2cc   : > { %1094 = vst.msk [vmem:[%s1770_s26 + $0x28] sm:$0xff] %vm941_vm3, %v1077_v53  ;;  %v918_v34 = vmul.f32 %v1598_v28, %v2082_v56 }
 0x2cd   : > { %1255 = vst.msk [vmem:[%s1770_s26 + $0x28] sm:$0xff] %vm1102_vm4, %v1238_v29  ;;  %v1217_v11 = vpop.xlane.xlu0 %1216  ;;  %v737_v50 = vpop.xlane.xlu1 %736 }
 0x2ce   : > { %934 = vst.msk [vmem:[%s1770_s26 + $0x38] sm:$0xff] %vm780_vm2, %v918_v34  ;;  %1609 = vrcp.f32 %v1217_v11 }
 0x2cf   : > { %v1600_v27 = vpop.eup %1599  ;;  %1611 = vrcp.f32 %v737_v50 }
 0x2d0   : > { %v1602_v61 = vpop.eup %1601  ;;  %v759_v31 = vmul.f32 %v1600_v27, %v2020_v3 }
 0x2d1   : > { %v1079_v7 = vmul.f32 %v1602_v61, %v2095_v12  ;;  %v740_v38 = vpop.xlane.xlu0 %739  ;;  %v898_v10 = vpop.xlane.xlu1 %897 }
 0x2d2   : > { %774 = vst.msk [vmem:[%s1770_s26 + $0x48] sm:$0xff] %vm618_vm1, %v759_v31  ;;  %1613 = vrcp.f32 %v740_v38 }
 0x2d3   : > { %v1604_v56 = vpop.eup %1603  ;;  %1095 = vst.msk [vmem:[%s1770_s26 + $0x38] sm:$0xff] %vm941_vm3, %v1079_v7  ;;  %1615 = vrcp.f32 %v898_v10 }
 0x2d4   : > { %v1606_v46 = vpop.eup %1605  ;;  %v920_v13 = vmul.f32 %v1604_v56, %v2033_v15 }
 0x2d5   : > { %v1240_v18 = vmul.f32 %v1606_v46, %v2099_v30  ;;  %v901_v42 = vpop.xlane.xlu0 %900  ;;  %v1059_v3 = vpop.xlane.xlu1 %1058 }
 0x2d6   : > { %935 = vst.msk [vmem:[%s1770_s26 + $0x48] sm:$0xff] %vm780_vm2, %v920_v13  ;;  %1617 = vrcp.f32 %v901_v42 }
 0x2d7   : > { %v1608_v12 = vpop.eup %1607  ;;  %1256 = vst.msk [vmem:[%s1770_s26 + $0x38] sm:$0xff] %vm1102_vm4, %v1240_v18  ;;  %1619 = vrcp.f32 %v1059_v3 }
 0x2d8   : > { %v1081_v23 = vmul.f32 %v1608_v12, %v2110_v24 }
 0x2d9   : > { %v1220_v45 = vpop.xlane.xlu1 %1219 }
 0x2da   : > { %1096 = vst.msk [vmem:[%s1770_s26 + $0x48] sm:$0xff] %vm941_vm3, %v1081_v23  ;;  %1621 = vrcp.f32 %v1220_v45 }
 0x2db   : > { %v1610_v15 = vpop.eup %1609 }
 0x2dc   : > { %v1612_v30 = vpop.eup %1611  ;;  %v1242_v49 = vmul.f32 %v1610_v15, %v2059_v37 }
 0x2dd   : > { %v761_v62 = vmul.f32 %v1612_v30, %v2120_v60  ;;  %v1062_v32 = vpop.xlane.xlu0 %1061 }
 0x2de   : > { %1257 = vst.msk [vmem:[%s1770_s26 + $0x48] sm:$0xff] %vm1102_vm4, %v1242_v49  ;;  %1623 = vrcp.f32 %v1062_v32 }
 0x2df   : > { %v1614_v55 = vpop.eup %1613  ;;  %775 = vst.msk [vmem:[%s1770_s26 + $0x58] sm:$0xff] %vm618_vm1, %v761_v62 }
 0x2e0   : > { %v1616_v24 = vpop.eup %1615  ;;  %v763_v2 = vmul.f32 %v1614_v55, %v2074_v51 }
 0x2e1   : > { %v922_v58 = vmul.f32 %v1616_v24, %v2130_v57  ;;  %v1223_v4 = vpop.xlane.xlu0 %1222  ;;  %v743_v26 = vpop.xlane.xlu1 %742 }
 0x2e2   : > { %776 = vst.msk [vmem:[%s1770_s26 + $0x68] sm:$0xff] %vm618_vm1, %v763_v2  ;;  %1625 = vrcp.f32 %v1223_v4 }
 0x2e3   : > { %v1618_v37 = vpop.eup %1617  ;;  %936 = vst.msk [vmem:[%s1770_s26 + $0x58] sm:$0xff] %vm780_vm2, %v922_v58  ;;  %1627 = vrcp.f32 %v743_v26 }
 0x2e4   : > { %v1620_v60 = vpop.eup %1619  ;;  %v924_v25 = vmul.f32 %v1618_v37, %v2085_v59 }
 0x2e5   : > { %v1083_v63 = vmul.f32 %v1620_v60, %v2140_v41  ;;  %v746_v36 = vpop.xlane.xlu0 %745  ;;  %v904_v51 = vpop.xlane.xlu1 %903 }
 0x2e6   : > { %937 = vst.msk [vmem:[%s1770_s26 + $0x68] sm:$0xff] %vm780_vm2, %v924_v25  ;;  %1629 = vrcp.f32 %v746_v36 }
 0x2e7   : > { %v1622_v57 = vpop.eup %1621  ;;  %1097 = vst.msk [vmem:[%s1770_s26 + $0x58] sm:$0xff] %vm941_vm3, %v1083_v63  ;;  %1631 = vrcp.f32 %v904_v51 }
 0x2e8   : > { %v1244_v44 = vmul.f32 %v1622_v57, %v2150_v48 }
 0x2e9   : > { %v907_v5 = vpop.xlane.xlu0 %906  ;;  %v1065_v6 = vpop.xlane.xlu1 %1064 }
 0x2ea   : > { %1258 = vst.msk [vmem:[%s1770_s26 + $0x58] sm:$0xff] %vm1102_vm4, %v1244_v44  ;;  %1633 = vrcp.f32 %v907_v5 }
 0x2eb   : > { %v1624_v59 = vpop.eup %1623  ;;  %1635 = vrcp.f32 %v1065_v6 }
 0x2ec   : > { %v1085_v41 = vmul.f32 %v1624_v59, %v2155_v54 }
 0x2ed   : > { %v1068_v14 = vpop.xlane.xlu0 %1067  ;;  %v1226_v47 = vpop.xlane.xlu1 %1225 }
 0x2ee   : > { %1098 = vst.msk [vmem:[%s1770_s26 + $0x68] sm:$0xff] %vm941_vm3, %v1085_v41  ;;  %1637 = vrcp.f32 %v1068_v14 }
 0x2ef   : > { %v1626_v16 = vpop.eup %1625  ;;  %1639 = vrcp.f32 %v1226_v47 }
 0x2f0   : > { %v1628_v48 = vpop.eup %1627  ;;  %v1246_v22 = vmul.f32 %v1626_v16, %v2104_v20 }
 0x2f1   : > { %v765_v21 = vmul.f32 %v1628_v48, %v2160_v1  ;;  %v1229_v53 = vpop.xlane.xlu0 %1228  ;;  %v749_v28 = vpop.xlane.xlu1 %748 }
 0x2f2   : > { %1259 = vst.msk [vmem:[%s1770_s26 + $0x68] sm:$0xff] %vm1102_vm4, %v1246_v22  ;;  %1641 = vrcp.f32 %v1229_v53 }
 0x2f3   : > { %v1630_v54 = vpop.eup %1629  ;;  %777 = vst.msk [vmem:[%s1770_s26 + $0x78] sm:$0xff] %vm618_vm1, %v765_v21  ;;  %1643 = vrcp.f32 %v749_v28 }
 0x2f4   : > { %v1632_v29 = vpop.eup %1631  ;;  %v767_v34 = vmul.f32 %v1630_v54, %v2124_v33 }
 0x2f5   : > { %v926_v11 = vmul.f32 %v1632_v29, %v2165_v0  ;;  %v910_v20 = vpop.xlane.xlu1 %909 }
 0x2f6   : > { %778 = vst.msk [vmem:[%s1770_s26 + $0x88] sm:$0xff] %vm618_vm1, %v767_v34  ;;  %1645 = vrcp.f32 %v910_v20 }
 0x2f7   : > { %v1634_v1 = vpop.eup %1633  ;;  %938 = vst.msk [vmem:[%s1770_s26 + $0x78] sm:$0xff] %vm780_vm2, %v926_v11 }
 0x2f8   : > { %v1636_v50 = vpop.eup %1635  ;;  %v928_v27 = vmul.f32 %v1634_v1, %v2134_v39 }
 0x2f9   : > { %v1087_v61 = vmul.f32 %v1636_v50, %v2114_v52  ;;  %v1071_v31 = vpop.xlane.xlu1 %1070 }
 0x2fa   : > { %939 = vst.msk [vmem:[%s1770_s26 + $0x88] sm:$0xff] %vm780_vm2, %v928_v27  ;;  %1647 = vrcp.f32 %v1071_v31 }
 0x2fb   : > { %v1638_v33 = vpop.eup %1637  ;;  %1099 = vst.msk [vmem:[%s1770_s26 + $0x78] sm:$0xff] %vm941_vm3, %v1087_v61 }
 0x2fc   : > { %v1640_v0 = vpop.eup %1639  ;;  %v1089_v7 = vmul.f32 %v1638_v33, %v2174_v17 }
 0x2fd   : > { %v1248_v38 = vmul.f32 %v1640_v0, %v2170_v8  ;;  %v1232_v10 = vpop.xlane.xlu1 %1231 }
 0x2fe   : > { %1100 = vst.msk [vmem:[%s1770_s26 + $0x88] sm:$0xff] %vm941_vm3, %v1089_v7  ;;  %1649 = vrcp.f32 %v1232_v10 }
 0x2ff   : > { %v1642_v52 = vpop.eup %1641  ;;  %1260 = vst.msk [vmem:[%s1770_s26 + $0x78] sm:$0xff] %vm1102_vm4, %v1248_v38 }
 0x300   : > { %v1644_v39 = vpop.eup %1643  ;;  %v1250_v56 = vmul.f32 %v1642_v52, %v2143_v43 }
 0x301   : > { %v769_v46 = vmul.f32 %v1644_v39, %v2178_v35 }
 0x302   : > { %1261 = vst.msk [vmem:[%s1770_s26 + $0x88] sm:$0xff] %vm1102_vm4, %v1250_v56 }
 0x303   : > { %v1646_v13 = vpop.eup %1645  ;;  %779 = vst.msk [vmem:[%s1770_s26 + $0x98] sm:$0xff] %vm618_vm1, %v769_v46 }
 0x304   : > { %v930_v8 = vmul.f32 %v1646_v13, %v2182_v19 }
 0x306   : > { %940 = vst.msk [vmem:[%s1770_s26 + $0x98] sm:$0xff] %vm780_vm2, %v930_v8 }
 0x307   : > { %v1648_v17 = vpop.eup %1647 }
 0x308   : > { %v1091_v18 = vmul.f32 %v1648_v17, %v2186_v9 }
 0x30a   : > { %1101 = vst.msk [vmem:[%s1770_s26 + $0x98] sm:$0xff] %vm941_vm3, %v1091_v18 }
 0x30b   : > { %v1650_v42 = vpop.eup %1649 }
 0x30c   : > { %v1252_v3 = vmul.f32 %v1650_v42, %v2190_v40 }
 0x30e   : > { %1262 = vst.msk [vmem:[%s1770_s26 + $0x98] sm:$0xff] %vm1102_vm4, %v1252_v3 }
 0x30f PF: > { %s16_s21 = sadd.s32 1, %s1657_s21  }
 0x310   : > { %p13_p4 = scmp.ge.s32.totalorder %s16_s21, 4  }
 0x312   :  { %15 = sbr.rel (!%p13_p4) target bundleno = 1 (0x1), region = 77 }

// kernel: _lambda_.9
= control target key start
LH: loop header
LB: loop body
LE: loop exit
PB: predicated region body
PF: predicated region fallthrough
CT: control target
= control target key end

     0   :  { %s1185_s24 = smov 0   ;;  %s1526_s0 = inlined_call_operand.vmem [shape: f32[160,128], index: 0, kind: input, shape index: {}]   ;;  %s1527_s1 = inlined_call_operand.vmem [shape: bf16[128,256], index: 1, kind: input, shape index: {}]   ;;  %s1528_s2 = inlined_call_operand.vmem [shape: f32[1,256], index: 2, kind: input, shape index: {}]   ;;  %s1529_s3 = inlined_call_operand.vmem [shape: bf16[256,128], index: 3, kind: input, shape index: {}]   ;;  %s1530_s4 = inlined_call_operand.vmem [shape: f32[1,128], index: 4, kind: input, shape index: {}, may-alias: {4,6}]   ;;  %s1531_s5 = inlined_call_operand.vmem [shape: f32[1,128], index: 5, kind: input, shape index: {}]   ;;  %s1532_s6 = inlined_call_operand.vmem [shape: f32[1,128], index: 6, kind: input, shape index: {}, may-alias: {4,6}]   ;;  %s1533_s7 = inlined_call_operand.vmem [shape: f32[160,128], index: 7, kind: output, shape index: {}]  }
   0x1 LB: > { %s977_s25 = sadd.s32 4294967295, %s1142_s24   ;;  %p981_p0 = scmp.ge.s32.totalorder %s1142_s24, 1  ;;  %s1142_s24 = sphi %s1185_s24, %s17_s24  }
   0x2   : > { %p238_p1 = scmp.lt.s32.totalorder %s1142_s24, 3 }
   0x4   : > { %p239_p2 = pnand %p981_p0, %p238_p1 }
   0x5   : > { %s270_s13 = smul.u32 (!%p239_p2), 10, %s977_s25 }
   0x6   : > { %242 = sbr.rel (%p239_p2) target bundleno = 658 (0x292), region = 48 }
   0x7   : > { %p271_p3 = scmp.lt.s32.totalorder (!%p239_p2), %s270_s13, 19 }
   0xb   : > { %v1076_v0 = vld [vmem:[%s1527_s1 + $0x74] ss:$8 sps:$4 sm:$0xff]   ;;  %v1078_v1 = vld [vmem:[%s1527_s1 + $0x70] ss:$8 sps:$4 sm:$0xff]   ;;  %v1144_v2 = vmov 0   ;;  %s1535_s13 = smov (!%p271_p3, %s270_s13), 19  ;;  %v316_v48 = vlaneseq }
   0xc   : > { %438 = vmatprep.mubr.bf16.mxu0 %v1144_v2  ;;  %406 = vmatprep.subr.bf16.mxu0 %v1076_v0  ;;  %v1079_v3 = vld [vmem:[%s1527_s1 + $0x64] ss:$8 sps:$4 sm:$0xff]   ;;  %v1081_v4 = vld [vmem:[%s1527_s1 + $0x60] ss:$8 sps:$4 sm:$0xff]   ;;  %v1082_v5 = vld [vmem:[%s1527_s1 + $0x54] ss:$8 sps:$4 sm:$0xff]  }
   0xd   : > { %407 = vmatpush1.bf16.msra.mxu0 %v1078_v1  ;;  %v1084_v6 = vld [vmem:[%s1527_s1 + $0x50] ss:$8 sps:$4 sm:$0xff]   ;;  %v1085_v7 = vld [vmem:[%s1527_s1 + $0x44] ss:$8 sps:$4 sm:$0xff]   ;;  %v1087_v8 = vld [vmem:[%s1527_s1 + $0x40] ss:$8 sps:$4 sm:$0xff]  }
   0xe   : > { %408 = vmatprep.subr.bf16.mxu0 %v1079_v3  ;;  %v1088_v9 = vld [vmem:[%s1527_s1 + $0x34] ss:$8 sps:$4 sm:$0xff]   ;;  %v1090_v10 = vld [vmem:[%s1527_s1 + $0x30] ss:$8 sps:$4 sm:$0xff]   ;;  %v1091_v11 = vld [vmem:[%s1527_s1 + $0x24] ss:$8 sps:$4 sm:$0xff]  }
   0xf   : > { %v1100_v12 = vld [vmem:[%s1529_s3 + $0x78] sm:$0xff]   ;;  %v1102_v14 = vld [vmem:[%s1529_s3 + $0x70] sm:$0xff]   ;;  %s982_s12 = sshll.u32 %s1535_s13, 3  ;;  %v1104_v16 = vld [vmem:[%s1529_s3 + $0x68] sm:$0xff]   ;;  %v317_v49 = vshrl.u32 %v316_v48, 7 }
  0x10   : > { %v1101_v13 = vld [vmem:[%s1529_s3 + $0x38] sm:$0xff]   ;;  %1021 = vmatprep.subr.bf16.mxu1 %v1100_v12  ;;  %v1103_v15 = vld [vmem:[%s1529_s3 + $0x30] sm:$0xff]   ;;  %v1093_v17 = vld [vmem:[%s1527_s1 + $0x20] ss:$8 sps:$4 sm:$0xff]   ;;  %s1265_s29 = scalar_lea.vmem %s1526_s0, %s982_s12  ;;  %s1477_s21 = scalar_lea.vmem %s1533_s7, %s982_s12 }
  0x11   : > { %409 = vmatpush1.bf16.msra.mxu0 %v1081_v4  ;;  %1022 = vmatpush3.bf16.msra.mxu1 %v1101_v13  ;;  %v1094_v18 = vld [vmem:[%s1527_s1 + $0x14] ss:$8 sps:$4 sm:$0xff]   ;;  %v1096_v19 = vld [vmem:[%s1527_s1 + $0x10] ss:$8 sps:$4 sm:$0xff]   ;;  %v1105_v20 = vld [vmem:[%s1529_s3 + $0x28] sm:$0xff]   ;;  %v322_v50 = vsub.s32 1, %v317_v49 }
  0x12   : > { %410 = vmatprep.subr.bf16.mxu0 %v1082_v5  ;;  %1023 = vmatprep.subr.bf16.mxu1 %v1102_v14  ;;  %v1097_v21 = vld [vmem:[%s1527_s1 + $0x4] ss:$8 sps:$4 sm:$0xff]   ;;  %v1108_v24 = vld [vmem:[%s1529_s3 + $0x58] sm:$0xff]   ;;  %v1099_v25 = vld [vmem:[%s1527_s1] ss:$8 sps:$4 sm:$0xff]   ;;  %v318_v51 = vsub.s32 0, %v317_v49 }
  0x13   : > { %v1106_v22 = vld [vmem:[%s1529_s3 + $0x60] sm:$0xff]   ;;  %v1283_v27 = vld [vmem:[%s1265_s29 + $0x8] sm:$0xff]  ;;  %v1109_v28 = vld [vmem:[%s1529_s3 + $0x18] sm:$0xff]  }
  0x14   : > { %v1107_v23 = vld [vmem:[%s1529_s3 + $0x20] sm:$0xff]   ;;  %v1292_v30 = vld [vmem:[%s1265_s29 + $0x10] sm:$0xff]  ;;  %v1295_v31 = vld [vmem:[%s1265_s29 + $0x18] sm:$0xff] }
  0x15   : > { %411 = vmatpush1.bf16.msra.mxu0 %v1084_v6  ;;  %1024 = vmatpush3.bf16.msra.mxu1 %v1103_v15  ;;  %v1280_v26 = vld [vmem:[%s1265_s29] sm:$0xff]  ;;  %v294_v32 = vpack.c.bf16 %v1295_v31, %v1292_v30  ;;  %v1304_v34 = vld [vmem:[%s1265_s29 + $0x28] sm:$0xff]  ;;  %v1310_v36 = vld [vmem:[%s1265_s29 + $0x30] sm:$0xff] }
  0x16   : > { %412 = vmatprep.subr.bf16.mxu0 %v1085_v7  ;;  %1025 = vmatprep.subr.bf16.mxu1 %v1104_v16  ;;  %v293_v29 = vpack.c.bf16 %v1283_v27, %v1280_v26  ;;  %v1301_v33 = vld [vmem:[%s1265_s29 + $0x20] sm:$0xff]  ;;  %v1313_v37 = vld [vmem:[%s1265_s29 + $0x38] sm:$0xff]  ;;  %v1322_v40 = vld [vmem:[%s1265_s29 + $0x48] sm:$0xff] }
  0x17   : > { %v295_v35 = vpack.c.bf16 %v1304_v34, %v1301_v33  ;;  %v296_v38 = vpack.c.bf16 %v1313_v37, %v1310_v36  ;;  %v1319_v39 = vld [vmem:[%s1265_s29 + $0x40] sm:$0xff]  ;;  %v1110_v42 = vld [vmem:[%s1529_s3 + $0x50] sm:$0xff]   ;;  %v1112_v44 = vld [vmem:[%s1529_s3 + $0x48] sm:$0xff]  }
  0x18   : > { %v297_v41 = vpack.c.bf16 %v1322_v40, %v1319_v39  ;;  %v1111_v43 = vld [vmem:[%s1529_s3 + $0x10] sm:$0xff]   ;;  %v1113_v45 = vld [vmem:[%s1529_s3 + $0x8] sm:$0xff]   ;;  %v1114_v46 = vld [vmem:[%s1529_s3 + $0x40] sm:$0xff]  }
  0x19   : > { %413 = vmatpush1.bf16.msra.mxu0 %v1087_v8  ;;  %1026 = vmatpush3.bf16.msra.mxu1 %v1105_v20  ;;  %v1115_v47 = vld [vmem:[%s1529_s3] sm:$0xff]  }
  0x1a   : > { %414 = vmatprep.subr.bf16.mxu0 %v1088_v9  ;;  %1027 = vmatprep.subr.bf16.mxu1 %v1106_v22  ;;  %v314_v52 = vld [vmem:[%s1528_s2] sm:$0x3] }
  0x1b   : > { %v1347_v54 = vrot.slane %v314_v52, %v322_v50  ;;  %v1349_v55 = vrot.slane %v314_v52, %v318_v51 }
  0x1d   : > { %415 = vmatpush1.bf16.msra.mxu0 %v1090_v10  ;;  %1028 = vmatpush3.bf16.msra.mxu1 %v1107_v23 }
  0x1e   : > { %416 = vmatprep.subr.bf16.mxu0 %v1091_v11  ;;  %1029 = vmatprep.subr.bf16.mxu1 %v1108_v24 }
  0x21   : > { %417 = vmatpush1.bf16.msra.mxu0 %v1093_v17  ;;  %1030 = vmatpush3.bf16.msra.mxu1 %v1109_v28 }
  0x22   : > { %418 = vmatprep.subr.bf16.mxu0 %v1094_v18  ;;  %1031 = vmatprep.subr.bf16.mxu1 %v1110_v42 }
  0x25   : > { %419 = vmatpush1.bf16.msra.mxu0 %v1096_v19  ;;  %1032 = vmatpush3.bf16.msra.mxu1 %v1111_v43 }
  0x26   : > { %420 = vmatprep.subr.bf16.mxu0 %v1097_v21  ;;  %1033 = vmatprep.subr.bf16.mxu1 %v1112_v44 }
  0x29   : > { %421 = vmatpush1.bf16.msra.mxu0 %v1099_v25  ;;  %1034 = vmatpush3.bf16.msra.mxu1 %v1113_v45 }
  0x2a   : > { %1035 = vmatprep.subr.bf16.mxu1 %v1114_v46 }
  0x2c   : > { %439 = vmatmul.mubr.bf16.vlgmr.msra.gmra.mxu0 %v293_v29 }
  0x2d   : > { %448 = vmatprep.mubr.bf16.mxu0 %v1144_v2  ;;  %1036 = vmatpush3.bf16.msra.mxu1 %v1115_v47 }
  0x34   : > { %449 = vmatmul.mubr.bf16.gmra.mxu0 %v294_v32 }
  0x35   : > { %458 = vmatprep.mubr.bf16.mxu0 %v1144_v2 }
  0x3c   : > { %459 = vmatmul.mubr.bf16.gmra.mxu0 %v295_v35 }
  0x3d   : > { %468 = vmatprep.mubr.bf16.mxu0 %v1144_v2 }
  0x44   : > { %469 = vmatmul.mubr.bf16.gmra.mxu0 %v296_v38 }
  0x45   : > { %478 = vmatprep.mubr.bf16.mxu0 %v1144_v2 }
  0x4c   : > { %479 = vmatmul.mubr.bf16.gmra.mxu0 %v297_v41 }
  0xec   : > { %v440_v53 = vpop.f32.mrf.mxu0 }
  0xed   : > { %v441_v60 = vadd.f32 %v440_v53, %v1349_v55 }
  0xee   : > { %v442_v56 = vpop.f32.mrf.mxu0 }
  0xef   : > { %v443_v58 = vadd.f32 %v442_v56, %v1347_v54  ;;  %v489_v3 = vmax.f32 %v441_v60, 0.0 }
  0xf0   : > { %v444_v57 = vpop.f32.mrf.mxu0 }
  0xf1   : > { %v445_v59 = vadd.f32 %v444_v57, %v1349_v55  ;;  %v490_v1 = vmax.f32 %v443_v58, 0.0 }
  0xf2   : > { %v446_v61 = vpop.f32.mrf.mxu0 }
  0xf3   : > { %v447_v62 = vadd.f32 %v446_v61, %v1347_v54  ;;  %v491_v63 = vmax.f32 %v445_v59, 0.0 }
  0xf4   : > { %v450_v0 = vpop.f32.mrf.mxu0 }
  0xf5   : > { %v492_v2 = vmax.f32 %v447_v62, 0.0  ;;  %v509_v6 = vpack.c.bf16 %v491_v63, %v489_v3  ;;  %v451_v10 = vadd.f32 %v450_v0, %v1349_v55 }
  0xf6   : > { %v452_v4 = vpop.f32.mrf.mxu0 }
  0xf7   : > { %v510_v5 = vpack.c.bf16 %v492_v2, %v490_v1  ;;  %v453_v8 = vadd.f32 %v452_v4, %v1347_v54  ;;  %v493_v17 = vmax.f32 %v451_v10, 0.0 }
  0xf8   : > { %v454_v7 = vpop.f32.mrf.mxu0 }
  0xf9   : > { %v455_v9 = vadd.f32 %v454_v7, %v1349_v55  ;;  %679 = vmatprep.mubr.bf16.mxu1 %v510_v5  ;;  %v494_v15 = vmax.f32 %v453_v8, 0.0 }
  0xfa   : > { %v456_v11 = vpop.f32.mrf.mxu0  ;;  %680 = vmatmul.mubr.bf16.vlgmr.msra.gmra.mxu1 %v509_v6 }
  0xfb   : > { %v457_v12 = vadd.f32 %v456_v11, %v1347_v54  ;;  %v495_v13 = vmax.f32 %v455_v9, 0.0 }
  0xfc   : > { %v460_v14 = vpop.f32.mrf.mxu0 }
  0xfd   : > { %v496_v16 = vmax.f32 %v457_v12, 0.0  ;;  %v511_v20 = vpack.c.bf16 %v495_v13, %v493_v17  ;;  %v461_v24 = vadd.f32 %v460_v14, %v1349_v55 }
  0xfe   : > { %v462_v18 = vpop.f32.mrf.mxu0 }
  0xff   : > { %v512_v19 = vpack.c.bf16 %v496_v16, %v494_v15  ;;  %v463_v22 = vadd.f32 %v462_v18, %v1347_v54  ;;  %v497_v41 = vmax.f32 %v461_v24, 0.0 }
 0x100   : > { %v464_v21 = vpop.f32.mrf.mxu0 }
 0x101   : > { %v465_v23 = vadd.f32 %v464_v21, %v1349_v55  ;;  %687 = vmatprep.mubr.bf16.mxu1 %v512_v19  ;;  %v498_v35 = vmax.f32 %v463_v22, 0.0 }
 0x102   : > { %v466_v25 = vpop.f32.mrf.mxu0  ;;  %688 = vmatmul.mubr.bf16.gmra.mxu1 %v511_v20 }
 0x103   : > { %v467_v28 = vadd.f32 %v466_v25, %v1347_v54  ;;  %v499_v29 = vmax.f32 %v465_v23, 0.0 }
 0x104   : > { %v470_v32 = vpop.f32.mrf.mxu0 }
 0x105   : > { %v500_v38 = vmax.f32 %v467_v28, 0.0  ;;  %v513_v44 = vpack.c.bf16 %v499_v29, %v497_v41  ;;  %v471_v48 = vadd.f32 %v470_v32, %v1349_v55 }
 0x106   : > { %v472_v42 = vpop.f32.mrf.mxu0 }
 0x107   : > { %v514_v43 = vpack.c.bf16 %v500_v38, %v498_v35  ;;  %v473_v46 = vadd.f32 %v472_v42, %v1347_v54  ;;  %v501_v57 = vmax.f32 %v471_v48, 0.0 }
 0x108   : > { %v474_v45 = vpop.f32.mrf.mxu0 }
 0x109   : > { %v475_v47 = vadd.f32 %v474_v45, %v1349_v55  ;;  %695 = vmatprep.mubr.bf16.mxu1 %v514_v43  ;;  %v502_v53 = vmax.f32 %v473_v46, 0.0 }
 0x10a   : > { %v476_v49 = vpop.f32.mrf.mxu0  ;;  %696 = vmatmul.mubr.bf16.gmra.mxu1 %v513_v44 }
 0x10b   : > { %v477_v50 = vadd.f32 %v476_v49, %v1347_v54  ;;  %v503_v51 = vmax.f32 %v475_v47, 0.0 }
 0x10c   : > { %v480_v52 = vpop.f32.mrf.mxu0 }
 0x10d   : > { %v504_v56 = vmax.f32 %v477_v50, 0.0  ;;  %v515_v60 = vpack.c.bf16 %v503_v51, %v501_v57  ;;  %v481_v0 = vadd.f32 %v480_v52, %v1349_v55 }
 0x10e   : > { %v482_v58 = vpop.f32.mrf.mxu0 }
 0x10f   : > { %v516_v59 = vpack.c.bf16 %v504_v56, %v502_v53  ;;  %v483_v62 = vadd.f32 %v482_v58, %v1347_v54  ;;  %v505_v6 = vmax.f32 %v481_v0, 0.0 }
 0x110   : > { %v484_v61 = vpop.f32.mrf.mxu0 }
 0x111   : > { %v485_v63 = vadd.f32 %v484_v61, %v1349_v55  ;;  %703 = vmatprep.mubr.bf16.mxu1 %v516_v59  ;;  %v506_v4 = vmax.f32 %v483_v62, 0.0  ;;  %v1374_v55 = vld [vmem:[%s1530_s4] ss:$0 sm:$0xff] }
 0x112   : > { %v486_v1 = vpop.f32.mrf.mxu0  ;;  %704 = vmatmul.mubr.bf16.gmra.mxu1 %v515_v60 }
 0x113   : > { %v487_v2 = vadd.f32 %v486_v1, %v1347_v54  ;;  %v507_v3 = vmax.f32 %v485_v63, 0.0 }
 0x115   : > { %v508_v5 = vmax.f32 %v487_v2, 0.0  ;;  %v517_v8 = vpack.c.bf16 %v507_v3, %v505_v6 }
 0x117   : > { %v518_v7 = vpack.c.bf16 %v508_v5, %v506_v4 }
 0x119   : > { %711 = vmatprep.mubr.bf16.mxu1 %v518_v7 }
 0x11a   : > { %712 = vmatmul.mubr.bf16.gmra.mxu1 %v517_v8 }
 0x1ba   : > { %v1037_v9 = vpop.f32.mrf.mxu1 }
 0x1bc   : > { %v1038_v10 = vpop.f32.mrf.mxu1 }
 0x1bd   : > { %v1039_v11 = vadd.f32 %v1038_v10, %v1037_v9 }
 0x1be   : > { %v1040_v12 = vpop.f32.mrf.mxu1 }
 0x1bf   : > { %v720_v13 = vadd.f32 %v1039_v11, %v1280_v26 }
 0x1c0   : > { %v1041_v54 = vpop.f32.mrf.mxu1 }
 0x1c1   : > { %v1042_v14 = vadd.f32 %v1041_v54, %v1040_v12  ;;  %v1378_v15 = vadd.f32 %v1374_v55, %v720_v13 }
 0x1c2   : > { %v1043_v16 = vpop.f32.mrf.mxu1 }
 0x1c3   : > { %v721_v17 = vadd.f32 %v1042_v14, %v1283_v27  ;;  %749 = vadd.xlane.f32.xlu0 %v1378_v15  ;;  %v769_v20 = vmul.f32 %v1378_v15, %v1378_v15 }
 0x1c4   : > { %v1044_v18 = vpop.f32.mrf.mxu1 }
 0x1c5   : > { %v1045_v19 = vadd.f32 %v1044_v18, %v1043_v16  ;;  %v1385_v21 = vadd.f32 %v1374_v55, %v721_v17 }
 0x1c6   : > { %v1046_v22 = vpop.f32.mrf.mxu1 }
 0x1c7   : > { %v722_v26 = vadd.f32 %v1045_v19, %v1292_v30  ;;  %779 = vadd.xlane.f32.xlu0 %v769_v20  ;;  %v770_v23 = vmul.f32 %v1385_v21, %v1385_v21 }
 0x1c8   : > { %v1047_v24 = vpop.f32.mrf.mxu1 }
 0x1c9   : > { %v1048_v25 = vadd.f32 %v1047_v24, %v1046_v22  ;;  %781 = vadd.xlane.f32.xlu1 %v770_v23  ;;  %v1391_v27 = vadd.f32 %v1374_v55, %v722_v26 }
 0x1ca   : > { %v1049_v28 = vpop.f32.mrf.mxu1 }
 0x1cb   : > { %v723_v29 = vadd.f32 %v1048_v25, %v1295_v31  ;;  %751 = vadd.xlane.f32.xlu0 %v1385_v21  ;;  %v771_v30 = vmul.f32 %v1391_v27, %v1391_v27 }
 0x1cc   : > { %v1050_v32 = vpop.f32.mrf.mxu1 }
 0x1cd   : > { %v1051_v35 = vadd.f32 %v1050_v32, %v1049_v28  ;;  %753 = vadd.xlane.f32.xlu1 %v1391_v27  ;;  %v1400_v42 = vadd.f32 %v1374_v55, %v723_v29 }
 0x1ce   : > { %v1052_v38 = vpop.f32.mrf.mxu1 }
 0x1cf   : > { %v724_v41 = vadd.f32 %v1051_v35, %v1301_v33  ;;  %783 = vadd.xlane.f32.xlu0 %v771_v30  ;;  %v772_v47 = vmul.f32 %v1400_v42, %v1400_v42 }
 0x1d0   : > { %v1053_v43 = vpop.f32.mrf.mxu1 }
 0x1d1   : > { %v1054_v44 = vadd.f32 %v1053_v43, %v1052_v38  ;;  %755 = vadd.xlane.f32.xlu1 %v1400_v42  ;;  %v1404_v31 = vadd.f32 %v1374_v55, %v724_v41 }
 0x1d2   : > { %v1055_v45 = vpop.f32.mrf.mxu1 }
 0x1d3   : > { %v725_v46 = vadd.f32 %v1054_v44, %v1304_v34  ;;  %757 = vadd.xlane.f32.xlu0 %v1404_v31  ;;  %v773_v49 = vmul.f32 %v1404_v31, %v1404_v31 }
 0x1d4   : > { %v1056_v33 = vpop.f32.mrf.mxu1 }
 0x1d5   : > { %v1057_v48 = vadd.f32 %v1056_v33, %v1055_v45  ;;  %785 = vadd.xlane.f32.xlu1 %v772_v47  ;;  %v1414_v52 = vadd.f32 %v1374_v55, %v725_v46 }
 0x1d6   : > { %v1058_v50 = vpop.f32.mrf.mxu1 }
 0x1d7   : > { %v726_v51 = vadd.f32 %v1057_v48, %v1310_v36  ;;  %787 = vadd.xlane.f32.xlu0 %v773_v49  ;;  %v774_v59 = vmul.f32 %v1414_v52, %v1414_v52 }
 0x1d8   : > { %v1059_v53 = vpop.f32.mrf.mxu1 }
 0x1d9   : > { %v1060_v34 = vadd.f32 %v1059_v53, %v1058_v50  ;;  %759 = vadd.xlane.f32.xlu1 %v1414_v52  ;;  %v1418_v56 = vadd.f32 %v1374_v55, %v726_v51  ;;  %v1460_v53 = vld [vmem:[%s1531_s5] ss:$0 sm:$0xff] }
 0x1da   : > { %v1061_v57 = vpop.f32.mrf.mxu1 }
 0x1db   : > { %v727_v58 = vadd.f32 %v1060_v34, %v1313_v37  ;;  %761 = vadd.xlane.f32.xlu0 %v1418_v56  ;;  %v775_v61 = vmul.f32 %v1418_v56, %v1418_v56 }
 0x1dc   : > { %v1062_v36 = vpop.f32.mrf.mxu1 }
 0x1dd   : > { %v1063_v60 = vadd.f32 %v1062_v36, %v1061_v57  ;;  %789 = vadd.xlane.f32.xlu1 %v774_v59  ;;  %v1428_v0 = vadd.f32 %v1374_v55, %v727_v58  ;;  %v1465_v59 = vld [vmem:[%s1532_s6] ss:$0 sm:$0xff] }
 0x1de   : > { %v1064_v62 = vpop.f32.mrf.mxu1 }
 0x1df   : > { %v728_v63 = vadd.f32 %v1063_v60, %v1319_v39  ;;  %791 = vadd.xlane.f32.xlu0 %v775_v61  ;;  %v776_v4 = vmul.f32 %v1428_v0, %v1428_v0 }
 0x1e0   : > { %v1065_v1 = vpop.f32.mrf.mxu1 }
 0x1e1   : > { %v1066_v37 = vadd.f32 %v1065_v1, %v1064_v62  ;;  %763 = vadd.xlane.f32.xlu1 %v1428_v0  ;;  %v1432_v2 = vadd.f32 %v1374_v55, %v728_v63 }
 0x1e3   : > { %v729_v3 = vadd.f32 %v1066_v37, %v1322_v40  ;;  %765 = vadd.xlane.f32.xlu0 %v1432_v2  ;;  %v777_v39 = vmul.f32 %v1432_v2, %v1432_v2 }
 0x1e5   : > { %793 = vadd.xlane.f32.xlu1 %v776_v4  ;;  %v1441_v5 = vadd.f32 %v1374_v55, %v729_v3 }
 0x1e7   : > { %795 = vadd.xlane.f32.xlu0 %v777_v39  ;;  %v778_v6 = vmul.f32 %v1441_v5, %v1441_v5 }
 0x1e9   : > { %767 = vadd.xlane.f32.xlu1 %v1441_v5 }
 0x1ed   : > { %797 = vadd.xlane.f32.xlu1 %v778_v6 }
 0x24c   : > { %v750_v40 = vpop.xlane.xlu0 %749 }
 0x24d   : > { %v799_v7 = vmul.f32 0.0078125, %v750_v40 }
 0x24f   : > { %v819_v9 = vmul.f32 %v799_v7, %v799_v7  ;;  %v839_v33 = vsub.f32 %v1378_v15, %v799_v7 }
 0x250   : > { %v780_v8 = vpop.xlane.xlu0 %779 }
 0x251   : > { %v809_v10 = vmul.f32 0.0078125, %v780_v8 }
 0x252   : > { %v782_v11 = vpop.xlane.xlu1 %781 }
 0x253   : > { %v829_v12 = vsub.f32 %v809_v10, %v819_v9  ;;  %v810_v55 = vmul.f32 0.0078125, %v782_v11 }
 0x254   : > { %v752_v13 = vpop.xlane.xlu0 %751 }
 0x255   : > { %v849_v54 = vadd.f32 1e-05, %v829_v12  ;;  %v800_v14 = vmul.f32 0.0078125, %v752_v13 }
 0x256   : > { %v754_v16 = vpop.xlane.xlu1 %753 }
 0x257   : > { %1116 = vrsqrt.f32 %v849_v54  ;;  %v820_v17 = vmul.f32 %v800_v14, %v800_v14  ;;  %v801_v18 = vmul.f32 0.0078125, %v754_v16  ;;  %v840_v63 = vsub.f32 %v1385_v21, %v800_v14 }
 0x258   : > { %v784_v19 = vpop.xlane.xlu0 %783 }
 0x259   : > { %v830_v20 = vsub.f32 %v810_v55, %v820_v17  ;;  %v821_v22 = vmul.f32 %v801_v18, %v801_v18  ;;  %v811_v26 = vmul.f32 0.0078125, %v784_v19  ;;  %v841_v40 = vsub.f32 %v1391_v27, %v801_v18 }
 0x25a   : > { %v756_v23 = vpop.xlane.xlu1 %755 }
 0x25b   : > { %v850_v24 = vadd.f32 1e-05, %v830_v20  ;;  %v831_v25 = vsub.f32 %v811_v26, %v821_v22  ;;  %v1446_v28 = vmul.f32 0.0078125, %v756_v23 }
 0x25c   : > { %v758_v29 = vpop.xlane.xlu0 %757 }
 0x25d   : > { %1118 = vrsqrt.f32 %v850_v24  ;;  %v851_v32 = vadd.f32 1e-05, %v831_v25  ;;  %v1448_v35 = vmul.f32 0.0078125, %v758_v29  ;;  %v822_v38 = vmul.f32 %v1446_v28, %v1446_v28 }
 0x25e   : > { %v786_v30 = vpop.xlane.xlu1 %785  ;;  %v842_v20 = vsub.f32 %v1400_v42, %v1446_v28 }
 0x25f   : > { %1120 = vrsqrt.f32 %v851_v32  ;;  %v812_v41 = vmul.f32 0.0078125, %v786_v30  ;;  %v823_v44 = vmul.f32 %v1448_v35, %v1448_v35  ;;  %v843_v32 = vsub.f32 %v1404_v31, %v1448_v35 }
 0x260   : > { %v788_v43 = vpop.xlane.xlu0 %787 }
 0x261   : > { %v832_v45 = vsub.f32 %v812_v41, %v822_v38  ;;  %v813_v46 = vmul.f32 0.0078125, %v788_v43 }
 0x262   : > { %v760_v47 = vpop.xlane.xlu1 %759 }
 0x263   : > { %v852_v48 = vadd.f32 1e-05, %v832_v45  ;;  %v833_v49 = vsub.f32 %v813_v46, %v823_v44  ;;  %v1455_v50 = vmul.f32 0.0078125, %v760_v47 }
 0x264   : > { %v1117_v51 = vpop.eup %1116  ;;  %v762_v34 = vpop.xlane.xlu0 %761 }
 0x265   : > { %v869_v57 = vmul.f32 %v1117_v51, %v839_v33  ;;  %1122 = vrsqrt.f32 %v852_v48  ;;  %v853_v58 = vadd.f32 1e-05, %v833_v49  ;;  %v1467_v15 = vmul.f32 0.0078125, %v762_v34 }
 0x266   : > { %v790_v36 = vpop.xlane.xlu1 %789  ;;  %v824_v61 = vmul.f32 %v1455_v50, %v1455_v50  ;;  %v844_v51 = vsub.f32 %v1414_v52, %v1455_v50 }
 0x267   : > { %v885_v60 = vmul.f32 %v1460_v53, %v869_v57  ;;  %1124 = vrsqrt.f32 %v853_v58  ;;  %v814_v62 = vmul.f32 0.0078125, %v790_v36  ;;  %v825_v3 = vmul.f32 %v1467_v15, %v1467_v15 }
 0x268   : > { %v792_v1 = vpop.xlane.xlu0 %791  ;;  %v845_v58 = vsub.f32 %v1418_v56, %v1467_v15 }
 0x269   : > { %v901_v37 = vadd.f32 %v1465_v59, %v885_v60  ;;  %v834_v4 = vsub.f32 %v814_v62, %v824_v61  ;;  %v815_v39 = vmul.f32 0.0078125, %v792_v1 }
 0x26a   : > { %v1119_v6 = vpop.eup %1118  ;;  %v764_v7 = vpop.xlane.xlu1 %763 }
 0x26b   : > { %911 = vst [vmem:[%s1477_s21] sm:$0xff] %v901_v37  ;;  %v870_v8 = vmul.f32 %v1119_v6, %v840_v63  ;;  %v854_v9 = vadd.f32 1e-05, %v834_v4  ;;  %v835_v10 = vsub.f32 %v815_v39, %v825_v3  ;;  %v806_v11 = vmul.f32 0.0078125, %v764_v7 }
 0x26c   : > { %v1121_v12 = vpop.eup %1120  ;;  %v766_v21 = vpop.xlane.xlu0 %765 }
 0x26d   : > { %v886_v13 = vmul.f32 %v1460_v53, %v870_v8  ;;  %v871_v54 = vmul.f32 %v1121_v12, %v841_v40  ;;  %1126 = vrsqrt.f32 %v854_v9  ;;  %v855_v14 = vadd.f32 1e-05, %v835_v10 }
 0x26e   : > { %v826_v16 = vmul.f32 %v806_v11, %v806_v11  ;;  %v807_v55 = vmul.f32 0.0078125, %v766_v21  ;;  %v794_v17 = vpop.xlane.xlu1 %793  ;;  %v846_v50 = vsub.f32 %v1428_v0, %v806_v11 }
 0x26f   : > { %v902_v27 = vadd.f32 %v1465_v59, %v886_v13  ;;  %v887_v18 = vmul.f32 %v1460_v53, %v871_v54  ;;  %1128 = vrsqrt.f32 %v855_v14  ;;  %v816_v19 = vmul.f32 0.0078125, %v794_v17 }
 0x270   : > { %v796_v22 = vpop.xlane.xlu0 %795  ;;  %v827_v23 = vmul.f32 %v807_v55, %v807_v55  ;;  %v847_v56 = vsub.f32 %v1432_v2, %v807_v55 }
 0x271   : > { %912 = vst [vmem:[%s1477_s21 + $0x8] sm:$0xff] %v902_v27  ;;  %v903_v26 = vadd.f32 %v1465_v59, %v887_v18  ;;  %v836_v24 = vsub.f32 %v816_v19, %v826_v16  ;;  %v817_v25 = vmul.f32 0.0078125, %v796_v22 }
 0x272   : > { %v1123_v29 = vpop.eup %1122  ;;  %v768_v30 = vpop.xlane.xlu1 %767 }
 0x273   : > { %913 = vst [vmem:[%s1477_s21 + $0x10] sm:$0xff] %v903_v26  ;;  %v872_v38 = vmul.f32 %v1123_v29, %v842_v20  ;;  %v856_v41 = vadd.f32 1e-05, %v836_v24  ;;  %v837_v43 = vsub.f32 %v817_v25, %v827_v23  ;;  %v808_v44 = vmul.f32 0.0078125, %v768_v30 }
 0x274   : > { %v1125_v45 = vpop.eup %1124 }
 0x275   : > { %v888_v42 = vmul.f32 %v1460_v53, %v872_v38  ;;  %v873_v28 = vmul.f32 %v1125_v45, %v843_v32  ;;  %1130 = vrsqrt.f32 %v856_v41  ;;  %v857_v46 = vadd.f32 1e-05, %v837_v43 }
 0x276   : > { %v828_v47 = vmul.f32 %v808_v44, %v808_v44  ;;  %v798_v33 = vpop.xlane.xlu1 %797  ;;  %v848_v9 = vsub.f32 %v1441_v5, %v808_v44 }
 0x277   : > { %v904_v48 = vadd.f32 %v1465_v59, %v888_v42  ;;  %v889_v31 = vmul.f32 %v1460_v53, %v873_v28  ;;  %1132 = vrsqrt.f32 %v857_v46  ;;  %v818_v35 = vmul.f32 0.0078125, %v798_v33 }
 0x279   : > { %914 = vst [vmem:[%s1477_s21 + $0x18] sm:$0xff] %v904_v48  ;;  %v905_v49 = vadd.f32 %v1465_v59, %v889_v31  ;;  %v838_v34 = vsub.f32 %v818_v35, %v828_v47 }
 0x27a   : > { %v1127_v57 = vpop.eup %1126 }
 0x27b   : > { %915 = vst [vmem:[%s1477_s21 + $0x20] sm:$0xff] %v905_v49  ;;  %v874_v36 = vmul.f32 %v1127_v57, %v844_v51  ;;  %v858_v60 = vadd.f32 1e-05, %v838_v34 }
 0x27c   : > { %v1129_v61 = vpop.eup %1128 }
 0x27d   : > { %v890_v62 = vmul.f32 %v1460_v53, %v874_v36  ;;  %v875_v63 = vmul.f32 %v1129_v61, %v845_v58  ;;  %1134 = vrsqrt.f32 %v858_v60 }
 0x27f   : > { %v906_v1 = vadd.f32 %v1465_v59, %v890_v62  ;;  %v891_v37 = vmul.f32 %v1460_v53, %v875_v63 }
 0x281   : > { %916 = vst [vmem:[%s1477_s21 + $0x28] sm:$0xff] %v906_v1  ;;  %v907_v52 = vadd.f32 %v1465_v59, %v891_v37 }
 0x282   : > { %v1131_v3 = vpop.eup %1130 }
 0x283   : > { %917 = vst [vmem:[%s1477_s21 + $0x30] sm:$0xff] %v907_v52  ;;  %v876_v15 = vmul.f32 %v1131_v3, %v846_v50 }
 0x284   : > { %v1133_v4 = vpop.eup %1132 }
 0x285   : > { %v892_v39 = vmul.f32 %v1460_v53, %v876_v15  ;;  %v877_v6 = vmul.f32 %v1133_v4, %v847_v56 }
 0x287   : > { %v908_v40 = vadd.f32 %v1465_v59, %v892_v39  ;;  %v893_v7 = vmul.f32 %v1460_v53, %v877_v6 }
 0x289   : > { %918 = vst [vmem:[%s1477_s21 + $0x38] sm:$0xff] %v908_v40  ;;  %v909_v8 = vadd.f32 %v1465_v59, %v893_v7 }
 0x28a   : > { %v1135_v0 = vpop.eup %1134 }
 0x28b   : > { %919 = vst [vmem:[%s1477_s21 + $0x40] sm:$0xff] %v909_v8  ;;  %v878_v10 = vmul.f32 %v1135_v0, %v848_v9 }
 0x28d   : > { %v894_v11 = vmul.f32 %v1460_v53, %v878_v10 }
 0x28f   : > { %v910_v2 = vadd.f32 %v1465_v59, %v894_v11 }
 0x291   : > { %920 = vst [vmem:[%s1477_s21 + $0x48] sm:$0xff] %v910_v2 }
 0x292 PF: > { %s17_s24 = sadd.s32 1, %s1142_s24  }
 0x293   : > { %p14_p4 = scmp.ge.s32.totalorder %s17_s24, 4  }
 0x295   :  { %16 = sbr.rel (!%p14_p4) target bundleno = 1 (0x1), region = 78 }

// kernel: _lambda_.8
= control target key start
LH: loop header
LB: loop body
LE: loop exit
PB: predicated region body
PF: predicated region fallthrough
CT: control target
= control target key end

     0   :  { %s878_s21 = smov 0   ;;  %s1112_s0 = inlined_call_operand.vmem [shape: f32[160,128], index: 0, kind: input, shape index: {}]   ;;  %s1113_s1 = inlined_call_operand.vmem [shape: f32[160,128], index: 1, kind: input, shape index: {}]   ;;  %s1114_s2 = inlined_call_operand.vmem [shape: bf16[128,128], index: 2, kind: input, shape index: {}]   ;;  %s1115_s3 = inlined_call_operand.vmem [shape: f32[1,128], index: 3, kind: input, shape index: {}, may-alias: {3,5}]   ;;  %s1116_s4 = inlined_call_operand.vmem [shape: f32[1,128], index: 4, kind: input, shape index: {}]   ;;  %s1117_s5 = inlined_call_operand.vmem [shape: f32[1,128], index: 5, kind: input, shape index: {}, may-alias: {3,5}]   ;;  %s1118_s6 = inlined_call_operand.vmem [shape: f32[160,128], index: 6, kind: output, shape index: {}]  }
   0x1 LB: > { %s709_s22 = sadd.s32 4294967295, %s839_s21   ;;  %p713_p0 = scmp.ge.s32.totalorder %s839_s21, 1  ;;  %s839_s21 = sphi %s878_s21, %s16_s21  }
   0x2   : > { %p224_p1 = scmp.lt.s32.totalorder %s839_s21, 3 }
   0x4   : > { %p225_p2 = pnand %p713_p0, %p224_p1 }
   0x5   : > { %s259_s29 = smul.u32 (!%p225_p2), 10, %s709_s22 }
   0x6   : > { %228 = sbr.rel (%p225_p2) target bundleno = 446 (0x1be), region = 44 }
   0x7   : > { %p260_p3 = scmp.lt.s32.totalorder (!%p225_p2), %s259_s29, 19 }
   0xb   : > { %v805_v0 = vld [vmem:[%s1114_s2 + $0x38] sm:$0xff]   ;;  %v841_v1 = vmov 0.0   ;;  %v806_v2 = vld [vmem:[%s1114_s2 + $0x30] sm:$0xff]   ;;  %vm842_vm0 = vmmov 0   ;;  %v807_v3 = vld [vmem:[%s1114_s2 + $0x28] sm:$0xff]   ;;  %s1120_s29 = smov (!%p260_p3, %s259_s29), 19 }
   0xc   : > { %743 = vmatprep.subr.bf16.mxu0 %v841_v1  ;;  %779 = vmatprep.subr.bf16.mxu1 %v841_v1  ;;  %v808_v4 = vld [vmem:[%s1114_s2 + $0x20] sm:$0xff]   ;;  %v809_v5 = vld [vmem:[%s1114_s2 + $0x18] sm:$0xff]   ;;  %v810_v6 = vld [vmem:[%s1114_s2 + $0x10] sm:$0xff]   ;;  %s920_s12 = sshll.u32 %s1120_s29, 3 }
   0xd   : > { %744 = vmatpush3.bf16.msra.mxu0 %v805_v0  ;;  %787 = vmatpush3.bf16.msra.mxu1 %v805_v0  ;;  %v811_v7 = vld [vmem:[%s1114_s2 + $0x8] sm:$0xff]   ;;  %s263_s17 = scalar_lea.vmem %s1112_s0, %s920_s12  ;;  %v812_v8 = vld [vmem:[%s1114_s2] sm:$0xff]   ;;  %s946_s23 = scalar_lea.vmem %s1113_s1, %s920_s12 }
   0xe   : > { %745 = vmatprep.subr.bf16.mxu0 %v841_v1  ;;  %780 = vmatprep.subr.bf16.mxu1 %v841_v1  ;;  %v288_v9 = vld [vmem:[%s263_s17] sm:$0xff]  ;;  %v289_v10 = vld [vmem:[%s263_s17 + $0x8] sm:$0xff]  ;;  %v294_v11 = vld [vmem:[%s263_s17 + $0x30] sm:$0xff]  ;;  %s1058_s8 = scalar_lea.vmem %s1118_s6, %s920_s12 }
   0xf   : > { %759 = vmatprep.mubr.msk.bf16.mxu0 %vm842_vm0, %v841_v1  ;;  %771 = vmatprep.mubr.msk.bf16.mxu1 %vm842_vm0, %v841_v1  ;;  %v295_v12 = vld [vmem:[%s263_s17 + $0x38] sm:$0xff]  ;;  %v298_v13 = vpack.c.bf16 %v289_v10, %v288_v9  ;;  %v290_v15 = vld [vmem:[%s263_s17 + $0x10] sm:$0xff]  ;;  %v296_v17 = vld [vmem:[%s263_s17 + $0x40] sm:$0xff] }
  0x10   : > { %v301_v14 = vpack.c.bf16 %v295_v12, %v294_v11  ;;  %v291_v16 = vld [vmem:[%s263_s17 + $0x18] sm:$0xff]  ;;  %v297_v18 = vld [vmem:[%s263_s17 + $0x48] sm:$0xff]  ;;  %v292_v21 = vld [vmem:[%s263_s17 + $0x20] sm:$0xff] }
  0x11   : > { %746 = vmatpush3.bf16.msra.mxu0 %v806_v2  ;;  %788 = vmatpush3.bf16.msra.mxu1 %v806_v2  ;;  %v299_v19 = vpack.c.bf16 %v291_v16, %v290_v15  ;;  %v302_v20 = vpack.c.bf16 %v297_v18, %v296_v17  ;;  %v293_v22 = vld [vmem:[%s263_s17 + $0x28] sm:$0xff]  ;;  %v278_v24 = vld [vmem:[%s946_s23] sm:$0xff]  ;;  %v284_v27 = vld [vmem:[%s946_s23 + $0x30] sm:$0xff] }
  0x12   : > { %747 = vmatprep.subr.bf16.mxu0 %v841_v1  ;;  %781 = vmatprep.subr.bf16.mxu1 %v841_v1  ;;  %v300_v23 = vpack.c.bf16 %v293_v22, %v292_v21  ;;  %v952_v26 = vld [vmem:[%s1115_s3] ss:$0 sm:$0xff]  ;;  %v279_v32 = vld [vmem:[%s946_s23 + $0x8] sm:$0xff]  ;;  %v285_v33 = vld [vmem:[%s946_s23 + $0x38] sm:$0xff] }
  0x13   : > { %v280_v47 = vld [vmem:[%s946_s23 + $0x10] sm:$0xff]  ;;  %v286_v55 = vld [vmem:[%s946_s23 + $0x40] sm:$0xff]  ;;  %v281_v60 = vld [vmem:[%s946_s23 + $0x18] sm:$0xff] }
  0x14   : > { %v287_v2 = vld [vmem:[%s946_s23 + $0x48] sm:$0xff] }
  0x15   : > { %748 = vmatpush3.bf16.msra.mxu0 %v807_v3  ;;  %789 = vmatpush3.bf16.msra.mxu1 %v807_v3  ;;  %v283_v12 = vld [vmem:[%s946_s23 + $0x28] sm:$0xff] }
  0x16   : > { %749 = vmatprep.subr.bf16.mxu0 %v841_v1  ;;  %782 = vmatprep.subr.bf16.mxu1 %v841_v1 }
  0x19   : > { %750 = vmatpush3.bf16.msra.mxu0 %v808_v4  ;;  %790 = vmatpush3.bf16.msra.mxu1 %v808_v4 }
  0x1a   : > { %751 = vmatprep.subr.bf16.mxu0 %v841_v1  ;;  %783 = vmatprep.subr.bf16.mxu1 %v841_v1 }
  0x1d   : > { %752 = vmatpush3.bf16.msra.mxu0 %v809_v5  ;;  %791 = vmatpush3.bf16.msra.mxu1 %v809_v5  ;;  %v282_v5 = vld [vmem:[%s946_s23 + $0x20] sm:$0xff] }
  0x1e   : > { %753 = vmatprep.subr.bf16.mxu0 %v841_v1  ;;  %784 = vmatprep.subr.bf16.mxu1 %v841_v1 }
  0x21   : > { %754 = vmatpush3.bf16.msra.mxu0 %v810_v6  ;;  %792 = vmatpush3.bf16.msra.mxu1 %v810_v6 }
  0x22   : > { %755 = vmatprep.subr.bf16.mxu0 %v841_v1  ;;  %785 = vmatprep.subr.bf16.mxu1 %v841_v1 }
  0x25   : > { %756 = vmatpush3.bf16.msra.mxu0 %v811_v7  ;;  %793 = vmatpush3.bf16.msra.mxu1 %v811_v7 }
  0x26   : > { %757 = vmatprep.subr.bf16.mxu0 %v841_v1  ;;  %786 = vmatprep.subr.bf16.mxu1 %v841_v1 }
  0x29   : > { %758 = vmatpush3.bf16.msra.mxu0 %v812_v8  ;;  %794 = vmatpush3.bf16.msra.mxu1 %v812_v8 }
  0x2c   : > { %760 = vmatmul.mubr.bf16.vlgmr.msra.gmra.mxu0 %v298_v13  ;;  %772 = vmatmul.mubr.bf16.vlgmr.msra.gmra.mxu1 %v301_v14 }
  0x2d   : > { %763 = vmatprep.mubr.msk.bf16.mxu0 %vm842_vm0, %v841_v1  ;;  %775 = vmatprep.mubr.msk.bf16.mxu1 %vm842_vm0, %v841_v1 }
  0x34   : > { %764 = vmatmul.mubr.bf16.gmra.mxu0 %v299_v19  ;;  %776 = vmatmul.mubr.bf16.gmra.mxu1 %v302_v20 }
  0x35   : > { %767 = vmatprep.mubr.msk.bf16.mxu0 %vm842_vm0, %v841_v1 }
  0x3c   : > { %768 = vmatmul.mubr.bf16.gmra.mxu0 %v300_v23 }
  0xec   : > { %v401_v25 = vpop.f32.mrf.mxu0  ;;  %v425_v28 = vpop.f32.mrf.mxu1 }
  0xed   : > { %v440_v29 = vadd.f32 %v401_v25, %v278_v24  ;;  %v446_v35 = vadd.f32 %v425_v28, %v284_v27 }
  0xee   : > { %v761_v30 = vpop.f32.mrf.mxu0  ;;  %v773_v31 = vpop.f32.mrf.mxu1 }
  0xef   : > { %v958_v34 = vadd.f32 %v952_v26, %v440_v29  ;;  %v962_v42 = vadd.f32 %v952_v26, %v446_v35 }
  0xf0   : > { %v404_v36 = vpop.f32.mrf.mxu0  ;;  %v428_v37 = vpop.f32.mrf.mxu1 }
  0xf1   : > { %v441_v38 = vadd.f32 %v404_v36, %v279_v32  ;;  %v447_v39 = vadd.f32 %v428_v37, %v285_v33  ;;  %469 = vadd.xlane.f32.xlu0 %v958_v34  ;;  %v489_v50 = vmul.f32 %v958_v34, %v958_v34  ;;  %v495_v58 = vmul.f32 %v962_v42, %v962_v42 }
  0xf2   : > { %v762_v40 = vpop.f32.mrf.mxu0  ;;  %v774_v41 = vpop.f32.mrf.mxu1 }
  0xf3   : > { %v965_v43 = vadd.f32 %v952_v26, %v441_v38  ;;  %v968_v44 = vadd.f32 %v952_v26, %v447_v39 }
  0xf4   : > { %v409_v45 = vpop.f32.mrf.mxu0  ;;  %v433_v46 = vpop.f32.mrf.mxu1 }
  0xf5   : > { %483 = vadd.xlane.f32.xlu1 %v968_v44  ;;  %481 = vadd.xlane.f32.xlu0 %v962_v42  ;;  %v490_v51 = vmul.f32 %v965_v43, %v965_v43  ;;  %v442_v54 = vadd.f32 %v409_v45, %v280_v47  ;;  %v496_v59 = vmul.f32 %v968_v44, %v968_v44 }
  0xf6   : > { %v765_v48 = vpop.f32.mrf.mxu0  ;;  %v777_v49 = vpop.f32.mrf.mxu1  ;;  %v448_v63 = vadd.f32 %v433_v46, %v286_v55 }
  0xf7   : > { %v984_v62 = vadd.f32 %v952_v26, %v442_v54 }
  0xf8   : > { %v412_v52 = vpop.f32.mrf.mxu0  ;;  %v436_v53 = vpop.f32.mrf.mxu1  ;;  %v988_v4 = vadd.f32 %v952_v26, %v448_v63 }
  0xf9   : > { %499 = vadd.xlane.f32.xlu0 %v489_v50  ;;  %501 = vadd.xlane.f32.xlu1 %v490_v51  ;;  %v443_v1 = vadd.f32 %v412_v52, %v281_v60  ;;  %v449_v8 = vadd.f32 %v436_v53, %v287_v2  ;;  %v491_v11 = vmul.f32 %v984_v62, %v984_v62  ;;  %v1041_v2 = vld [vmem:[%s1116_s4] ss:$0 sm:$0xff] }
  0xfa   : > { %v766_v56 = vpop.f32.mrf.mxu0  ;;  %v778_v57 = vpop.f32.mrf.mxu1  ;;  %v497_v18 = vmul.f32 %v988_v4, %v988_v4 }
  0xfb   : > { %v994_v7 = vadd.f32 %v952_v26, %v443_v1  ;;  %v999_v10 = vadd.f32 %v952_v26, %v449_v8 }
  0xfc   : > { %v417_v61 = vpop.f32.mrf.mxu0 }
  0xfd   : > { %511 = vadd.xlane.f32.xlu0 %v495_v58  ;;  %513 = vadd.xlane.f32.xlu1 %v496_v59  ;;  %v444_v9 = vadd.f32 %v417_v61, %v282_v5  ;;  %v492_v15 = vmul.f32 %v994_v7, %v994_v7  ;;  %v498_v20 = vmul.f32 %v999_v10, %v999_v10 }
  0xfe   : > { %v769_v0 = vpop.f32.mrf.mxu0 }
  0xff   : > { %v1005_v13 = vadd.f32 %v952_v26, %v444_v9 }
 0x100   : > { %v420_v3 = vpop.f32.mrf.mxu0 }
 0x101   : > { %471 = vadd.xlane.f32.xlu0 %v965_v43  ;;  %473 = vadd.xlane.f32.xlu1 %v984_v62  ;;  %v445_v14 = vadd.f32 %v420_v3, %v283_v12  ;;  %v493_v17 = vmul.f32 %v1005_v13, %v1005_v13 }
 0x102   : > { %v770_v6 = vpop.f32.mrf.mxu0 }
 0x103   : > { %v1012_v16 = vadd.f32 %v952_v26, %v445_v14 }
 0x105   : > { %485 = vadd.xlane.f32.xlu0 %v988_v4  ;;  %475 = vadd.xlane.f32.xlu1 %v994_v7  ;;  %v494_v19 = vmul.f32 %v1012_v16, %v1012_v16 }
 0x109   : > { %503 = vadd.xlane.f32.xlu0 %v491_v11  ;;  %487 = vadd.xlane.f32.xlu1 %v999_v10 }
 0x10d   : > { %505 = vadd.xlane.f32.xlu1 %v492_v15  ;;  %477 = vadd.xlane.f32.xlu0 %v1005_v13 }
 0x111   : > { %507 = vadd.xlane.f32.xlu0 %v493_v17  ;;  %479 = vadd.xlane.f32.xlu1 %v1012_v16 }
 0x115   : > { %515 = vadd.xlane.f32.xlu0 %v497_v18  ;;  %509 = vadd.xlane.f32.xlu1 %v494_v19 }
 0x119   : > { %517 = vadd.xlane.f32.xlu1 %v498_v20 }
 0x17a   : > { %v470_v21 = vpop.xlane.xlu0 %469 }
 0x17b   : > { %v519_v24 = vmul.f32 0.0078125, %v470_v21 }
 0x17d   : > { %v539_v28 = vmul.f32 %v519_v24, %v519_v24  ;;  %v559_v63 = vsub.f32 %v958_v34, %v519_v24  ;;  %v1050_v34 = vld [vmem:[%s1117_s5] ss:$0 sm:$0xff] }
 0x17e   : > { %v484_v22 = vpop.xlane.xlu1 %483  ;;  %v482_v23 = vpop.xlane.xlu0 %481 }
 0x17f   : > { %v1023_v25 = vmul.f32 0.0078125, %v484_v22  ;;  %v525_v29 = vmul.f32 0.0078125, %v482_v23 }
 0x181   : > { %v546_v32 = vmul.f32 %v1023_v25, %v1023_v25  ;;  %v545_v36 = vmul.f32 %v525_v29, %v525_v29  ;;  %v565_v14 = vsub.f32 %v962_v42, %v525_v29  ;;  %v566_v19 = vsub.f32 %v968_v44, %v1023_v25 }
 0x182   : > { %v500_v26 = vpop.xlane.xlu0 %499  ;;  %v502_v27 = vpop.xlane.xlu1 %501 }
 0x183   : > { %v529_v30 = vmul.f32 0.0078125, %v500_v26  ;;  %v530_v50 = vmul.f32 0.0078125, %v502_v27 }
 0x185   : > { %v549_v31 = vsub.f32 %v529_v30, %v539_v28 }
 0x186   : > { %v512_v33 = vpop.xlane.xlu0 %511  ;;  %v514_v35 = vpop.xlane.xlu1 %513 }
 0x187   : > { %v569_v37 = vadd.f32 1e-05, %v549_v31  ;;  %v535_v38 = vmul.f32 0.0078125, %v512_v33  ;;  %v536_v39 = vmul.f32 0.0078125, %v514_v35 }
 0x189   : > { %813 = vrsqrt.f32 %v569_v37  ;;  %v555_v40 = vsub.f32 %v535_v38, %v545_v36  ;;  %v556_v41 = vsub.f32 %v536_v39, %v546_v32 }
 0x18a   : > { %v472_v45 = vpop.xlane.xlu0 %471  ;;  %v474_v46 = vpop.xlane.xlu1 %473 }
 0x18b   : > { %v575_v47 = vadd.f32 1e-05, %v555_v40  ;;  %v576_v48 = vadd.f32 1e-05, %v556_v41  ;;  %v1027_v49 = vmul.f32 0.0078125, %v472_v45  ;;  %v1031_v55 = vmul.f32 0.0078125, %v474_v46 }
 0x18d   : > { %815 = vrsqrt.f32 %v575_v47  ;;  %v540_v51 = vmul.f32 %v1027_v49, %v1027_v49  ;;  %v541_v60 = vmul.f32 %v1031_v55, %v1031_v55  ;;  %v560_v44 = vsub.f32 %v965_v43, %v1027_v49 }
 0x18e   : > { %817 = vrsqrt.f32 %v576_v48  ;;  %v486_v52 = vpop.xlane.xlu0 %485  ;;  %v476_v53 = vpop.xlane.xlu1 %475 }
 0x18f   : > { %v550_v54 = vsub.f32 %v530_v50, %v540_v51  ;;  %v1033_v57 = vmul.f32 0.0078125, %v476_v53  ;;  %v1062_v20 = vmul.f32 0.0078125, %v486_v52 }
 0x191   : > { %v570_v56 = vadd.f32 1e-05, %v550_v54  ;;  %v542_v3 = vmul.f32 %v1033_v57, %v1033_v57  ;;  %v547_v33 = vmul.f32 %v1062_v20, %v1062_v20 }
 0x192   : > { %v504_v58 = vpop.xlane.xlu0 %503  ;;  %v488_v59 = vpop.xlane.xlu1 %487 }
 0x193   : > { %819 = vrsqrt.f32 %v570_v56  ;;  %v531_v61 = vmul.f32 0.0078125, %v504_v58  ;;  %v528_v35 = vmul.f32 0.0078125, %v488_v59  ;;  %v561_v59 = vsub.f32 %v984_v62, %v1031_v55 }
 0x195   : > { %v551_v0 = vsub.f32 %v531_v61, %v541_v60  ;;  %v548_v50 = vmul.f32 %v528_v35, %v528_v35 }
 0x196   : > { %v814_v1 = vpop.eup %813  ;;  %v506_v5 = vpop.xlane.xlu1 %505 }
 0x197   : > { %v478_v6 = vpop.xlane.xlu0 %477  ;;  %v589_v8 = vmul.f32 %v814_v1, %v559_v63  ;;  %v571_v9 = vadd.f32 1e-05, %v551_v0  ;;  %v532_v11 = vmul.f32 0.0078125, %v506_v5  ;;  %v562_v1 = vsub.f32 %v994_v7, %v1033_v57 }
 0x198   : > { %v1045_v12 = vmul.f32 0.0078125, %v478_v6  ;;  %v567_v7 = vsub.f32 %v988_v4, %v1062_v20 }
 0x199   : > { %v605_v15 = vmul.f32 %v1041_v2, %v589_v8  ;;  %821 = vrsqrt.f32 %v571_v9  ;;  %v552_v17 = vsub.f32 %v532_v11, %v542_v3 }
 0x19a   : > { %v816_v18 = vpop.eup %815  ;;  %v543_v21 = vmul.f32 %v1045_v12, %v1045_v12  ;;  %v480_v22 = vpop.xlane.xlu1 %479  ;;  %v563_v55 = vsub.f32 %v1005_v13, %v1045_v12 }
 0x19b   : > { %v508_v42 = vpop.xlane.xlu0 %507  ;;  %v818_v23 = vpop.eup %817  ;;  %v621_v24 = vadd.f32 %v1050_v34, %v605_v15  ;;  %v595_v26 = vmul.f32 %v816_v18, %v565_v14  ;;  %v572_v27 = vadd.f32 1e-05, %v552_v17  ;;  %v524_v30 = vmul.f32 0.0078125, %v480_v22 }
 0x19c   : > { %v533_v28 = vmul.f32 0.0078125, %v508_v42  ;;  %v596_v29 = vmul.f32 %v818_v23, %v566_v19 }
 0x19d   : > { %631 = vst [vmem:[%s1058_s8] sm:$0xff] %v621_v24  ;;  %v611_v31 = vmul.f32 %v1041_v2, %v595_v26  ;;  %823 = vrsqrt.f32 %v572_v27  ;;  %v544_v36 = vmul.f32 %v524_v30, %v524_v30  ;;  %v564_v17 = vsub.f32 %v1012_v16, %v524_v30 }
 0x19e   : > { %v553_v25 = vsub.f32 %v533_v28, %v543_v21  ;;  %v612_v32 = vmul.f32 %v1041_v2, %v596_v29  ;;  %v510_v38 = vpop.xlane.xlu1 %509  ;;  %v568_v21 = vsub.f32 %v999_v10, %v528_v35 }
 0x19f   : > { %v516_v37 = vpop.xlane.xlu0 %515  ;;  %v627_v39 = vadd.f32 %v1050_v34, %v611_v31  ;;  %v534_v45 = vmul.f32 0.0078125, %v510_v38 }
 0x1a0   : > { %v573_v40 = vadd.f32 1e-05, %v553_v25  ;;  %v537_v41 = vmul.f32 0.0078125, %v516_v37  ;;  %v820_v46 = vpop.eup %819  ;;  %v628_v43 = vadd.f32 %v1050_v34, %v612_v32 }
 0x1a1   : > { %637 = vst [vmem:[%s1058_s8 + $0x30] sm:$0xff] %v627_v39  ;;  %v590_v47 = vmul.f32 %v820_v46, %v560_v44  ;;  %v554_v49 = vsub.f32 %v534_v45, %v544_v36 }
 0x1a2   : > { %825 = vrsqrt.f32 %v573_v40  ;;  %v557_v48 = vsub.f32 %v537_v41, %v547_v33  ;;  %638 = vst [vmem:[%s1058_s8 + $0x38] sm:$0xff] %v628_v43  ;;  %v518_v51 = vpop.xlane.xlu1 %517 }
 0x1a3   : > { %v606_v52 = vmul.f32 %v1041_v2, %v590_v47  ;;  %v574_v54 = vadd.f32 1e-05, %v554_v49  ;;  %v538_v56 = vmul.f32 0.0078125, %v518_v51 }
 0x1a4   : > { %v577_v53 = vadd.f32 1e-05, %v557_v48 }
 0x1a5   : > { %v622_v58 = vadd.f32 %v1050_v34, %v606_v52  ;;  %v558_v60 = vsub.f32 %v538_v56, %v548_v50 }
 0x1a6   : > { %827 = vrsqrt.f32 %v577_v53  ;;  %v822_v61 = vpop.eup %821 }
 0x1a7   : > { %829 = vrsqrt.f32 %v574_v54  ;;  %632 = vst [vmem:[%s1058_s8 + $0x8] sm:$0xff] %v622_v58  ;;  %v591_v63 = vmul.f32 %v822_v61, %v561_v59  ;;  %v578_v0 = vadd.f32 1e-05, %v558_v60 }
 0x1a9   : > { %v607_v3 = vmul.f32 %v1041_v2, %v591_v63  ;;  %831 = vrsqrt.f32 %v578_v0 }
 0x1aa   : > { %v824_v5 = vpop.eup %823 }
 0x1ab   : > { %v623_v6 = vadd.f32 %v1050_v34, %v607_v3  ;;  %v592_v8 = vmul.f32 %v824_v5, %v562_v1 }
 0x1ad   : > { %633 = vst [vmem:[%s1058_s8 + $0x10] sm:$0xff] %v623_v6  ;;  %v608_v62 = vmul.f32 %v1041_v2, %v592_v8 }
 0x1af   : > { %v826_v9 = vpop.eup %825  ;;  %v624_v11 = vadd.f32 %v1050_v34, %v608_v62 }
 0x1b0   : > { %v593_v14 = vmul.f32 %v826_v9, %v563_v55 }
 0x1b1   : > { %634 = vst [vmem:[%s1058_s8 + $0x18] sm:$0xff] %v624_v11 }
 0x1b2   : > { %v609_v57 = vmul.f32 %v1041_v2, %v593_v14 }
 0x1b3   : > { %v828_v15 = vpop.eup %827 }
 0x1b4   : > { %v830_v18 = vpop.eup %829  ;;  %v625_v19 = vadd.f32 %v1050_v34, %v609_v57  ;;  %v597_v13 = vmul.f32 %v828_v15, %v567_v7 }
 0x1b5   : > { %v594_v12 = vmul.f32 %v830_v18, %v564_v17 }
 0x1b6   : > { %635 = vst [vmem:[%s1058_s8 + $0x20] sm:$0xff] %v625_v19  ;;  %v613_v42 = vmul.f32 %v1041_v2, %v597_v13  ;;  %v832_v4 = vpop.eup %831 }
 0x1b7   : > { %v610_v20 = vmul.f32 %v1041_v2, %v594_v12  ;;  %v598_v23 = vmul.f32 %v832_v4, %v568_v21 }
 0x1b8   : > { %v629_v22 = vadd.f32 %v1050_v34, %v613_v42 }
 0x1b9   : > { %v626_v24 = vadd.f32 %v1050_v34, %v610_v20  ;;  %v614_v16 = vmul.f32 %v1041_v2, %v598_v23 }
 0x1ba   : > { %639 = vst [vmem:[%s1058_s8 + $0x40] sm:$0xff] %v629_v22 }
 0x1bb   : > { %636 = vst [vmem:[%s1058_s8 + $0x28] sm:$0xff] %v626_v24  ;;  %v630_v26 = vadd.f32 %v1050_v34, %v614_v16 }
 0x1bd   : > { %640 = vst [vmem:[%s1058_s8 + $0x48] sm:$0xff] %v630_v26 }
 0x1be PF: > { %s16_s21 = sadd.s32 1, %s839_s21  }
 0x1bf   : > { %p13_p4 = scmp.ge.s32.totalorder %s16_s21, 4  }
 0x1c1   :  { %15 = sbr.rel (!%p13_p4) target bundleno = 1 (0x1), region = 77 }

// kernel: _lambda_.13
= control target key start
LH: loop header
LB: loop body
LE: loop exit
PB: predicated region body
PF: predicated region fallthrough
CT: control target
= control target key end

     0   :  { %16 = vsyncpa [#allocation3], 0  ;;  %s2273_s0 = inlined_call_operand.vmem [shape: f32[160,128], index: 0, kind: input, shape index: {}]   ;;  %s2274_s1 = inlined_call_operand.vmem [shape: f32[160,128], index: 1, kind: input, shape index: {}]   ;;  %s2275_s2 = inlined_call_operand.vmem [shape: f32[160,128], index: 2, kind: input, shape index: {}]   ;;  %s2276_s3 = inlined_call_operand.vmem [shape: bf16[128,128], index: 3, kind: input, shape index: {}]   ;;  %s2277_s4 = inlined_call_operand.vmem [shape: bf16[128,128], index: 4, kind: input, shape index: {}]   ;;  %s2278_s5 = inlined_call_operand.vmem [shape: bf16[128,128], index: 5, kind: input, shape index: {}]   ;;  %s2279_s6 = inlined_call_operand.vmem [shape: f32[1,128], index: 6, kind: input, shape index: {}, may-alias: {6,8,10}]   ;;  %s2280_s7 = inlined_call_operand.vmem [shape: bf16[128,128], index: 7, kind: input, shape index: {}]   ;;  %s2281_s8 = inlined_call_operand.vmem [shape: f32[1,128], index: 8, kind: input, shape index: {}, may-alias: {6,8,10}]   ;;  %s2282_s9 = inlined_call_operand.vmem [shape: f32[1,128], index: 9, kind: input, shape index: {}]   ;;  %s2283_s10 = inlined_call_operand.vmem [shape: f32[1,128], index: 10, kind: input, shape index: {}, may-alias: {6,8,10}]   ;;  %s2284_s11 = inlined_call_operand.hbm [shape: f32[160,128], index: 11, kind: output, shape index: {}]  }
   0x1   :  { %18 = vsyncpa [#allocation3 + $0x1], 0  ;;  %s1815_s17 = smov 0   ;;  %s1817_s18 = smov 0  }
   0x2   :  { %s1819_s19 = smov 0   ;;  %s1821_s20 = smov 0  }
   0x3 LB: > { %s1836_s21 = sadd.s32 4294967295, %s1748_s20   ;;  %s1349_s22 = sadd.s32 4294967294, %s1748_s20   ;;  %s1748_s20 = sphi %s1821_s20, %s2292_s20   ;;  %s1744_s19 = sphi %s1819_s19, %s2291_s19   ;;  %s1740_s18 = sphi %s1817_s18, %s2290_s18   ;;  %s1736_s17 = sphi %s1815_s17, %s2289_s17  }
   0x4   : > { %s1840_s23 = sadd.s32 1, %s1748_s20   ;;  %s277_s24 = sadd.s32 1, %s1744_s19 }
   0x5   : > { %s274_s25 = ssub.s32 %s1748_s20, %s1840_s23  ;;  %p287_p0 = scmp.ne.s32.totalorder %s1744_s19, %s1740_s18 }
   0x6   : > { %p275_p1 = scmp.eq.s32.totalorder %s274_s25, 0  ;;  %p288_p2 = scmp.eq.s32.totalorder %s1836_s21, 1 }
   0x7   : > { %p293_p3 = scmp.ne.s32.totalorder %s1740_s18, %s1736_s17  ;;  %p294_p4 = scmp.eq.s32.totalorder %s1349_s22, 1 }
   0x8   : > { %s1851_s26 = scalar_select %p275_p1, %s1744_s19, %s277_s24  }
   0x9   : > { %p1853_p5 = por %p288_p2, %p287_p0  ;;  %p1857_p6 = por %p294_p4, %p293_p3 }
   0xa   : > { %2285 = sst [smem:[#allocation5_spill]] %s1851_s26  ;;  %p1352_p7 = scmp.ge.s32.totalorder %s1748_s20, 1 }
   0xb   : > { %p363_p8 = scmp.lt.s32.totalorder %s1748_s20, 3 }
   0xd   : > { %p364_p9 = pnand %p1352_p7, %p363_p8 }
   0xe   : > { %s413_s12 = smul.u32 (!%p364_p9), 10, %s1836_s21  ;;  %s410_s13 = sand.u32 (!%p364_p9), 1, %s1740_s18  }
   0xf   : > { %367 = sbr.rel (%p364_p9) target bundleno = 713 (0x2c9), region = 64 }
  0x10   : > { %p414_p10 = scmp.lt.s32.totalorder (!%p364_p9), %s413_s12, 19  ;;  %s1395_s24 = smul.u32 (!%p364_p9), 1280, %s1836_s21 }
  0x11   : > { %s2233_s21 = scalar_lea.sflag (!%p364_p9), [#allocation3], %s410_s13 }
  0x14   : > { %v1636_v0 = vld [vmem:[%s2277_s4 + $0x38] sm:$0xff]   ;;  %v1750_v1 = vmov 0.0   ;;  %v1638_v3 = vld [vmem:[%s2277_s4 + $0x30] sm:$0xff]   ;;  %vm1751_vm0 = vmmov 0   ;;  %v1640_v5 = vld [vmem:[%s2277_s4 + $0x28] sm:$0xff]   ;;  %s2294_s12 = smov (!%p414_p10, %s413_s12), 19 }
  0x15   : > { %1448 = vmatprep.subr.bf16.mxu0 %v1750_v1  ;;  %1484 = vmatprep.subr.bf16.mxu1 %v1750_v1  ;;  %v1637_v2 = vld [vmem:[%s2276_s3 + $0x38] sm:$0xff]   ;;  %v1639_v4 = vld [vmem:[%s2276_s3 + $0x30] sm:$0xff]   ;;  %v1641_v6 = vld [vmem:[%s2276_s3 + $0x28] sm:$0xff]   ;;  %s1915_s16 = sshll.u32 %s2294_s12, 3 }
  0x16   : > { %1449 = vmatpush3.bf16.msra.mxu0 %v1636_v0  ;;  %1464 = vmatprep.mubr.msk.bf16.mxu0 %vm1751_vm0, %v1750_v1  ;;  %v1642_v7 = vld [vmem:[%s2277_s4 + $0x20] sm:$0xff]   ;;  %v1644_v9 = vld [vmem:[%s2277_s4 + $0x18] sm:$0xff]   ;;  %v1646_v11 = vld [vmem:[%s2277_s4 + $0x10] sm:$0xff]   ;;  %s1925_s30 = scalar_lea.vmem %s2274_s1, %s1915_s16  ;;  %s1935_s26 = scalar_lea.vmem %s2273_s0, %s1915_s16 }
  0x17   : > { %1485 = vmatpush3.bf16.msra.mxu1 %v1637_v2  ;;  %1450 = vmatprep.subr.bf16.mxu0 %v1750_v1  ;;  %v1643_v8 = vld [vmem:[%s2276_s3 + $0x20] sm:$0xff]   ;;  %v1645_v10 = vld [vmem:[%s2276_s3 + $0x18] sm:$0xff]   ;;  %v1647_v12 = vld [vmem:[%s2276_s3 + $0x10] sm:$0xff]   ;;  %s429_s14 = scalar_lea.vmem %s2275_s2, %s1915_s16  ;;  %s1592_s16 = smul.u32 80, %s410_s13 }
  0x18   : > { %1486 = vmatprep.subr.bf16.mxu1 %v1750_v1  ;;  %1500 = vmatprep.mubr.msk.bf16.mxu1 %vm1751_vm0, %v1750_v1  ;;  %v1648_v13 = vld [vmem:[%s2277_s4 + $0x8] sm:$0xff]   ;;  %v1650_v15 = vld [vmem:[%s2277_s4] sm:$0xff]   ;;  %v1652_v23 = vld [vmem:[%s2278_s5 + $0x38] sm:$0xff]  }
  0x19   : > { %v1649_v14 = vld [vmem:[%s2276_s3 + $0x8] sm:$0xff]   ;;  %v1651_v16 = vld [vmem:[%s2276_s3] sm:$0xff]   ;;  %v1653_v24 = vld [vmem:[%s2278_s5 + $0x30] sm:$0xff]   ;;  %s2181_s22 = scalar_lea.vmem [#allocation2], %s1592_s16  ;;  %s1752_s16 = smov [#allocation2]  }
  0x1a   : > { %1451 = vmatpush3.bf16.msra.mxu0 %v1638_v3  ;;  %v464_v17 = vld [vmem:[%s1925_s30] sm:$0xff]  ;;  %v465_v18 = vld [vmem:[%s1925_s30 + $0x8] sm:$0xff]  ;;  %v466_v25 = vld [vmem:[%s1925_s30 + $0x10] sm:$0xff]  ;;  %s1263_s25 = sshll.u32 %s2181_s22, 4  ;;  %s2227_s25 = int_to_ptr.vmem [resolvable:$true] %s1263_s25 }
  0x1b   : > { %1487 = vmatpush3.bf16.msra.mxu1 %v1639_v4  ;;  %1452 = vmatprep.subr.bf16.mxu0 %v1750_v1  ;;  %v433_v19 = vld [vmem:[%s1935_s26] sm:$0xff]  ;;  %v434_v20 = vld [vmem:[%s1935_s26 + $0x8] sm:$0xff]  ;;  %v474_v21 = vpack.c.bf16 %v465_v18, %v464_v17  ;;  %v467_v26 = vld [vmem:[%s1925_s30 + $0x18] sm:$0xff] }
  0x1c   : > { %1488 = vmatprep.subr.bf16.mxu1 %v1750_v1  ;;  %v443_v22 = vpack.c.bf16 %v434_v20, %v433_v19  ;;  %v435_v27 = vld [vmem:[%s1935_s26 + $0x10] sm:$0xff]  ;;  %v436_v28 = vld [vmem:[%s1935_s26 + $0x18] sm:$0xff]  ;;  %v1654_v29 = vld [vmem:[%s2278_s5 + $0x28] sm:$0xff]   ;;  %v475_v30 = vpack.c.bf16 %v467_v26, %v466_v25 }
  0x1d   : > { %v444_v31 = vpack.c.bf16 %v436_v28, %v435_v27  ;;  %v468_v32 = vld [vmem:[%s1925_s30 + $0x20] sm:$0xff]  ;;  %v469_v33 = vld [vmem:[%s1925_s30 + $0x28] sm:$0xff]  ;;  %v1656_v39 = vld [vmem:[%s2278_s5 + $0x18] sm:$0xff]  }
  0x1e   : > { %1453 = vmatpush3.bf16.msra.mxu0 %v1640_v5  ;;  %v1655_v34 = vld [vmem:[%s2278_s5 + $0x20] sm:$0xff]   ;;  %v438_v36 = vld [vmem:[%s1935_s26 + $0x28] sm:$0xff]  ;;  %v476_v37 = vpack.c.bf16 %v469_v33, %v468_v32  ;;  %v470_v40 = vld [vmem:[%s1925_s30 + $0x30] sm:$0xff] }
  0x1f   : > { %1489 = vmatpush3.bf16.msra.mxu1 %v1641_v6  ;;  %1454 = vmatprep.subr.bf16.mxu0 %v1750_v1  ;;  %v437_v35 = vld [vmem:[%s1935_s26 + $0x20] sm:$0xff]  ;;  %v471_v41 = vld [vmem:[%s1925_s30 + $0x38] sm:$0xff]  ;;  %v1657_v42 = vld [vmem:[%s2278_s5 + $0x10] sm:$0xff]  }
  0x20   : > { %1490 = vmatprep.subr.bf16.mxu1 %v1750_v1  ;;  %v445_v38 = vpack.c.bf16 %v438_v36, %v437_v35  ;;  %v439_v43 = vld [vmem:[%s1935_s26 + $0x30] sm:$0xff]  ;;  %v440_v44 = vld [vmem:[%s1935_s26 + $0x38] sm:$0xff]  ;;  %v477_v45 = vpack.c.bf16 %v471_v41, %v470_v40  ;;  %v1658_v47 = vld [vmem:[%s2278_s5 + $0x8] sm:$0xff]  }
  0x21   : > { %v446_v46 = vpack.c.bf16 %v440_v44, %v439_v43  ;;  %v472_v48 = vld [vmem:[%s1925_s30 + $0x40] sm:$0xff]  ;;  %v473_v49 = vld [vmem:[%s1925_s30 + $0x48] sm:$0xff]  ;;  %v739_v58 = vld [vmem:[%s429_s14 + $0x10] sm:$0xff]  ;;  %s1692_s30 = sshll.u32 %s1752_s16, 4  ;;  %s1693_s30 = int_to_ptr.vmem [resolvable:$false] %s1692_s30 }
  0x22   : > { %1455 = vmatpush3.bf16.msra.mxu0 %v1642_v7  ;;  %v441_v50 = vld [vmem:[%s1935_s26 + $0x40] sm:$0xff]  ;;  %v442_v51 = vld [vmem:[%s1935_s26 + $0x48] sm:$0xff]  ;;  %v478_v53 = vpack.c.bf16 %v473_v49, %v472_v48  ;;  %v740_v59 = vld [vmem:[%s429_s14 + $0x18] sm:$0xff]  ;;  %s1688_s26 = scalar_lea.vmem %s2227_s25, 1280  ;;  %s1694_s15 = scalar_lea.vmem %s1693_s30, 2560 }
  0x23   : > { %1491 = vmatpush3.bf16.msra.mxu1 %v1643_v8  ;;  %1456 = vmatprep.subr.bf16.mxu0 %v1750_v1  ;;  %v1659_v52 = vld [vmem:[%s2278_s5] sm:$0xff]   ;;  %v447_v54 = vpack.c.bf16 %v442_v51, %v441_v50  ;;  %v738_v56 = vld [vmem:[%s429_s14 + $0x8] sm:$0xff]  ;;  %v748_v60 = vpack.c.bf16 %v740_v59, %v739_v58  ;;  %v743_v0 = vld [vmem:[%s429_s14 + $0x30] sm:$0xff]  ;;  %p1689_p11 = scmp.ne.s32.totalorder %s2227_s25, %s1688_s26  ;;  %p1695_p0 = scmp.lt.s32.totalorder %s2227_s25, %s1693_s30 }
  0x24   : > { %1492 = vmatprep.subr.bf16.mxu1 %v1750_v1  ;;  %v737_v55 = vld [vmem:[%s429_s14] sm:$0xff]  ;;  %v742_v62 = vld [vmem:[%s429_s14 + $0x28] sm:$0xff]  ;;  %v744_v2 = vld [vmem:[%s429_s14 + $0x38] sm:$0xff]  ;;  %p1696_p1 = scmp.lt.s32.totalorder %s1694_s15, %s1688_s26 }
  0x25   : > { %v747_v57 = vpack.c.bf16 %v738_v56, %v737_v55  ;;  %v741_v61 = vld [vmem:[%s429_s14 + $0x20] sm:$0xff]  ;;  %v750_v3 = vpack.c.bf16 %v744_v2, %v743_v0  ;;  %v746_v5 = vld [vmem:[%s429_s14 + $0x48] sm:$0xff]  ;;  %v1660_v7 = vld [vmem:[%s2280_s7 + $0x38] sm:$0xff]   ;;  %p1690_p12 = pnand %p1689_p11, %p1853_p5 }
  0x26   : > { %1457 = vmatpush3.bf16.msra.mxu0 %v1644_v9  ;;  %v749_v63 = vpack.c.bf16 %v742_v62, %v741_v61  ;;  %v745_v4 = vld [vmem:[%s429_s14 + $0x40] sm:$0xff]  ;;  %v1661_v8 = vld [vmem:[%s2280_s7 + $0x30] sm:$0xff]   ;;  %v1662_v9 = vld [vmem:[%s2280_s7 + $0x28] sm:$0xff]   ;;  %s2225_s14 = scalar_lea.hbm %s2284_s11, %s1395_s24  ;;  %p1697_p2 = por %p1696_p1, %p1695_p0 }
  0x27   : > { %1493 = vmatpush3.bf16.msra.mxu1 %v1645_v10  ;;  %1458 = vmatprep.subr.bf16.mxu0 %v1750_v1  ;;  %v751_v6 = vpack.c.bf16 %v746_v5, %v745_v4  ;;  %v1663_v10 = vld [vmem:[%s2280_s7 + $0x20] sm:$0xff]   ;;  %p1691_p13 = pneg %p1690_p12 }
  0x28   : > { %1494 = vmatprep.subr.bf16.mxu1 %v1750_v1  ;;  %v2071_v58 = vld [vmem:[%s2279_s6] ss:$0 sm:$0xff] }
  0x29   : > { %p1698_p3 = pnand %p1697_p2, %p1691_p13 }
  0x2a   : > { %1459 = vmatpush3.bf16.msra.mxu0 %v1646_v11  ;;  %v1664_v11 = vld [vmem:[%s2280_s7 + $0x18] sm:$0xff]  }
  0x2b   : > { %1495 = vmatpush3.bf16.msra.mxu1 %v1647_v12  ;;  %1460 = vmatprep.subr.bf16.mxu0 %v1750_v1  ;;  %v1665_v12 = vld [vmem:[%s2280_s7 + $0x10] sm:$0xff]  }
  0x2c   : > { %1496 = vmatprep.subr.bf16.mxu1 %v1750_v1 }
  0x2e   : > { %1461 = vmatpush3.bf16.msra.mxu0 %v1648_v13  ;;  %v1666_v13 = vld [vmem:[%s2280_s7 + $0x8] sm:$0xff]  }
  0x2f   : > { %1497 = vmatpush3.bf16.msra.mxu1 %v1649_v14  ;;  %1462 = vmatprep.subr.bf16.mxu0 %v1750_v1  ;;  %v1667_v14 = vld [vmem:[%s2280_s7] sm:$0xff]  }
  0x30   : > { %1498 = vmatprep.subr.bf16.mxu1 %v1750_v1 }
  0x32   : > { %1463 = vmatpush3.bf16.msra.mxu0 %v1650_v15 }
  0x33   : > { %1499 = vmatpush3.bf16.msra.mxu1 %v1651_v16  ;;  %1520 = vmatprep.subr.bf16.mxu0 %v1750_v1 }
  0x34   : > { %1556 = vmatprep.subr.bf16.mxu1 %v1750_v1 }
  0x35   : > { %1465 = vmatmul.mubr.bf16.vlgmr.msra.gmra.mxu0 %v474_v21 }
  0x36   : > { %1501 = vmatmul.mubr.bf16.vlgmr.msra.gmra.mxu1 %v443_v22  ;;  %1521 = vmatpush3.bf16.msra.mxu0 %v1652_v23 }
  0x37   : > { %1522 = vmatprep.subr.bf16.mxu0 %v1750_v1  ;;  %1468 = vmatprep.mubr.msk.bf16.mxu0 %vm1751_vm0, %v1750_v1 }
  0x38   : > { %1504 = vmatprep.mubr.msk.bf16.mxu1 %vm1751_vm0, %v1750_v1  ;;  %1557 = vmatpush3.bf16.msra.mxu1 %v1660_v7 }
  0x39   : > { %1558 = vmatprep.subr.bf16.mxu1 %v1750_v1 }
  0x3a   : > { %1523 = vmatpush3.bf16.msra.mxu0 %v1653_v24 }
  0x3b   : > { %1524 = vmatprep.subr.bf16.mxu0 %v1750_v1 }
  0x3c   : > { %1559 = vmatpush3.bf16.msra.mxu1 %v1661_v8 }
  0x3d   : > { %1469 = vmatmul.mubr.bf16.gmra.mxu0 %v475_v30  ;;  %1560 = vmatprep.subr.bf16.mxu1 %v1750_v1 }
  0x3e   : > { %1505 = vmatmul.mubr.bf16.gmra.mxu1 %v444_v31  ;;  %1525 = vmatpush3.bf16.msra.mxu0 %v1654_v29 }
  0x3f   : > { %1472 = vmatprep.mubr.msk.bf16.mxu0 %vm1751_vm0, %v1750_v1  ;;  %1508 = vmatprep.mubr.msk.bf16.mxu1 %vm1751_vm0, %v1750_v1 }
  0x40   : > { %1526 = vmatprep.subr.bf16.mxu0 %v1750_v1  ;;  %1561 = vmatpush3.bf16.msra.mxu1 %v1662_v9 }
  0x41   : > { %1562 = vmatprep.subr.bf16.mxu1 %v1750_v1 }
  0x42   : > { %1527 = vmatpush3.bf16.msra.mxu0 %v1655_v34 }
  0x43   : > { %1528 = vmatprep.subr.bf16.mxu0 %v1750_v1 }
  0x44   : > { %1563 = vmatpush3.bf16.msra.mxu1 %v1663_v10 }
  0x45   : > { %1473 = vmatmul.mubr.bf16.gmra.mxu0 %v476_v37  ;;  %1564 = vmatprep.subr.bf16.mxu1 %v1750_v1 }
  0x46   : > { %1509 = vmatmul.mubr.bf16.gmra.mxu1 %v445_v38  ;;  %1529 = vmatpush3.bf16.msra.mxu0 %v1656_v39 }
  0x47   : > { %1476 = vmatprep.mubr.msk.bf16.mxu0 %vm1751_vm0, %v1750_v1  ;;  %1512 = vmatprep.mubr.msk.bf16.mxu1 %vm1751_vm0, %v1750_v1 }
  0x48   : > { %1530 = vmatprep.subr.bf16.mxu0 %v1750_v1  ;;  %1565 = vmatpush3.bf16.msra.mxu1 %v1664_v11 }
  0x49   : > { %1566 = vmatprep.subr.bf16.mxu1 %v1750_v1 }
  0x4a   : > { %1531 = vmatpush3.bf16.msra.mxu0 %v1657_v42 }
  0x4b   : > { %1532 = vmatprep.subr.bf16.mxu0 %v1750_v1 }
  0x4c   : > { %1567 = vmatpush3.bf16.msra.mxu1 %v1665_v12 }
  0x4d   : > { %1477 = vmatmul.mubr.bf16.gmra.mxu0 %v477_v45  ;;  %1568 = vmatprep.subr.bf16.mxu1 %v1750_v1 }
  0x4e   : > { %1513 = vmatmul.mubr.bf16.gmra.mxu1 %v446_v46  ;;  %1480 = vmatprep.mubr.msk.bf16.mxu0 %vm1751_vm0, %v1750_v1 }
  0x4f   : > { %1516 = vmatprep.mubr.msk.bf16.mxu1 %vm1751_vm0, %v1750_v1  ;;  %1533 = vmatpush3.bf16.msra.mxu0 %v1658_v47 }
  0x50   : > { %1534 = vmatprep.subr.bf16.mxu0 %v1750_v1  ;;  %1569 = vmatpush3.bf16.msra.mxu1 %v1666_v13 }
  0x51   : > { %1570 = vmatprep.subr.bf16.mxu1 %v1750_v1 }
  0x53   : > { %1535 = vmatpush3.bf16.msra.mxu0 %v1659_v52 }
  0x54   : > { %1571 = vmatpush3.bf16.msra.mxu1 %v1667_v14 }
  0x55   : > { %1481 = vmatmul.mubr.bf16.gmra.mxu0 %v478_v53 }
  0x56   : > { %1517 = vmatmul.mubr.bf16.gmra.mxu1 %v447_v54  ;;  %1536 = vmatprep.mubr.msk.bf16.mxu0 %vm1751_vm0, %v1750_v1 }
  0x57   : > { %1572 = vmatprep.mubr.msk.bf16.mxu1 %vm1751_vm0, %v1750_v1 }
  0x5d   : > { %1537 = vmatmul.mubr.bf16.vlgmr.msra.gmra.mxu0 %v747_v57 }
  0x5e   : > { %1540 = vmatprep.mubr.msk.bf16.mxu0 %vm1751_vm0, %v1750_v1 }
  0x65   : > { %1541 = vmatmul.mubr.bf16.gmra.mxu0 %v748_v60 }
  0x66   : > { %1544 = vmatprep.mubr.msk.bf16.mxu0 %vm1751_vm0, %v1750_v1 }
  0x6d   : > { %1545 = vmatmul.mubr.bf16.gmra.mxu0 %v749_v63 }
  0x6e   : > { %1548 = vmatprep.mubr.msk.bf16.mxu0 %vm1751_vm0, %v1750_v1 }
  0x75   : > { %1549 = vmatmul.mubr.bf16.gmra.mxu0 %v750_v3 }
  0x76   : > { %1552 = vmatprep.mubr.msk.bf16.mxu0 %vm1751_vm0, %v1750_v1 }
  0x7d   : > { %1553 = vmatmul.mubr.bf16.gmra.mxu0 %v751_v6 }
  0xf5   : > { %v577_v15 = vpop.f32.mrf.mxu0 }
  0xf6   : > { %v698_v16 = vpop.f32.mrf.mxu1 }
  0xf7   : > { %v1466_v17 = vpop.f32.mrf.mxu0  ;;  %v699_v54 = vadd.f32 %v698_v16, %v577_v15 }
  0xf8   : > { %v1502_v18 = vpop.f32.mrf.mxu1 }
  0xf9   : > { %v580_v19 = vpop.f32.mrf.mxu0 }
  0xfa   : > { %v701_v20 = vpop.f32.mrf.mxu1 }
  0xfb   : > { %v1467_v21 = vpop.f32.mrf.mxu0  ;;  %v702_v60 = vadd.f32 %v701_v20, %v580_v19 }
  0xfc   : > { %v1503_v22 = vpop.f32.mrf.mxu1 }
  0xfd   : > { %v585_v23 = vpop.f32.mrf.mxu0 }
  0xfe   : > { %v706_v24 = vpop.f32.mrf.mxu1 }
  0xff   : > { %v1470_v25 = vpop.f32.mrf.mxu0  ;;  %v707_v2 = vadd.f32 %v706_v24, %v585_v23 }
 0x100   : > { %v1506_v26 = vpop.f32.mrf.mxu1 }
 0x101   : > { %v588_v27 = vpop.f32.mrf.mxu0 }
 0x102   : > { %v709_v28 = vpop.f32.mrf.mxu1 }
 0x103   : > { %v1471_v29 = vpop.f32.mrf.mxu0  ;;  %v710_v9 = vadd.f32 %v709_v28, %v588_v27 }
 0x104   : > { %v1507_v30 = vpop.f32.mrf.mxu1 }
 0x105   : > { %v593_v31 = vpop.f32.mrf.mxu0 }
 0x106   : > { %v714_v32 = vpop.f32.mrf.mxu1 }
 0x107   : > { %v1474_v33 = vpop.f32.mrf.mxu0  ;;  %v715_v15 = vadd.f32 %v714_v32, %v593_v31 }
 0x108   : > { %v1510_v34 = vpop.f32.mrf.mxu1 }
 0x109   : > { %v596_v35 = vpop.f32.mrf.mxu0 }
 0x10a   : > { %v717_v36 = vpop.f32.mrf.mxu1 }
 0x10b   : > { %v1475_v37 = vpop.f32.mrf.mxu0  ;;  %v718_v22 = vadd.f32 %v717_v36, %v596_v35 }
 0x10c   : > { %v1511_v38 = vpop.f32.mrf.mxu1 }
 0x10d   : > { %v601_v39 = vpop.f32.mrf.mxu0 }
 0x10e   : > { %v722_v40 = vpop.f32.mrf.mxu1 }
 0x10f   : > { %v1478_v41 = vpop.f32.mrf.mxu0  ;;  %v723_v28 = vadd.f32 %v722_v40, %v601_v39 }
 0x110   : > { %v1514_v42 = vpop.f32.mrf.mxu1 }
 0x111   : > { %v604_v43 = vpop.f32.mrf.mxu0 }
 0x112   : > { %v725_v44 = vpop.f32.mrf.mxu1 }
 0x113   : > { %v1479_v45 = vpop.f32.mrf.mxu0  ;;  %v726_v37 = vadd.f32 %v725_v44, %v604_v43 }
 0x114   : > { %v1515_v46 = vpop.f32.mrf.mxu1 }
 0x115   : > { %v2062_v47 = vpop.f32.mrf.mxu0 }
 0x116   : > { %v730_v48 = vpop.f32.mrf.mxu1 }
 0x117   : > { %v1482_v49 = vpop.f32.mrf.mxu0  ;;  %v731_v39 = vadd.f32 %v730_v48, %v2062_v47 }
 0x118   : > { %v1518_v50 = vpop.f32.mrf.mxu1 }
 0x119   : > { %v2064_v51 = vpop.f32.mrf.mxu0 }
 0x11a   : > { %v2066_v52 = vpop.f32.mrf.mxu1 }
 0x11b   : > { %v1483_v53 = vpop.f32.mrf.mxu0  ;;  %v734_v43 = vadd.f32 %v2066_v52, %v2064_v51  ;;  %v1381_v51 = vld [vmem:[%s2281_s8] ss:$0 sm:$0xff] }
 0x11c   : > { %v1519_v55 = vpop.f32.mrf.mxu1 }
 0x11d   : > { %v850_v56 = vpop.f32.mrf.mxu0 }
 0x11e   : > { %v889_v57 = vadd.f32 %v850_v56, %v699_v54 }
 0x11f   : > { %v1538_v59 = vpop.f32.mrf.mxu0 }
 0x120   : > { %v906_v62 = vadd.f32 %v2071_v58, %v889_v57 }
 0x121   : > { %v853_v61 = vpop.f32.mrf.mxu0 }
 0x122   : > { %v890_v63 = vadd.f32 %v853_v61, %v702_v60  ;;  %v916_v5 = vmax.f32 %v906_v62, 0.0 }
 0x123   : > { %v1539_v0 = vpop.f32.mrf.mxu0 }
 0x124   : > { %v907_v3 = vadd.f32 %v2071_v58, %v890_v63 }
 0x125   : > { %v858_v4 = vpop.f32.mrf.mxu0 }
 0x126   : > { %v917_v6 = vmax.f32 %v907_v3, 0.0  ;;  %v891_v7 = vadd.f32 %v858_v4, %v707_v2 }
 0x127   : > { %v1542_v8 = vpop.f32.mrf.mxu0 }
 0x128   : > { %v926_v10 = vpack.c.bf16 %v917_v6, %v916_v5  ;;  %v908_v12 = vadd.f32 %v2071_v58, %v891_v7 }
 0x129   : > { %v861_v11 = vpop.f32.mrf.mxu0 }
 0x12a   : > { %v892_v13 = vadd.f32 %v861_v11, %v710_v9  ;;  %1573 = vmatmul.mubr.bf16.vlgmr.msra.gmra.mxu1 %v926_v10  ;;  %v918_v18 = vmax.f32 %v908_v12, 0.0 }
 0x12b   : > { %v1543_v14 = vpop.f32.mrf.mxu0  ;;  %1576 = vmatprep.mubr.msk.bf16.mxu1 %vm1751_vm0, %v1750_v1 }
 0x12c   : > { %v909_v16 = vadd.f32 %v2071_v58, %v892_v13 }
 0x12d   : > { %v866_v17 = vpop.f32.mrf.mxu0 }
 0x12e   : > { %v919_v19 = vmax.f32 %v909_v16, 0.0  ;;  %v893_v20 = vadd.f32 %v866_v17, %v715_v15 }
 0x12f   : > { %v1546_v21 = vpop.f32.mrf.mxu0 }
 0x130   : > { %v927_v23 = vpack.c.bf16 %v919_v19, %v918_v18  ;;  %v910_v25 = vadd.f32 %v2071_v58, %v893_v20 }
 0x131   : > { %v869_v24 = vpop.f32.mrf.mxu0 }
 0x132   : > { %v894_v26 = vadd.f32 %v869_v24, %v718_v22  ;;  %1577 = vmatmul.mubr.bf16.gmra.mxu1 %v927_v23  ;;  %v920_v31 = vmax.f32 %v910_v25, 0.0 }
 0x133   : > { %v1547_v27 = vpop.f32.mrf.mxu0  ;;  %1580 = vmatprep.mubr.msk.bf16.mxu1 %vm1751_vm0, %v1750_v1 }
 0x134   : > { %v911_v29 = vadd.f32 %v2071_v58, %v894_v26 }
 0x135   : > { %v874_v30 = vpop.f32.mrf.mxu0 }
 0x136   : > { %v921_v32 = vmax.f32 %v911_v29, 0.0  ;;  %v895_v33 = vadd.f32 %v874_v30, %v723_v28 }
 0x137   : > { %v1550_v34 = vpop.f32.mrf.mxu0 }
 0x138   : > { %v928_v35 = vpack.c.bf16 %v921_v32, %v920_v31  ;;  %v912_v38 = vadd.f32 %v2071_v58, %v895_v33 }
 0x139   : > { %v877_v36 = vpop.f32.mrf.mxu0 }
 0x13a   : > { %v896_v41 = vadd.f32 %v877_v36, %v726_v37  ;;  %1581 = vmatmul.mubr.bf16.gmra.mxu1 %v928_v35  ;;  %v922_v46 = vmax.f32 %v912_v38, 0.0 }
 0x13b   : > { %v1551_v42 = vpop.f32.mrf.mxu0  ;;  %1584 = vmatprep.mubr.msk.bf16.mxu1 %vm1751_vm0, %v1750_v1 }
 0x13c   : > { %v913_v40 = vadd.f32 %v2071_v58, %v896_v41 }
 0x13d   : > { %v882_v45 = vpop.f32.mrf.mxu0 }
 0x13e   : > { %v923_v49 = vmax.f32 %v913_v40, 0.0  ;;  %v897_v50 = vadd.f32 %v882_v45, %v731_v39 }
 0x13f   : > { %v1554_v53 = vpop.f32.mrf.mxu0 }
 0x140   : > { %v929_v44 = vpack.c.bf16 %v923_v49, %v922_v46  ;;  %v914_v55 = vadd.f32 %v2071_v58, %v897_v50 }
 0x141   : > { %v885_v54 = vpop.f32.mrf.mxu0 }
 0x142   : > { %v898_v56 = vadd.f32 %v885_v54, %v734_v43  ;;  %1585 = vmatmul.mubr.bf16.gmra.mxu1 %v929_v44  ;;  %v924_v48 = vmax.f32 %v914_v55, 0.0 }
 0x143   : > { %v1555_v57 = vpop.f32.mrf.mxu0  ;;  %1588 = vmatprep.mubr.msk.bf16.mxu1 %vm1751_vm0, %v1750_v1 }
 0x144   : > { %v915_v47 = vadd.f32 %v2071_v58, %v898_v56 }
 0x146   : > { %v925_v59 = vmax.f32 %v915_v47, 0.0 }
 0x148   : > { %v930_v60 = vpack.c.bf16 %v925_v59, %v924_v48 }
 0x14a   : > { %1589 = vmatmul.mubr.bf16.gmra.mxu1 %v930_v60 }
 0x1ea   : > { %v1036_v52 = vpop.f32.mrf.mxu1 }
 0x1eb   : > { %v2097_v61 = vadd.f32 %v1381_v51, %v1036_v52 }
 0x1ec   : > { %v1574_v62 = vpop.f32.mrf.mxu1 }
 0x1ed   : > { %1077 = vadd.xlane.f32.xlu0 %v2097_v61  ;;  %v1097_v1 = vmul.f32 %v2097_v61, %v2097_v61 }
 0x1ee   : > { %v1039_v63 = vpop.f32.mrf.mxu1 }
 0x1ef   : > { %v2100_v0 = vadd.f32 %v1381_v51, %v1039_v63 }
 0x1f0   : > { %v1575_v58 = vpop.f32.mrf.mxu1 }
 0x1f1   : > { %1107 = vadd.xlane.f32.xlu0 %v1097_v1  ;;  %v1098_v2 = vmul.f32 %v2100_v0, %v2100_v0 }
 0x1f2   : > { %v1044_v3 = vpop.f32.mrf.mxu1 }
 0x1f3   : > { %v2106_v4 = vadd.f32 %v1381_v51, %v1044_v3  ;;  %1109 = vadd.xlane.f32.xlu1 %v1098_v2 }
 0x1f4   : > { %v1578_v5 = vpop.f32.mrf.mxu1 }
 0x1f5   : > { %1079 = vadd.xlane.f32.xlu0 %v2100_v0  ;;  %v1099_v7 = vmul.f32 %v2106_v4, %v2106_v4 }
 0x1f6   : > { %v1047_v6 = vpop.f32.mrf.mxu1 }
 0x1f7   : > { %1081 = vadd.xlane.f32.xlu1 %v2106_v4  ;;  %v2112_v9 = vadd.f32 %v1381_v51, %v1047_v6 }
 0x1f8   : > { %v1579_v8 = vpop.f32.mrf.mxu1 }
 0x1f9   : > { %1111 = vadd.xlane.f32.xlu0 %v1099_v7  ;;  %v1100_v13 = vmul.f32 %v2112_v9, %v2112_v9 }
 0x1fa   : > { %v1052_v10 = vpop.f32.mrf.mxu1 }
 0x1fb   : > { %v2114_v11 = vadd.f32 %v1381_v51, %v1052_v10  ;;  %1083 = vadd.xlane.f32.xlu1 %v2112_v9 }
 0x1fc   : > { %v1582_v12 = vpop.f32.mrf.mxu1 }
 0x1fd   : > { %1085 = vadd.xlane.f32.xlu0 %v2114_v11  ;;  %v1101_v15 = vmul.f32 %v2114_v11, %v2114_v11 }
 0x1fe   : > { %v1055_v14 = vpop.f32.mrf.mxu1 }
 0x1ff   : > { %1113 = vadd.xlane.f32.xlu1 %v1100_v13  ;;  %v2122_v17 = vadd.f32 %v1381_v51, %v1055_v14  ;;  %v2162_v14 = vld [vmem:[%s2282_s9] ss:$0 sm:$0xff] }
 0x200   : > { %v1583_v16 = vpop.f32.mrf.mxu1 }
 0x201   : > { %1115 = vadd.xlane.f32.xlu0 %v1101_v15  ;;  %v1102_v21 = vmul.f32 %v2122_v17, %v2122_v17 }
 0x202   : > { %v1060_v18 = vpop.f32.mrf.mxu1 }
 0x203   : > { %v2124_v19 = vadd.f32 %v1381_v51, %v1060_v18  ;;  %1087 = vadd.xlane.f32.xlu1 %v2122_v17 }
 0x204   : > { %v1586_v20 = vpop.f32.mrf.mxu1 }
 0x205   : > { %1089 = vadd.xlane.f32.xlu0 %v2124_v19  ;;  %v1103_v23 = vmul.f32 %v2124_v19, %v2124_v19 }
 0x206   : > { %v1063_v22 = vpop.f32.mrf.mxu1 }
 0x207   : > { %1117 = vadd.xlane.f32.xlu1 %v1102_v21  ;;  %v2132_v25 = vadd.f32 %v1381_v51, %v1063_v22 }
 0x208   : > { %v1587_v24 = vpop.f32.mrf.mxu1 }
 0x209   : > { %1119 = vadd.xlane.f32.xlu0 %v1103_v23  ;;  %v1104_v29 = vmul.f32 %v2132_v25, %v2132_v25 }
 0x20a   : > { %v1068_v26 = vpop.f32.mrf.mxu1 }
 0x20b   : > { %v2134_v27 = vadd.f32 %v1381_v51, %v1068_v26  ;;  %1091 = vadd.xlane.f32.xlu1 %v2132_v25 }
 0x20c   : > { %v1590_v28 = vpop.f32.mrf.mxu1 }
 0x20d   : > { %1093 = vadd.xlane.f32.xlu0 %v2134_v27  ;;  %v1105_v31 = vmul.f32 %v2134_v27, %v2134_v27 }
 0x20e   : > { %v1071_v30 = vpop.f32.mrf.mxu1 }
 0x20f   : > { %1121 = vadd.xlane.f32.xlu1 %v1104_v29  ;;  %v2142_v33 = vadd.f32 %v1381_v51, %v1071_v30 }
 0x210   : > { %v1591_v32 = vpop.f32.mrf.mxu1 }
 0x211   : > { %1123 = vadd.xlane.f32.xlu0 %v1105_v31  ;;  %v1106_v34 = vmul.f32 %v2142_v33, %v2142_v33 }
 0x213   : > { %1095 = vadd.xlane.f32.xlu1 %v2142_v33 }
 0x217   : > { %1125 = vadd.xlane.f32.xlu1 %v1106_v34 }
 0x276   : > { %v1078_v37 = vpop.xlane.xlu0 %1077 }
 0x277   : > { %v1127_v35 = vmul.f32 0.0078125, %v1078_v37 }
 0x279   : > { %v1147_v38 = vmul.f32 %v1127_v35, %v1127_v35  ;;  %v1167_v7 = vsub.f32 %v2097_v61, %v1127_v35  ;;  %v2169_v61 = vld [vmem:[%s2283_s10] ss:$0 sm:$0xff] }
 0x27a   : > { %v1108_v36 = vpop.xlane.xlu0 %1107 }
 0x27b   : > { %v1137_v41 = vmul.f32 0.0078125, %v1108_v36 }
 0x27c   : > { %v1110_v42 = vpop.xlane.xlu1 %1109 }
 0x27d   : > { %v1157_v39 = vsub.f32 %v1137_v41, %v1147_v38  ;;  %v1138_v50 = vmul.f32 0.0078125, %v1110_v42 }
 0x27e   : > { %v1080_v40 = vpop.xlane.xlu0 %1079 }
 0x27f   : > { %v1177_v45 = vadd.f32 1e-05, %v1157_v39  ;;  %v1128_v46 = vmul.f32 0.0078125, %v1080_v40 }
 0x280   : > { %v1082_v49 = vpop.xlane.xlu1 %1081 }
 0x281   : > { %1668 = vrsqrt.f32 %v1177_v45  ;;  %v1148_v53 = vmul.f32 %v1128_v46, %v1128_v46  ;;  %v1129_v43 = vmul.f32 0.0078125, %v1082_v49  ;;  %v1168_v26 = vsub.f32 %v2100_v0, %v1128_v46 }
 0x282   : > { %v1112_v44 = vpop.xlane.xlu0 %1111 }
 0x283   : > { %v1158_v54 = vsub.f32 %v1138_v50, %v1148_v53  ;;  %v1149_v55 = vmul.f32 %v1129_v43, %v1129_v43  ;;  %v1139_v56 = vmul.f32 0.0078125, %v1112_v44  ;;  %v1169_v37 = vsub.f32 %v2106_v4, %v1129_v43 }
 0x284   : > { %v1084_v57 = vpop.xlane.xlu1 %1083 }
 0x285   : > { %v1178_v47 = vadd.f32 1e-05, %v1158_v54  ;;  %v1159_v48 = vsub.f32 %v1139_v56, %v1149_v55  ;;  %v2147_v59 = vmul.f32 0.0078125, %v1084_v57 }
 0x286   : > { %v1086_v60 = vpop.xlane.xlu0 %1085 }
 0x287   : > { %1670 = vrsqrt.f32 %v1178_v47  ;;  %v1179_v51 = vadd.f32 1e-05, %v1159_v48  ;;  %v2149_v52 = vmul.f32 0.0078125, %v1086_v60  ;;  %v1150_v63 = vmul.f32 %v2147_v59, %v2147_v59 }
 0x288   : > { %v1114_v62 = vpop.xlane.xlu1 %1113  ;;  %v1170_v54 = vsub.f32 %v2112_v9, %v2147_v59 }
 0x289   : > { %1672 = vrsqrt.f32 %v1179_v51  ;;  %v1140_v1 = vmul.f32 0.0078125, %v1114_v62  ;;  %v1151_v2 = vmul.f32 %v2149_v52, %v2149_v52  ;;  %v1171_v51 = vsub.f32 %v2114_v11, %v2149_v52 }
 0x28a   : > { %v1116_v58 = vpop.xlane.xlu0 %1115 }
 0x28b   : > { %v1160_v3 = vsub.f32 %v1140_v1, %v1150_v63  ;;  %v1141_v5 = vmul.f32 0.0078125, %v1116_v58 }
 0x28c   : > { %v1088_v6 = vpop.xlane.xlu1 %1087 }
 0x28d   : > { %v1180_v8 = vadd.f32 1e-05, %v1160_v3  ;;  %v1161_v10 = vsub.f32 %v1141_v5, %v1151_v2  ;;  %v2157_v12 = vmul.f32 0.0078125, %v1088_v6 }
 0x28e   : > { %v1669_v13 = vpop.eup %1668  ;;  %v1090_v15 = vpop.xlane.xlu0 %1089 }
 0x28f   : > { %v1197_v16 = vmul.f32 %v1669_v13, %v1167_v7  ;;  %1674 = vrsqrt.f32 %v1180_v8  ;;  %v1181_v18 = vadd.f32 1e-05, %v1161_v10  ;;  %v2171_v20 = vmul.f32 0.0078125, %v1090_v15 }
 0x290   : > { %v1118_v21 = vpop.xlane.xlu1 %1117  ;;  %v1152_v23 = vmul.f32 %v2157_v12, %v2157_v12  ;;  %v1172_v13 = vsub.f32 %v2122_v17, %v2157_v12 }
 0x291   : > { %v1213_v22 = vmul.f32 %v2162_v14, %v1197_v16  ;;  %1676 = vrsqrt.f32 %v1181_v18  ;;  %v1142_v24 = vmul.f32 0.0078125, %v1118_v21  ;;  %v1153_v30 = vmul.f32 %v2171_v20, %v2171_v20 }
 0x292   : > { %v1120_v28 = vpop.xlane.xlu0 %1119  ;;  %v1173_v18 = vsub.f32 %v2124_v19, %v2171_v20 }
 0x293   : > { %v1229_v29 = vadd.f32 %v2169_v61, %v1213_v22  ;;  %v1162_v31 = vsub.f32 %v1142_v24, %v1152_v23  ;;  %v1143_v32 = vmul.f32 0.0078125, %v1120_v28 }
 0x294   : > { %v1671_v34 = vpop.eup %1670  ;;  %v1092_v35 = vpop.xlane.xlu1 %1091 }
 0x295   : > { %1239 = vst [vmem:[%s2181_s22] sm:$0xff] %v1229_v29  ;;  %v1198_v36 = vmul.f32 %v1671_v34, %v1168_v26  ;;  %v1182_v38 = vadd.f32 1e-05, %v1162_v31  ;;  %v1163_v41 = vsub.f32 %v1143_v32, %v1153_v30  ;;  %v1134_v0 = vmul.f32 0.0078125, %v1092_v35 }
 0x296   : > { %v1673_v42 = vpop.eup %1672  ;;  %v1094_v39 = vpop.xlane.xlu0 %1093 }
 0x297   : > { %v1214_v40 = vmul.f32 %v2162_v14, %v1198_v36  ;;  %v1199_v45 = vmul.f32 %v1673_v42, %v1169_v37  ;;  %1678 = vrsqrt.f32 %v1182_v38  ;;  %v1183_v46 = vadd.f32 1e-05, %v1163_v41 }
 0x298   : > { %v1154_v49 = vmul.f32 %v1134_v0, %v1134_v0  ;;  %v1135_v50 = vmul.f32 0.0078125, %v1094_v39  ;;  %v1122_v4 = vpop.xlane.xlu1 %1121  ;;  %v1174_v12 = vsub.f32 %v2132_v25, %v1134_v0 }
 0x299   : > { %v1230_v53 = vadd.f32 %v2169_v61, %v1214_v40  ;;  %v1215_v43 = vmul.f32 %v2162_v14, %v1199_v45  ;;  %1680 = vrsqrt.f32 %v1183_v46  ;;  %v1144_v44 = vmul.f32 0.0078125, %v1122_v4 }
 0x29a   : > { %v1124_v55 = vpop.xlane.xlu0 %1123  ;;  %v1155_v57 = vmul.f32 %v1135_v50, %v1135_v50  ;;  %v1175_v20 = vsub.f32 %v2134_v27, %v1135_v50 }
 0x29b   : > { %1240 = vst [vmem:[%s2181_s22 + $0x8] sm:$0xff] %v1230_v53  ;;  %v1231_v56 = vadd.f32 %v2169_v61, %v1215_v43  ;;  %v1164_v47 = vsub.f32 %v1144_v44, %v1154_v49  ;;  %v1145_v48 = vmul.f32 0.0078125, %v1124_v55 }
 0x29c   : > { %v1675_v60 = vpop.eup %1674  ;;  %v1096_v62 = vpop.xlane.xlu1 %1095 }
 0x29d   : > { %1241 = vst [vmem:[%s2181_s22 + $0x10] sm:$0xff] %v1231_v56  ;;  %v1200_v63 = vmul.f32 %v1675_v60, %v1170_v54  ;;  %v1184_v1 = vadd.f32 1e-05, %v1164_v47  ;;  %v1165_v58 = vsub.f32 %v1145_v48, %v1155_v57  ;;  %v1136_v2 = vmul.f32 0.0078125, %v1096_v62 }
 0x29e   : > { %v1677_v3 = vpop.eup %1676 }
 0x29f   : > { %v1216_v9 = vmul.f32 %v2162_v14, %v1200_v63  ;;  %v1201_v59 = vmul.f32 %v1677_v3, %v1171_v51  ;;  %1682 = vrsqrt.f32 %v1184_v1  ;;  %v1185_v5 = vadd.f32 1e-05, %v1165_v58 }
 0x2a0   : > { %v1156_v6 = vmul.f32 %v1136_v2, %v1136_v2  ;;  %v1126_v7 = vpop.xlane.xlu1 %1125  ;;  %v1176_v36 = vsub.f32 %v2142_v33, %v1136_v2 }
 0x2a1   : > { %v1232_v8 = vadd.f32 %v2169_v61, %v1216_v9  ;;  %v1217_v11 = vmul.f32 %v2162_v14, %v1201_v59  ;;  %1684 = vrsqrt.f32 %v1185_v5  ;;  %v1146_v52 = vmul.f32 0.0078125, %v1126_v7 }
 0x2a3   : > { %1242 = vst [vmem:[%s2181_s22 + $0x18] sm:$0xff] %v1232_v8  ;;  %v1233_v10 = vadd.f32 %v2169_v61, %v1217_v11  ;;  %v1166_v15 = vsub.f32 %v1146_v52, %v1156_v6 }
 0x2a4   : > { %v1679_v16 = vpop.eup %1678 }
 0x2a5   : > { %1243 = vst [vmem:[%s2181_s22 + $0x20] sm:$0xff] %v1233_v10  ;;  %v1202_v21 = vmul.f32 %v1679_v16, %v1172_v13  ;;  %v1186_v22 = vadd.f32 1e-05, %v1166_v15 }
 0x2a6   : > { %v1681_v23 = vpop.eup %1680 }
 0x2a7   : > { %v1218_v24 = vmul.f32 %v2162_v14, %v1202_v21  ;;  %v1203_v26 = vmul.f32 %v1681_v23, %v1173_v18  ;;  %1686 = vrsqrt.f32 %v1186_v22 }
 0x2a9   : > { %v1234_v28 = vadd.f32 %v2169_v61, %v1218_v24  ;;  %v1219_v29 = vmul.f32 %v2162_v14, %v1203_v26 }
 0x2ab   : > { %1244 = vst [vmem:[%s2181_s22 + $0x28] sm:$0xff] %v1234_v28  ;;  %v1235_v17 = vadd.f32 %v2169_v61, %v1219_v29 }
 0x2ac   : > { %v1683_v19 = vpop.eup %1682 }
 0x2ad   : > { %1245 = vst [vmem:[%s2181_s22 + $0x30] sm:$0xff] %v1235_v17  ;;  %v1204_v30 = vmul.f32 %v1683_v19, %v1174_v12 }
 0x2ae   : > { %v1685_v31 = vpop.eup %1684 }
 0x2af   : > { %v1220_v32 = vmul.f32 %v2162_v14, %v1204_v30  ;;  %v1205_v34 = vmul.f32 %v1685_v31, %v1175_v20 }
 0x2b1   : > { %v1236_v37 = vadd.f32 %v2169_v61, %v1220_v32  ;;  %v1221_v35 = vmul.f32 %v2162_v14, %v1205_v34 }
 0x2b3   : > { %1246 = vst [vmem:[%s2181_s22 + $0x38] sm:$0xff] %v1236_v37  ;;  %v1237_v25 = vadd.f32 %v2169_v61, %v1221_v35 }
 0x2b4   : > { %v1687_v38 = vpop.eup %1686 }
 0x2b5   : > { %1247 = vst [vmem:[%s2181_s22 + $0x40] sm:$0xff] %v1237_v25  ;;  %v1206_v27 = vmul.f32 %v1687_v38, %v1176_v36 }
 0x2b7   : > { %v1222_v41 = vmul.f32 %v2162_v14, %v1206_v27 }
 0x2b9   : > { %v1238_v0 = vadd.f32 %v2169_v61, %v1222_v41 }
 0x2bb   : > { %1248 = vst [vmem:[%s2181_s22 + $0x48] sm:$0xff] %v1238_v0 }
 0x2bc   : > { %1701 = shalt.err (!%p1698_p3)
}
 0x2bd   : > { %s1702_s13 = scalar_lea.hbm %s2225_s14, 1280  ;;  %s1706_s29 = scalar_lea.hbm %s2284_s11, 2560 }
 0x2be   : > { %p1703_p4 = scmp.ne.s32.totalorder %s2225_s14, %s1702_s13  ;;  %p1707_p9 = scmp.lt.s32.totalorder %s2225_s14, %s2284_s11 }
 0x2bf   : > { %p1708_p10 = scmp.lt.s32.totalorder %s1706_s29, %s1702_s13 }
 0x2c0   : > { %p1704_p7 = pnand %p1703_p4, %p1853_p5 }
 0x2c1   : > { %p1709_p11 = por %p1708_p10, %p1707_p9 }
 0x2c2   : > { %p1705_p8 = pneg %p1704_p7 }
 0x2c4   : > { %p1710_p12 = pnand %p1709_p11, %p1705_p8 }
 0x2c6   : > { %1713 = shalt.err (!%p1710_p12)
}
 0x2c7   : > { %s1753_s26 = smov 128   ;;  %s1754_s30 = smov 8  }
 0x2c8   : > { %1593 = dma.vmem_to_hbm [thread:$0]  (%p1853_p5), %s2227_s25, 1280, %s2225_s14, %s2233_s21, %s1753_s26, %s1753_s26, %s1754_s30  }
 0x2c9 PF: > { %p1599_p13 = scmp.ge.s32.totalorder %s1748_s20, 2  ;;  %s1278_s15 = sand.u32 1, %s1736_s17  }
 0x2ca   : > { %s1279_s13 = scalar_lea.sflag [#allocation3], %s1278_s15 }
 0x2cb   : > { %p1596_p0 = pnand %p1599_p13, %p1857_p6 }
 0x2cd   : > { %p1597_p1 = pneg %p1596_p0 }
 0x2cf   : > { %1731 = dma.done.wait (%p1597_p1), %s1279_s13, 1280  }
 0x2d0   : > { %1733 = vsyncadd (%p1597_p1), %s1279_s13, 4294966016  ;;  %s2288_s22 = sld [smem:[#allocation5_spill]]  ;;  %p21_p2 = scmp.ge.s32.totalorder %s1840_s23, 4  }
 0x2d1   : > { %s2289_s17 = smov %s1740_s18  ;;  %s2290_s18 = smov %s1744_s19 }
 0x2d2   : > { %s2292_s20 = smov %s1840_s23  ;;  %23 = sbr.rel (!%p21_p2) target bundleno = 3 (0x3), region = 105 }
 0x2d6   : > { %s2291_s19 = smov %s2288_s22 }
 0x2d7   :  { %1284 = vsyncpa [#allocation3], 1 }
 0x2d8   :  { %1286 = vsyncpa [#allocation3 + $0x1], 1 }

</bundles_post_ra>
